<compile_context>
chip_gen: v6e
topology: v6e:2x2x1
jax: 0.10.0
libtpu: 0.0.40
codegen_flags: <defaults>
</compile_context>

<pallas_src>
import functools

import numpy as np
import jax
import jax.numpy as jnp
from jax.experimental import pallas as pl
from jax.experimental.pallas import tpu as pltpu

VMEM_LIMIT = 32 * 1024 * 1024  # explicit scoped-VMEM budget, fits v5e/v6e/v7x


def _round_up(x, m):
    return (x + m - 1) // m * m


# ----------------------------------------------------------------------------
# Tiled linear:  y = x @ w + b  (optional ReLU)   -- bf16 in, f32 accumulate
# ----------------------------------------------------------------------------

def _linear_kernel(x_ref, w_ref, b_ref, o_ref, acc_ref, *, relu):
    @pl.when(pl.program_id(2) == 0)
    def _init():
        acc_ref[...] = jnp.zeros_like(acc_ref)

    acc_ref[...] += jnp.dot(x_ref[...], w_ref[...],
                            preferred_element_type=jnp.float32)

    @pl.when(pl.program_id(2) == pl.num_programs(2) - 1)
    def _finish():
        y = acc_ref[...] + b_ref[...]
        if relu:
            y = jnp.maximum(y, 0.0)
        o_ref[...] = y


def linear(x, w, b=None, relu=False):
    """x:(M,K) @ w:(K,N) + b, optional ReLU.  Tiled M/N/K grid, bf16 MXU inputs."""
    M, K = x.shape
    N = w.shape[1]
    if b is None:
        b = jnp.zeros((N,), jnp.float32)

    # Pad N up to a lane-dense multiple of 128 (unmasked stores, avoids N=1 dots).
    Np = _round_up(N, 128)
    if Np != N:
        w = jnp.pad(w, ((0, 0), (0, Np - N)))
        b = jnp.pad(b, ((0, Np - N),))

    # Row tiling (pad M when it is large and ragged).
    if M <= 512:
        tm, Mp = M, M
    else:
        tm = 256
        Mp = _round_up(M, tm)
        x = jnp.pad(x, ((0, Mp - M), (0, 0)))

    tk = K if K <= 512 else 512
    assert K % tk == 0, "contraction dim must be a multiple of 512 when > 512"
    tn = Np if Np <= 512 else 512
    assert Np % tn == 0

    grid = (Mp // tm, Np // tn, K // tk)
    out = pl.pallas_call(
        functools.partial(_linear_kernel, relu=relu),
        grid=grid,
        in_specs=[
            pl.BlockSpec((tm, tk), lambda i, j, k: (i, k)),
            pl.BlockSpec((tk, tn), lambda i, j, k: (k, j)),
            pl.BlockSpec((1, tn), lambda i, j, k: (0, j)),
        ],
        out_specs=pl.BlockSpec((tm, tn), lambda i, j, k: (i, j)),
        out_shape=jax.ShapeDtypeStruct((Mp, Np), jnp.float32),
        scratch_shapes=[pltpu.VMEM((tm, tn), jnp.float32)],
        compiler_params=pltpu.CompilerParams(
            dimension_semantics=("parallel", "parallel", "arbitrary"),
            vmem_limit_bytes=VMEM_LIMIT),
    )(x.astype(jnp.bfloat16), w.astype(jnp.bfloat16),
      b.reshape(1, Np).astype(jnp.float32))
    return out[:M, :N]


# ----------------------------------------------------------------------------
# Fused Linear + ReLU + BatchNorm1d (training-mode batch statistics).
# M is the tiny decoder batch, so a single whole-array block is kept on purpose.
# ----------------------------------------------------------------------------

def _linear_relu_bn_kernel(x_ref, w_ref, b_ref, g_ref, be_ref, o_ref):
    y = jnp.dot(x_ref[...], w_ref[...],
                preferred_element_type=jnp.float32) + b_ref[...]
    y = jnp.maximum(y, 0.0)
    mean = jnp.mean(y, axis=0, keepdims=True)
    var = jnp.mean((y - mean) ** 2, axis=0, keepdims=True)
    o_ref[...] = g_ref[...] * (y - mean) * jax.lax.rsqrt(var + 1e-5) + be_ref[...]


def linear_relu_bn(x, w, b, gamma, beta):
    # TODO(synk): training-mode batch stats only (no running mean/var eval path).
    M, K = x.shape
    N = w.shape[1]
    return pl.pallas_call(
        _linear_relu_bn_kernel,
        out_shape=jax.ShapeDtypeStruct((M, N), jnp.float32),
        compiler_params=pltpu.CompilerParams(vmem_limit_bytes=VMEM_LIMIT),
    )(x.astype(jnp.bfloat16), w.astype(jnp.bfloat16),
      b.reshape(1, N).astype(jnp.float32),
      gamma.reshape(1, N).astype(jnp.float32),
      beta.reshape(1, N).astype(jnp.float32))


# ----------------------------------------------------------------------------
# Dense GCN message passing:  (B, N, N) @ (B, N, D)   -- all graphs per step
# ----------------------------------------------------------------------------

def _bmm_kernel(a_ref, h_ref, o_ref):
    o_ref[...] = jnp.einsum('bij,bjd->bid', a_ref[...], h_ref[...],
                            preferred_element_type=jnp.float32)


def bmm(a, h):
    B, N, _ = a.shape
    D = h.shape[2]
    bt = min(B, 8)
    while B % bt:
        bt -= 1
    return pl.pallas_call(
        _bmm_kernel,
        grid=(B // bt,),
        in_specs=[pl.BlockSpec((bt, N, N), lambda i: (i, 0, 0)),
                  pl.BlockSpec((bt, N, D), lambda i: (i, 0, 0))],
        out_specs=pl.BlockSpec((bt, N, D), lambda i: (i, 0, 0)),
        out_shape=jax.ShapeDtypeStruct((B, N, D), jnp.float32),
        compiler_params=pltpu.CompilerParams(
            dimension_semantics=("parallel",), vmem_limit_bytes=VMEM_LIMIT),
    )(a.astype(jnp.bfloat16), h.astype(jnp.bfloat16))


# ----------------------------------------------------------------------------
# Attention pooling:  attn = softmax(tanh(V @ g) / sqrt(128)); out = attn @ V
# Lane-dense scores (B, 1, N); both contractions on the MXU.
# ----------------------------------------------------------------------------

def _attn_pool_kernel(v_ref, g_ref, o_ref):
    v = v_ref[...]                                        # (bt, N, D) bf16
    g = g_ref[...]                                        # (bt, 1, D) bf16
    s = jnp.einsum('bkd,bnd->bkn', g, v,
                   preferred_element_type=jnp.float32)    # (bt, 1, N)
    s = jnp.tanh(s) * (1.0 / (128.0 ** 0.5))              # scale AFTER tanh (spec)
    s = s - jnp.max(s, axis=-1, keepdims=True)
    e = jnp.exp(s)
    a = e * pl.reciprocal(jnp.sum(e, axis=-1, keepdims=True), approx=True)
    o_ref[...] = jnp.einsum('bkn,bnd->bkd', a.astype(v.dtype), v,
                            preferred_element_type=jnp.float32)


def attn_pool(v, g):
    """v: (B, N, D), g: (B, D) -> pooled (B, D)."""
    B, N, D = v.shape
    bt = min(B, 8)
    while B % bt:
        bt -= 1
    out = pl.pallas_call(
        _attn_pool_kernel,
        grid=(B // bt,),
        in_specs=[pl.BlockSpec((bt, N, D), lambda i: (i, 0, 0)),
                  pl.BlockSpec((bt, 1, D), lambda i: (i, 0, 0))],
        out_specs=pl.BlockSpec((bt, 1, D), lambda i: (i, 0, 0)),
        out_shape=jax.ShapeDtypeStruct((B, 1, D), jnp.float32),
        compiler_params=pltpu.CompilerParams(
            dimension_semantics=("parallel",), vmem_limit_bytes=VMEM_LIMIT),
    )(v.astype(jnp.bfloat16), g.reshape(B, 1, D).astype(jnp.bfloat16))
    return out.reshape(B, D)


# ----------------------------------------------------------------------------
# TransE scoring.  Feature-major (E, M) layout -> scores are a lane-dense
# (1, M_tile) row written with unmasked stores.
# ----------------------------------------------------------------------------

def _transe_kernel(h_ref, r_ref, t_ref, o_ref, *, mode):
    h = h_ref[...]                                        # (E, TL) f32
    r = r_ref[...]
    t = t_ref[...]
    if mode == 'head-batch':
        d = h + r - t
        o_ref[...] = jnp.sqrt(jnp.sum(d * d, axis=0, keepdims=True))   # L2 over dim=2
    else:  # 'single'
        d = h * r - t
        o_ref[...] = jnp.sum(jnp.abs(d), axis=0, keepdims=True)        # L1 over dim=2


def transe(head, relation, tail, mode):
    """head/relation/tail: (M, E) -> scores (M, 1), matching torch.norm(..., dim=2)."""
    M, E = head.shape
    TL = min(512, _round_up(M, 128))
    Mp = _round_up(M, TL)

    def prep(x):
        x = jnp.pad(x.astype(jnp.float32), ((0, Mp - M), (0, 0)))
        return x.T                                        # (E, Mp)

    out = pl.pallas_call(
        functools.partial(_transe_kernel, mode=mode),
        grid=(Mp // TL,),
        in_specs=[pl.BlockSpec((E, TL), lambda i: (0, i)),
                  pl.BlockSpec((E, TL), lambda i: (0, i)),
                  pl.BlockSpec((E, TL), lambda i: (0, i))],
        out_specs=pl.BlockSpec((1, TL), lambda i: (0, i)),
        out_shape=jax.ShapeDtypeStruct((1, Mp), jnp.float32),
        compiler_params=pltpu.CompilerParams(
            dimension_semantics=("parallel",), vmem_limit_bytes=VMEM_LIMIT),
    )(prep(head), prep(relation), prep(tail))
    return out.reshape(Mp)[:M].reshape(M, 1)


# ----------------------------------------------------------------------------
# Full KEPLA forward ('train' mode outputs)
# ----------------------------------------------------------------------------

def kepla_forward(params, adj, node_feats, v_p, kg_idx):
    B, N, Fin = node_feats.shape
    D = params['w_init'].shape[1]

    # ---- drug extractor (MolecularGCN over dense normalised adjacency) ----
    h = linear(node_feats.reshape(B * N, Fin), params['w_init'])   # no bias
    h = h.reshape(B, N, D)
    for w, b in params['gcn']:
        m = bmm(adj, h)                                            # A_hat @ H
        h = linear(m.reshape(B * N, D), w, b, relu=True).reshape(B, N, D)
    v_d_nodes = h

    # ---- protein branch: Linear(2560,512)+ReLU, Linear(512,128)+ReLU ----
    L = v_p.shape[1]
    p = linear(v_p.reshape(B * L, -1), params['fc1_w'], params['fc1_b'], relu=True)
    p = linear(p, params['fc2_w'], params['fc2_b'], relu=True)
    v_p_feat = p.reshape(B, L, D)

    # ---- global means + cross attention pooling ----
    v_p_global = jnp.mean(v_p_feat, axis=1)                        # (B, D)
    v_d_global = jnp.mean(v_d_nodes, axis=1)                       # (B, D)
    v_d = attn_pool(v_d_nodes, v_p_global)                         # (B, D)
    v_p_pooled = attn_pool(v_p_feat, v_d_global)                   # (B, D)
    f = jnp.concatenate([v_d, v_p_pooled], axis=1)                 # (B, 2D)

    # ---- MLP decoder (Linear+ReLU+BN x3, then Linear) ----
    x = f
    for w, b, g, be in params['dec']:
        x = linear_relu_bn(x, w, b, g, be)
    score = linear(x, params['fc4_w'], params['fc4_b'])            # (B, 1)

    # ---- KGE model ----
    v_d_kg = linear(v_d_global, params['kg_fc1_w'], params['kg_fc1_b'])
    (h_i, r_i, t_i, mh_i, mr_i, mt_i, fh_i, fr_i, ft_i) = kg_idx

    head = jnp.take(v_p_global, h_i, axis=0)
    rel = jnp.take(params['rel_emb'], r_i, axis=0)
    tail = jnp.take(params['ent_emb'], t_i, axis=0)
    kg_s = transe(head, rel, tail, mode='single')

    mol_head = jnp.take(v_d_kg, mh_i, axis=0)
    mol_rel = jnp.take(params['mol_rel_emb'], mr_i, axis=0)
    mol_tail = jnp.take(params['mol_ent_emb'], mt_i, axis=0)
    mol_s = transe(mol_head, mol_rel, mol_tail, mode='head-batch')

    feat_head = jnp.take(v_d_kg, fh_i, axis=0)
    feat_rel = jnp.take(params['feat_rel_emb'], fr_i, axis=0)
    feat_tail = jnp.take(params['feat_ent_emb'], ft_i, axis=0)
    feat_s = transe(feat_head, feat_rel, feat_tail, mode='head-batch')

    kg_score = jnp.concatenate([kg_s, mol_s * 0.1, feat_s * 0.1], axis=0)
    return v_d, v_p_pooled, f, score, kg_score


# ----------------------------------------------------------------------------
# Parameter / input construction
# ----------------------------------------------------------------------------

def init_params(key, *, f_in, d=128, prot_dim=2560, mlp_hidden=512, mlp_out=128,
                n_gcn=3):
    ks = jax.random.split(key, 20)

    def dense(k, i, o):
        return jax.random.normal(k, (i, o), jnp.float32) / np.sqrt(i)

    params = {}
    w_init = dense(ks[0], f_in, d)
    params['w_init'] = w_init.at[:, -1].set(0.0)     # mimics weight[-1].fill_(0)
    params['gcn'] = [(dense(ks[1 + i], d, d), jnp.zeros((d,), jnp.float32))
                     for i in range(n_gcn)]
    params['fc1_w'] = dense(ks[5], prot_dim, 512)
    params['fc1_b'] = jnp.zeros((512,), jnp.float32)
    params['fc2_w'] = dense(ks[6], 512, d)
    params['fc2_b'] = jnp.zeros((d,), jnp.float32)
    params['dec'] = [
        (dense(ks[7], 2 * d, mlp_hidden), jnp.zeros((mlp_hidden,)),
         jnp.ones((mlp_hidden,)), jnp.zeros((mlp_hidden,))),
        (dense(ks[8], mlp_hidden, mlp_hidden), jnp.zeros((mlp_hidden,)),
         jnp.ones((mlp_hidden,)), jnp.zeros((mlp_hidden,))),
        (dense(ks[9], mlp_hidden, mlp_out), jnp.zeros((mlp_out,)),
         jnp.ones((mlp_out,)), jnp.zeros((mlp_out,))),
    ]
    params['fc4_w'] = dense(ks[10], mlp_out, 1)
    params['fc4_b'] = jnp.zeros((1,), jnp.float32)
    params['kg_fc1_w'] = dense(ks[11], d, d)
    params['kg_fc1_b'] = jnp.zeros((d,), jnp.float32)
    params['rel_emb'] = jax.random.normal(ks[12], (3, d), jnp.float32) * 0.1
    params['ent_emb'] = jax.random.normal(ks[13], (1000, d), jnp.float32) * 0.1
    params['mol_rel_emb'] = jax.random.normal(ks[14], (1, d), jnp.float32) * 0.1
    params['mol_ent_emb'] = jax.random.normal(ks[15], (175, d), jnp.float32) * 0.1
    params['feat_rel_emb'] = jax.random.normal(ks[16], (1, d), jnp.float32) * 0.1
    params['feat_ent_emb'] = jax.random.normal(ks[17], (23, d), jnp.float32) * 0.1
    return params


if __name__ == "__main__":
    B, N, F_in, L, PROT = 2, 32, 64, 64, 2560
    key = jax.random.PRNGKey(0)
    k1, k2, k3, kp = jax.random.split(key, 4)

    node_feats = jax.random.normal(k1, (B, N, F_in), jnp.float32)
    v_p = jax.random.normal(k2, (B, L, PROT), jnp.float32)

    # Random undirected graph with self loops, symmetric normalisation.
    a = (jax.random.uniform(k3, (B, N, N)) < 0.2).astype(jnp.float32)
    a = jnp.maximum(a, jnp.transpose(a, (0, 2, 1)))
    a = jnp.minimum(a + jnp.eye(N, dtype=jnp.float32)[None], 1.0)
    dinv = 1.0 / jnp.sqrt(jnp.sum(a, axis=-1))
    adj = a * dinv[:, :, None] * dinv[:, None, :]

    # TODO(synk): the real KEPLA builds these triples from KG_dict / mol_KG_dict /
    # mol_feat_KG_dict loaded from .npy files keyed by sample id / SMILES; here we
    # use deterministic synthetic triples with the same per-table vocab sizes.
    rng = np.random.RandomState(0)
    h_i = np.repeat(np.arange(B), 3)
    r_i = rng.randint(0, 3, size=h_i.shape)
    t_i = rng.randint(0, 1000, size=h_i.shape)
    mh_i = np.repeat(np.arange(B), 4)
    mr_i = np.zeros_like(mh_i)
    mt_i = rng.randint(0, 175, size=mh_i.shape)
    fh_i = np.repeat(np.arange(B), 5)
    fr_i = np.zeros_like(fh_i)
    ft_i = rng.randint(0, 23, size=fh_i.shape)
    kg_idx = tuple(jnp.asarray(v, jnp.int32)
                   for v in (h_i, r_i, t_i, mh_i, mr_i, mt_i, fh_i, fr_i, ft_i))

    params = init_params(kp, f_in=F_in)

    fwd = jax.jit(kepla_forward)
    outputs = fwd(params, adj, node_feats, v_p, kg_idx)
    jax.block_until_ready(outputs)
    print("KERNEL_OK")
</pallas_src>

<mosaic_0001>
module attributes {stable_mosaic.version = 11 : i64} {
  func.func @_bmm_kernel(%arg0: i32, %arg1: memref<2x32x32xbf16, #tpu.memory_space<vmem>>, %arg2: memref<2x32x128xbf16, #tpu.memory_space<vmem>>, %arg3: memref<2x32x128xf32, #tpu.memory_space<vmem>>) attributes {dimension_semantics = [#tpu.dimension_semantics<parallel>], iteration_bounds = array<i64: 1>, scalar_prefetch = 0 : i64, scratch_operands = 0 : i64, tpu.core_type = #tpu.core_type<tc>, window_params = [{transform_indices = @transform_0, window_bounds = array<i64: 2, 32, 32>}, {transform_indices = @transform_1, window_bounds = array<i64: 2, 32, 128>}, {transform_indices = @transform_2, window_bounds = array<i64: 2, 32, 128>}]} {
    %c0 = arith.constant 0 : index
    %c0_0 = arith.constant 0 : index
    %c0_1 = arith.constant 0 : index
    %0 = vector.load %arg1[%c0, %c0_0, %c0_1] : memref<2x32x32xbf16, #tpu.memory_space<vmem>>, vector<2x32x32xbf16>
    %c0_2 = arith.constant 0 : index
    %c0_3 = arith.constant 0 : index
    %c0_4 = arith.constant 0 : index
    %1 = vector.load %arg2[%c0_2, %c0_3, %c0_4] : memref<2x32x128xbf16, #tpu.memory_space<vmem>>, vector<2x32x128xbf16>
    "tpu.trace_start"() <{level = 10 : i32, message = "bij,bjd->bid"}> : () -> ()
    %cst = arith.constant dense<0.000000e+00> : vector<2x32x128xf32>
    %2 = tpu.matmul %0, %1, %cst {dimension_numbers = #tpu.dot_dimension_numbers<[2], [1], [1], [2], [0, 0, 0, 1, 1, 2], [0], [0]>} : vector<2x32x32xbf16>, vector<2x32x128xbf16>, vector<2x32x128xf32> -> vector<2x32x128xf32>
    "tpu.trace_stop"() : () -> ()
    %c0_5 = arith.constant 0 : index
    %c0_6 = arith.constant 0 : index
    %c0_7 = arith.constant 0 : index
    %3 = vector.load %arg3[%c0_5, %c0_6, %c0_7] : memref<2x32x128xf32, #tpu.memory_space<vmem>>, vector<2x32x128xf32>
    tpu.vector_store %arg3[%c0_5, %c0_6, %c0_7], %2 {strides = array<i32>} : memref<2x32x128xf32, #tpu.memory_space<vmem>>, vector<2x32x128xf32>,
    return
  }
  func.func @transform_0(%arg0: i32) -> (i32, i32, i32) {
    %c0_i32 = arith.constant 0 : i32
    %c0_i32_0 = arith.constant 0 : i32
    %c0_i32_1 = arith.constant 0 : i32
    return %arg0, %c0_i32, %c0_i32_0 : i32, i32, i32
  }
  func.func @transform_1(%arg0: i32) -> (i32, i32, i32) {
    %c0_i32 = arith.constant 0 : i32
    %c0_i32_0 = arith.constant 0 : i32
    %c0_i32_1 = arith.constant 0 : i32
    return %arg0, %c0_i32, %c0_i32_0 : i32, i32, i32
  }
  func.func @transform_2(%arg0: i32) -> (i32, i32, i32) {
    %c0_i32 = arith.constant 0 : i32
    %c0_i32_0 = arith.constant 0 : i32
    %c0_i32_1 = arith.constant 0 : i32
    return %arg0, %c0_i32, %c0_i32_0 : i32, i32, i32
  }
}

module attributes {stable_mosaic.version = 11 : i64} {
  func.func @_linear_kernel(%arg0: i32, %arg1: i32, %arg2: i32, %arg3: memref<64x64xbf16, #tpu.memory_space<vmem>>, %arg4: memref<64x128xbf16, #tpu.memory_space<vmem>>, %arg5: memref<1x128xf32, #tpu.memory_space<vmem>>, %arg6: memref<64x128xf32, #tpu.memory_space<vmem>>, %arg7: memref<64x128xf32, #tpu.memory_space<vmem>>) attributes {dimension_semantics = [#tpu.dimension_semantics<parallel>, #tpu.dimension_semantics<parallel>, #tpu.dimension_semantics<arbitrary>], iteration_bounds = array<i64: 1, 1, 1>, scalar_prefetch = 0 : i64, scratch_operands = 1 : i64, tpu.core_type = #tpu.core_type<tc>, window_params = [{transform_indices = @transform_0, window_bounds = array<i64: 64, 64>}, {transform_indices = @transform_1, window_bounds = array<i64: 64, 128>}, {transform_indices = @transform_2, window_bounds = array<i64: 1, 128>}, {transform_indices = @transform_3, window_bounds = array<i64: 64, 128>}]} {
    %c0_i32 = arith.constant 0 : i32
    %0 = arith.cmpi eq, %arg2, %c0_i32 : i32
    %1 = arith.extui %0 : i1 to i32
    %c0_i32_0 = arith.constant 0 : i32
    %2 = arith.cmpi ne, %1, %c0_i32_0 : i32
    scf.if %2 {
      %cst_10 = arith.constant 0.000000e+00 : f32
      %12 = vector.broadcast %cst_10 : f32 to vector<64x128xf32>
      %c0_11 = arith.constant 0 : index
      %c0_12 = arith.constant 0 : index
      %13 = vector.load %arg7[%c0_11, %c0_12] : memref<64x128xf32, #tpu.memory_space<vmem>>, vector<64x128xf32>
      tpu.vector_store %arg7[%c0_11, %c0_12], %12 {strides = array<i32>} : memref<64x128xf32, #tpu.memory_space<vmem>>, vector<64x128xf32>,
    } else {
    }
    %c0 = arith.constant 0 : index
    %c0_1 = arith.constant 0 : index
    %3 = vector.load %arg7[%c0, %c0_1] : memref<64x128xf32, #tpu.memory_space<vmem>>, vector<64x128xf32>
    %c0_2 = arith.constant 0 : index
    %c0_3 = arith.constant 0 : index
    %4 = vector.load %arg3[%c0_2, %c0_3] : memref<64x64xbf16, #tpu.memory_space<vmem>>, vector<64x64xbf16>
    %c0_4 = arith.constant 0 : index
    %c0_5 = arith.constant 0 : index
    %5 = vector.load %arg4[%c0_4, %c0_5] : memref<64x128xbf16, #tpu.memory_space<vmem>>, vector<64x128xbf16>
    %cst = arith.constant dense<0.000000e+00> : vector<64x128xf32>
    %6 = tpu.matmul %4, %5, %cst {dimension_numbers = #tpu.dot_dimension_numbers<[1], [0], [0], [1], [0, 0, 1, 1], [], []>} : vector<64x64xbf16>, vector<64x128xbf16>, vector<64x128xf32> -> vector<64x128xf32>
    %7 = arith.addf %3, %6 : vector<64x128xf32>
    %c0_6 = arith.constant 0 : index
    %c0_7 = arith.constant 0 : index
    %8 = vector.load %arg7[%c0_6, %c0_7] : memref<64x128xf32, #tpu.memory_space<vmem>>, vector<64x128xf32>
    tpu.vector_store %arg7[%c0_6, %c0_7], %7 {strides = array<i32>} : memref<64x128xf32, #tpu.memory_space<vmem>>, vector<64x128xf32>,
    %c0_i32_8 = arith.constant 0 : i32
    %9 = arith.cmpi eq, %arg2, %c0_i32_8 : i32
    %10 = arith.extui %9 : i1 to i32
    %c0_i32_9 = arith.constant 0 : i32
    %11 = arith.cmpi ne, %10, %c0_i32_9 : i32
    scf.if %11 {
      %c0_10 = arith.constant 0 : index
      %c0_11 = arith.constant 0 : index
      %12 = vector.load %arg7[%c0_10, %c0_11] : memref<64x128xf32, #tpu.memory_space<vmem>>, vector<64x128xf32>
      %c0_12 = arith.constant 0 : index
      %c0_13 = arith.constant 0 : index
      %13 = vector.load %arg5[%c0_12, %c0_13] : memref<1x128xf32, #tpu.memory_space<vmem>>, vector<1x128xf32>
      %14 = vector.broadcast %13 : vector<1x128xf32> to vector<64x128xf32>
      %15 = arith.addf %12, %14 : vector<64x128xf32>
      %c0_14 = arith.constant 0 : index
      %c0_15 = arith.constant 0 : index
      %16 = vector.load %arg6[%c0_14, %c0_15] : memref<64x128xf32, #tpu.memory_space<vmem>>, vector<64x128xf32>
      tpu.vector_store %arg6[%c0_14, %c0_15], %15 {strides = array<i32>} : memref<64x128xf32, #tpu.memory_space<vmem>>, vector<64x128xf32>,
    } else {
    }
    return
  }
  func.func @transform_0(%arg0: i32, %arg1: i32, %arg2: i32) -> (i32, i32) {
    %c0_i32 = arith.constant 0 : i32
    return %arg0, %arg2 : i32, i32
  }
  func.func @transform_1(%arg0: i32, %arg1: i32, %arg2: i32) -> (i32, i32) {
    %c0_i32 = arith.constant 0 : i32
    return %arg2, %arg1 : i32, i32
  }
  func.func @transform_2(%arg0: i32, %arg1: i32, %arg2: i32) -> (i32, i32) {
    %c0_i32 = arith.constant 0 : i32
    %c0_i32_0 = arith.constant 0 : i32
    return %c0_i32, %arg1 : i32, i32
  }
  func.func @transform_3(%arg0: i32, %arg1: i32, %arg2: i32) -> (i32, i32) {
    %c0_i32 = arith.constant 0 : i32
    return %arg0, %arg1 : i32, i32
  }
}

module attributes {stable_mosaic.version = 11 : i64} {
  func.func @_linear_kernel(%arg0: i32, %arg1: i32, %arg2: i32, %arg3: memref<64x128xbf16, #tpu.memory_space<vmem>>, %arg4: memref<128x128xbf16, #tpu.memory_space<vmem>>, %arg5: memref<1x128xf32, #tpu.memory_space<vmem>>, %arg6: memref<64x128xf32, #tpu.memory_space<vmem>>, %arg7: memref<64x128xf32, #tpu.memory_space<vmem>>) attributes {dimension_semantics = [#tpu.dimension_semantics<parallel>, #tpu.dimension_semantics<parallel>, #tpu.dimension_semantics<arbitrary>], iteration_bounds = array<i64: 1, 1, 1>, scalar_prefetch = 0 : i64, scratch_operands = 1 : i64, tpu.core_type = #tpu.core_type<tc>, window_params = [{transform_indices = @transform_0, window_bounds = array<i64: 64, 128>}, {transform_indices = @transform_1, window_bounds = array<i64: 128, 128>}, {transform_indices = @transform_2, window_bounds = array<i64: 1, 128>}, {transform_indices = @transform_3, window_bounds = array<i64: 64, 128>}]} {
    %c0_i32 = arith.constant 0 : i32
    %0 = arith.cmpi eq, %arg2, %c0_i32 : i32
    %1 = arith.extui %0 : i1 to i32
    %c0_i32_0 = arith.constant 0 : i32
    %2 = arith.cmpi ne, %1, %c0_i32_0 : i32
    scf.if %2 {
      %cst_10 = arith.constant 0.000000e+00 : f32
      %12 = vector.broadcast %cst_10 : f32 to vector<64x128xf32>
      %c0_11 = arith.constant 0 : index
      %c0_12 = arith.constant 0 : index
      %13 = vector.load %arg7[%c0_11, %c0_12] : memref<64x128xf32, #tpu.memory_space<vmem>>, vector<64x128xf32>
      tpu.vector_store %arg7[%c0_11, %c0_12], %12 {strides = array<i32>} : memref<64x128xf32, #tpu.memory_space<vmem>>, vector<64x128xf32>,
    } else {
    }
    %c0 = arith.constant 0 : index
    %c0_1 = arith.constant 0 : index
    %3 = vector.load %arg7[%c0, %c0_1] : memref<64x128xf32, #tpu.memory_space<vmem>>, vector<64x128xf32>
    %c0_2 = arith.constant 0 : index
    %c0_3 = arith.constant 0 : index
    %4 = vector.load %arg3[%c0_2, %c0_3] : memref<64x128xbf16, #tpu.memory_space<vmem>>, vector<64x128xbf16>
    %c0_4 = arith.constant 0 : index
    %c0_5 = arith.constant 0 : index
    %5 = vector.load %arg4[%c0_4, %c0_5] : memref<128x128xbf16, #tpu.memory_space<vmem>>, vector<128x128xbf16>
    %cst = arith.constant dense<0.000000e+00> : vector<64x128xf32>
    %6 = tpu.matmul %4, %5, %cst {dimension_numbers = #tpu.dot_dimension_numbers<[1], [0], [0], [1], [0, 0, 1, 1], [], []>} : vector<64x128xbf16>, vector<128x128xbf16>, vector<64x128xf32> -> vector<64x128xf32>
    %7 = arith.addf %3, %6 : vector<64x128xf32>
    %c0_6 = arith.constant 0 : index
    %c0_7 = arith.constant 0 : index
    %8 = vector.load %arg7[%c0_6, %c0_7] : memref<64x128xf32, #tpu.memory_space<vmem>>, vector<64x128xf32>
    tpu.vector_store %arg7[%c0_6, %c0_7], %7 {strides = array<i32>} : memref<64x128xf32, #tpu.memory_space<vmem>>, vector<64x128xf32>,
    %c0_i32_8 = arith.constant 0 : i32
    %9 = arith.cmpi eq, %arg2, %c0_i32_8 : i32
    %10 = arith.extui %9 : i1 to i32
    %c0_i32_9 = arith.constant 0 : i32
    %11 = arith.cmpi ne, %10, %c0_i32_9 : i32
    scf.if %11 {
      %c0_10 = arith.constant 0 : index
      %c0_11 = arith.constant 0 : index
      %12 = vector.load %arg7[%c0_10, %c0_11] : memref<64x128xf32, #tpu.memory_space<vmem>>, vector<64x128xf32>
      %c0_12 = arith.constant 0 : index
      %c0_13 = arith.constant 0 : index
      %13 = vector.load %arg5[%c0_12, %c0_13] : memref<1x128xf32, #tpu.memory_space<vmem>>, vector<1x128xf32>
      %14 = vector.broadcast %13 : vector<1x128xf32> to vector<64x128xf32>
      %15 = arith.addf %12, %14 : vector<64x128xf32>
      %cst_14 = arith.constant 0.000000e+00 : f32
      %16 = vector.broadcast %cst_14 : f32 to vector<64x128xf32>
      %17 = arith.maximumf %15, %16 : vector<64x128xf32>
      %c0_15 = arith.constant 0 : index
      %c0_16 = arith.constant 0 : index
      %18 = vector.load %arg6[%c0_15, %c0_16] : memref<64x128xf32, #tpu.memory_space<vmem>>, vector<64x128xf32>
      tpu.vector_store %arg6[%c0_15, %c0_16], %17 {strides = array<i32>} : memref<64x128xf32, #tpu.memory_space<vmem>>, vector<64x128xf32>,
    } else {
    }
    return
  }
  func.func @transform_0(%arg0: i32, %arg1: i32, %arg2: i32) -> (i32, i32) {
    %c0_i32 = arith.constant 0 : i32
    return %arg0, %arg2 : i32, i32
  }
  func.func @transform_1(%arg0: i32, %arg1: i32, %arg2: i32) -> (i32, i32) {
    %c0_i32 = arith.constant 0 : i32
    return %arg2, %arg1 : i32, i32
  }
  func.func @transform_2(%arg0: i32, %arg1: i32, %arg2: i32) -> (i32, i32) {
    %c0_i32 = arith.constant 0 : i32
    %c0_i32_0 = arith.constant 0 : i32
    return %c0_i32, %arg1 : i32, i32
  }
  func.func @transform_3(%arg0: i32, %arg1: i32, %arg2: i32) -> (i32, i32) {
    %c0_i32 = arith.constant 0 : i32
    return %arg0, %arg1 : i32, i32
  }
}

module attributes {stable_mosaic.version = 11 : i64} {
  func.func @_linear_kernel(%arg0: i32, %arg1: i32, %arg2: i32, %arg3: memref<2x128xbf16, #tpu.memory_space<vmem>>, %arg4: memref<128x128xbf16, #tpu.memory_space<vmem>>, %arg5: memref<1x128xf32, #tpu.memory_space<vmem>>, %arg6: memref<2x128xf32, #tpu.memory_space<vmem>>, %arg7: memref<2x128xf32, #tpu.memory_space<vmem>>) attributes {dimension_semantics = [#tpu.dimension_semantics<parallel>, #tpu.dimension_semantics<parallel>, #tpu.dimension_semantics<arbitrary>], iteration_bounds = array<i64: 1, 1, 1>, scalar_prefetch = 0 : i64, scratch_operands = 1 : i64, tpu.core_type = #tpu.core_type<tc>, window_params = [{transform_indices = @transform_0, window_bounds = array<i64: 2, 128>}, {transform_indices = @transform_1, window_bounds = array<i64: 128, 128>}, {transform_indices = @transform_2, window_bounds = array<i64: 1, 128>}, {transform_indices = @transform_3, window_bounds = array<i64: 2, 128>}]} {
    %c0_i32 = arith.constant 0 : i32
    %0 = arith.cmpi eq, %arg2, %c0_i32 : i32
    %1 = arith.extui %0 : i1 to i32
    %c0_i32_0 = arith.constant 0 : i32
    %2 = arith.cmpi ne, %1, %c0_i32_0 : i32
    scf.if %2 {
      %cst_10 = arith.constant 0.000000e+00 : f32
      %12 = vector.broadcast %cst_10 : f32 to vector<2x128xf32>
      %c0_11 = arith.constant 0 : index
      %c0_12 = arith.constant 0 : index
      %13 = vector.load %arg7[%c0_11, %c0_12] : memref<2x128xf32, #tpu.memory_space<vmem>>, vector<2x128xf32>
      tpu.vector_store %arg7[%c0_11, %c0_12], %12 {strides = array<i32>} : memref<2x128xf32, #tpu.memory_space<vmem>>, vector<2x128xf32>,
    } else {
    }
    %c0 = arith.constant 0 : index
    %c0_1 = arith.constant 0 : index
    %3 = vector.load %arg7[%c0, %c0_1] : memref<2x128xf32, #tpu.memory_space<vmem>>, vector<2x128xf32>
    %c0_2 = arith.constant 0 : index
    %c0_3 = arith.constant 0 : index
    %4 = vector.load %arg3[%c0_2, %c0_3] : memref<2x128xbf16, #tpu.memory_space<vmem>>, vector<2x128xbf16>
    %c0_4 = arith.constant 0 : index
    %c0_5 = arith.constant 0 : index
    %5 = vector.load %arg4[%c0_4, %c0_5] : memref<128x128xbf16, #tpu.memory_space<vmem>>, vector<128x128xbf16>
    %cst = arith.constant dense<0.000000e+00> : vector<2x128xf32>
    %6 = tpu.matmul %4, %5, %cst {dimension_numbers = #tpu.dot_dimension_numbers<[1], [0], [0], [1], [0, 0, 1, 1], [], []>} : vector<2x128xbf16>, vector<128x128xbf16>, vector<2x128xf32> -> vector<2x128xf32>
    %7 = arith.addf %3, %6 : vector<2x128xf32>
    %c0_6 = arith.constant 0 : index
    %c0_7 = arith.constant 0 : index
    %8 = vector.load %arg7[%c0_6, %c0_7] : memref<2x128xf32, #tpu.memory_space<vmem>>, vector<2x128xf32>
    tpu.vector_store %arg7[%c0_6, %c0_7], %7 {strides = array<i32>} : memref<2x128xf32, #tpu.memory_space<vmem>>, vector<2x128xf32>,
    %c0_i32_8 = arith.constant 0 : i32
    %9 = arith.cmpi eq, %arg2, %c0_i32_8 : i32
    %10 = arith.extui %9 : i1 to i32
    %c0_i32_9 = arith.constant 0 : i32
    %11 = arith.cmpi ne, %10, %c0_i32_9 : i32
    scf.if %11 {
      %c0_10 = arith.constant 0 : index
      %c0_11 = arith.constant 0 : index
      %12 = vector.load %arg7[%c0_10, %c0_11] : memref<2x128xf32, #tpu.memory_space<vmem>>, vector<2x128xf32>
      %c0_12 = arith.constant 0 : index
      %c0_13 = arith.constant 0 : index
      %13 = vector.load %arg5[%c0_12, %c0_13] : memref<1x128xf32, #tpu.memory_space<vmem>>, vector<1x128xf32>
      %14 = vector.broadcast %13 : vector<1x128xf32> to vector<2x128xf32>
      %15 = arith.addf %12, %14 : vector<2x128xf32>
      %c0_14 = arith.constant 0 : index
      %c0_15 = arith.constant 0 : index
      %16 = vector.load %arg6[%c0_14, %c0_15] : memref<2x128xf32, #tpu.memory_space<vmem>>, vector<2x128xf32>
      tpu.vector_store %arg6[%c0_14, %c0_15], %15 {strides = array<i32>} : memref<2x128xf32, #tpu.memory_space<vmem>>, vector<2x128xf32>,
    } else {
    }
    return
  }
  func.func @transform_0(%arg0: i32, %arg1: i32, %arg2: i32) -> (i32, i32) {
    %c0_i32 = arith.constant 0 : i32
    return %arg0, %arg2 : i32, i32
  }
  func.func @transform_1(%arg0: i32, %arg1: i32, %arg2: i32) -> (i32, i32) {
    %c0_i32 = arith.constant 0 : i32
    return %arg2, %arg1 : i32, i32
  }
  func.func @transform_2(%arg0: i32, %arg1: i32, %arg2: i32) -> (i32, i32) {
    %c0_i32 = arith.constant 0 : i32
    %c0_i32_0 = arith.constant 0 : i32
    return %c0_i32, %arg1 : i32, i32
  }
  func.func @transform_3(%arg0: i32, %arg1: i32, %arg2: i32) -> (i32, i32) {
    %c0_i32 = arith.constant 0 : i32
    return %arg0, %arg1 : i32, i32
  }
}

module attributes {stable_mosaic.version = 11 : i64} {
  func.func @_transe_kernel(%arg0: i32, %arg1: memref<128x128xf32, #tpu.memory_space<vmem>>, %arg2: memref<128x128xf32, #tpu.memory_space<vmem>>, %arg3: memref<128x128xf32, #tpu.memory_space<vmem>>, %arg4: memref<1x128xf32, #tpu.memory_space<vmem>>) attributes {dimension_semantics = [#tpu.dimension_semantics<parallel>], iteration_bounds = array<i64: 1>, scalar_prefetch = 0 : i64, scratch_operands = 0 : i64, tpu.core_type = #tpu.core_type<tc>, window_params = [{transform_indices = @transform_0, window_bounds = array<i64: 128, 128>}, {transform_indices = @transform_1, window_bounds = array<i64: 128, 128>}, {transform_indices = @transform_2, window_bounds = array<i64: 128, 128>}, {transform_indices = @transform_3, window_bounds = array<i64: 1, 128>}]} {
    %c0 = arith.constant 0 : index
    %c0_0 = arith.constant 0 : index
    %0 = vector.load %arg1[%c0, %c0_0] : memref<128x128xf32, #tpu.memory_space<vmem>>, vector<128x128xf32>
    %c0_1 = arith.constant 0 : index
    %c0_2 = arith.constant 0 : index
    %1 = vector.load %arg2[%c0_1, %c0_2] : memref<128x128xf32, #tpu.memory_space<vmem>>, vector<128x128xf32>
    %c0_3 = arith.constant 0 : index
    %c0_4 = arith.constant 0 : index
    %2 = vector.load %arg3[%c0_3, %c0_4] : memref<128x128xf32, #tpu.memory_space<vmem>>, vector<128x128xf32>
    %3 = arith.addf %0, %1 : vector<128x128xf32>
    %4 = arith.subf %3, %2 : vector<128x128xf32>
    %5 = arith.mulf %4, %4 : vector<128x128xf32>
    %cst = arith.constant dense<0.000000e+00> : vector<128xf32>
    %6 = vector.multi_reduction <add>, %5, %cst [0] : vector<128x128xf32> to vector<128xf32>
    %7 = vector.shape_cast %6 : vector<128xf32> to vector<1x128xf32>
    %8 = math.sqrt %7 : vector<1x128xf32>
    %c0_5 = arith.constant 0 : index
    %c0_6 = arith.constant 0 : index
    %9 = vector.load %arg4[%c0_5, %c0_6] : memref<1x128xf32, #tpu.memory_space<vmem>>, vector<1x128xf32>
    tpu.vector_store %arg4[%c0_5, %c0_6], %8 {strides = array<i32>} : memref<1x128xf32, #tpu.memory_space<vmem>>, vector<1x128xf32>,
    return
  }
  func.func @transform_0(%arg0: i32) -> (i32, i32) {
    %c0_i32 = arith.constant 0 : i32
    %c0_i32_0 = arith.constant 0 : i32
    return %c0_i32, %arg0 : i32, i32
  }
  func.func @transform_1(%arg0: i32) -> (i32, i32) {
    %c0_i32 = arith.constant 0 : i32
    %c0_i32_0 = arith.constant 0 : i32
    return %c0_i32, %arg0 : i32, i32
  }
  func.func @transform_2(%arg0: i32) -> (i32, i32) {
    %c0_i32 = arith.constant 0 : i32
    %c0_i32_0 = arith.constant 0 : i32
    return %c0_i32, %arg0 : i32, i32
  }
  func.func @transform_3(%arg0: i32) -> (i32, i32) {
    %c0_i32 = arith.constant 0 : i32
    %c0_i32_0 = arith.constant 0 : i32
    return %c0_i32, %arg0 : i32, i32
  }
}

module attributes {stable_mosaic.version = 11 : i64} {
  func.func @_linear_kernel(%arg0: i32, %arg1: i32, %arg2: i32, %arg3: memref<128x512xbf16, #tpu.memory_space<vmem>>, %arg4: memref<512x512xbf16, #tpu.memory_space<vmem>>, %arg5: memref<1x512xf32, #tpu.memory_space<vmem>>, %arg6: memref<128x512xf32, #tpu.memory_space<vmem>>, %arg7: memref<128x512xf32, #tpu.memory_space<vmem>>) attributes {dimension_semantics = [#tpu.dimension_semantics<parallel>, #tpu.dimension_semantics<parallel>, #tpu.dimension_semantics<arbitrary>], iteration_bounds = array<i64: 1, 1, 5>, scalar_prefetch = 0 : i64, scratch_operands = 1 : i64, tpu.core_type = #tpu.core_type<tc>, window_params = [{transform_indices = @transform_0, window_bounds = array<i64: 128, 512>}, {transform_indices = @transform_1, window_bounds = array<i64: 512, 512>}, {transform_indices = @transform_2, window_bounds = array<i64: 1, 512>}, {transform_indices = @transform_3, window_bounds = array<i64: 128, 512>}]} {
    %c0_i32 = arith.constant 0 : i32
    %0 = arith.cmpi eq, %arg2, %c0_i32 : i32
    %1 = arith.extui %0 : i1 to i32
    %c0_i32_0 = arith.constant 0 : i32
    %2 = arith.cmpi ne, %1, %c0_i32_0 : i32
    scf.if %2 {
      %cst_9 = arith.constant 0.000000e+00 : f32
      %12 = vector.broadcast %cst_9 : f32 to vector<128x512xf32>
      %c0_10 = arith.constant 0 : index
      %c0_11 = arith.constant 0 : index
      %13 = vector.load %arg7[%c0_10, %c0_11] : memref<128x512xf32, #tpu.memory_space<vmem>>, vector<128x512xf32>
      tpu.vector_store %arg7[%c0_10, %c0_11], %12 {strides = array<i32>} : memref<128x512xf32, #tpu.memory_space<vmem>>, vector<128x512xf32>,
    } else {
    }
    %c0 = arith.constant 0 : index
    %c0_1 = arith.constant 0 : index
    %3 = vector.load %arg7[%c0, %c0_1] : memref<128x512xf32, #tpu.memory_space<vmem>>, vector<128x512xf32>
    %c0_2 = arith.constant 0 : index
    %c0_3 = arith.constant 0 : index
    %4 = vector.load %arg3[%c0_2, %c0_3] : memref<128x512xbf16, #tpu.memory_space<vmem>>, vector<128x512xbf16>
    %c0_4 = arith.constant 0 : index
    %c0_5 = arith.constant 0 : index
    %5 = vector.load %arg4[%c0_4, %c0_5] : memref<512x512xbf16, #tpu.memory_space<vmem>>, vector<512x512xbf16>
    %cst = arith.constant dense<0.000000e+00> : vector<128x512xf32>
    %6 = tpu.matmul %4, %5, %cst {dimension_numbers = #tpu.dot_dimension_numbers<[1], [0], [0], [1], [0, 0, 1, 1], [], []>} : vector<128x512xbf16>, vector<512x512xbf16>, vector<128x512xf32> -> vector<128x512xf32>
    %7 = arith.addf %3, %6 : vector<128x512xf32>
    %c0_6 = arith.constant 0 : index
    %c0_7 = arith.constant 0 : index
    %8 = vector.load %arg7[%c0_6, %c0_7] : memref<128x512xf32, #tpu.memory_space<vmem>>, vector<128x512xf32>
    tpu.vector_store %arg7[%c0_6, %c0_7], %7 {strides = array<i32>} : memref<128x512xf32, #tpu.memory_space<vmem>>, vector<128x512xf32>,
    %c4_i32 = arith.constant 4 : i32
    %9 = arith.cmpi eq, %arg2, %c4_i32 : i32
    %10 = arith.extui %9 : i1 to i32
    %c0_i32_8 = arith.constant 0 : i32
    %11 = arith.cmpi ne, %10, %c0_i32_8 : i32
    scf.if %11 {
      %c0_9 = arith.constant 0 : index
      %c0_10 = arith.constant 0 : index
      %12 = vector.load %arg7[%c0_9, %c0_10] : memref<128x512xf32, #tpu.memory_space<vmem>>, vector<128x512xf32>
      %c0_11 = arith.constant 0 : index
      %c0_12 = arith.constant 0 : index
      %13 = vector.load %arg5[%c0_11, %c0_12] : memref<1x512xf32, #tpu.memory_space<vmem>>, vector<1x512xf32>
      %14 = vector.broadcast %13 : vector<1x512xf32> to vector<128x512xf32>
      %15 = arith.addf %12, %14 : vector<128x512xf32>
      %cst_13 = arith.constant 0.000000e+00 : f32
      %16 = vector.broadcast %cst_13 : f32 to vector<128x512xf32>
      %17 = arith.maximumf %15, %16 : vector<128x512xf32>
      %c0_14 = arith.constant 0 : index
      %c0_15 = arith.constant 0 : index
      %18 = vector.load %arg6[%c0_14, %c0_15] : memref<128x512xf32, #tpu.memory_space<vmem>>, vector<128x512xf32>
      tpu.vector_store %arg6[%c0_14, %c0_15], %17 {strides = array<i32>} : memref<128x512xf32, #tpu.memory_space<vmem>>, vector<128x512xf32>,
    } else {
    }
    return
  }
  func.func @transform_0(%arg0: i32, %arg1: i32, %arg2: i32) -> (i32, i32) {
    %c0_i32 = arith.constant 0 : i32
    return %arg0, %arg2 : i32, i32
  }
  func.func @transform_1(%arg0: i32, %arg1: i32, %arg2: i32) -> (i32, i32) {
    %c0_i32 = arith.constant 0 : i32
    return %arg2, %arg1 : i32, i32
  }
  func.func @transform_2(%arg0: i32, %arg1: i32, %arg2: i32) -> (i32, i32) {
    %c0_i32 = arith.constant 0 : i32
    %c0_i32_0 = arith.constant 0 : i32
    return %c0_i32, %arg1 : i32, i32
  }
  func.func @transform_3(%arg0: i32, %arg1: i32, %arg2: i32) -> (i32, i32) {
    %c0_i32 = arith.constant 0 : i32
    return %arg0, %arg1 : i32, i32
  }
}

module attributes {stable_mosaic.version = 11 : i64} {
  func.func @_linear_kernel(%arg0: i32, %arg1: i32, %arg2: i32, %arg3: memref<128x512xbf16, #tpu.memory_space<vmem>>, %arg4: memref<512x128xbf16, #tpu.memory_space<vmem>>, %arg5: memref<1x128xf32, #tpu.memory_space<vmem>>, %arg6: memref<128x128xf32, #tpu.memory_space<vmem>>, %arg7: memref<128x128xf32, #tpu.memory_space<vmem>>) attributes {dimension_semantics = [#tpu.dimension_semantics<parallel>, #tpu.dimension_semantics<parallel>, #tpu.dimension_semantics<arbitrary>], iteration_bounds = array<i64: 1, 1, 1>, scalar_prefetch = 0 : i64, scratch_operands = 1 : i64, tpu.core_type = #tpu.core_type<tc>, window_params = [{transform_indices = @transform_0, window_bounds = array<i64: 128, 512>}, {transform_indices = @transform_1, window_bounds = array<i64: 512, 128>}, {transform_indices = @transform_2, window_bounds = array<i64: 1, 128>}, {transform_indices = @transform_3, window_bounds = array<i64: 128, 128>}]} {
    %c0_i32 = arith.constant 0 : i32
    %0 = arith.cmpi eq, %arg2, %c0_i32 : i32
    %1 = arith.extui %0 : i1 to i32
    %c0_i32_0 = arith.constant 0 : i32
    %2 = arith.cmpi ne, %1, %c0_i32_0 : i32
    scf.if %2 {
      %cst_10 = arith.constant 0.000000e+00 : f32
      %12 = vector.broadcast %cst_10 : f32 to vector<128x128xf32>
      %c0_11 = arith.constant 0 : index
      %c0_12 = arith.constant 0 : index
      %13 = vector.load %arg7[%c0_11, %c0_12] : memref<128x128xf32, #tpu.memory_space<vmem>>, vector<128x128xf32>
      tpu.vector_store %arg7[%c0_11, %c0_12], %12 {strides = array<i32>} : memref<128x128xf32, #tpu.memory_space<vmem>>, vector<128x128xf32>,
    } else {
    }
    %c0 = arith.constant 0 : index
    %c0_1 = arith.constant 0 : index
    %3 = vector.load %arg7[%c0, %c0_1] : memref<128x128xf32, #tpu.memory_space<vmem>>, vector<128x128xf32>
    %c0_2 = arith.constant 0 : index
    %c0_3 = arith.constant 0 : index
    %4 = vector.load %arg3[%c0_2, %c0_3] : memref<128x512xbf16, #tpu.memory_space<vmem>>, vector<128x512xbf16>
    %c0_4 = arith.constant 0 : index
    %c0_5 = arith.constant 0 : index
    %5 = vector.load %arg4[%c0_4, %c0_5] : memref<512x128xbf16, #tpu.memory_space<vmem>>, vector<512x128xbf16>
    %cst = arith.constant dense<0.000000e+00> : vector<128x128xf32>
    %6 = tpu.matmul %4, %5, %cst {dimension_numbers = #tpu.dot_dimension_numbers<[1], [0], [0], [1], [0, 0, 1, 1], [], []>} : vector<128x512xbf16>, vector<512x128xbf16>, vector<128x128xf32> -> vector<128x128xf32>
    %7 = arith.addf %3, %6 : vector<128x128xf32>
    %c0_6 = arith.constant 0 : index
    %c0_7 = arith.constant 0 : index
    %8 = vector.load %arg7[%c0_6, %c0_7] : memref<128x128xf32, #tpu.memory_space<vmem>>, vector<128x128xf32>
    tpu.vector_store %arg7[%c0_6, %c0_7], %7 {strides = array<i32>} : memref<128x128xf32, #tpu.memory_space<vmem>>, vector<128x128xf32>,
    %c0_i32_8 = arith.constant 0 : i32
    %9 = arith.cmpi eq, %arg2, %c0_i32_8 : i32
    %10 = arith.extui %9 : i1 to i32
    %c0_i32_9 = arith.constant 0 : i32
    %11 = arith.cmpi ne, %10, %c0_i32_9 : i32
    scf.if %11 {
      %c0_10 = arith.constant 0 : index
      %c0_11 = arith.constant 0 : index
      %12 = vector.load %arg7[%c0_10, %c0_11] : memref<128x128xf32, #tpu.memory_space<vmem>>, vector<128x128xf32>
      %c0_12 = arith.constant 0 : index
      %c0_13 = arith.constant 0 : index
      %13 = vector.load %arg5[%c0_12, %c0_13] : memref<1x128xf32, #tpu.memory_space<vmem>>, vector<1x128xf32>
      %14 = vector.broadcast %13 : vector<1x128xf32> to vector<128x128xf32>
      %15 = arith.addf %12, %14 : vector<128x128xf32>
      %cst_14 = arith.constant 0.000000e+00 : f32
      %16 = vector.broadcast %cst_14 : f32 to vector<128x128xf32>
      %17 = arith.maximumf %15, %16 : vector<128x128xf32>
      %c0_15 = arith.constant 0 : index
      %c0_16 = arith.constant 0 : index
      %18 = vector.load %arg6[%c0_15, %c0_16] : memref<128x128xf32, #tpu.memory_space<vmem>>, vector<128x128xf32>
      tpu.vector_store %arg6[%c0_15, %c0_16], %17 {strides = array<i32>} : memref<128x128xf32, #tpu.memory_space<vmem>>, vector<128x128xf32>,
    } else {
    }
    return
  }
  func.func @transform_0(%arg0: i32, %arg1: i32, %arg2: i32) -> (i32, i32) {
    %c0_i32 = arith.constant 0 : i32
    return %arg0, %arg2 : i32, i32
  }
  func.func @transform_1(%arg0: i32, %arg1: i32, %arg2: i32) -> (i32, i32) {
    %c0_i32 = arith.constant 0 : i32
    return %arg2, %arg1 : i32, i32
  }
  func.func @transform_2(%arg0: i32, %arg1: i32, %arg2: i32) -> (i32, i32) {
    %c0_i32 = arith.constant 0 : i32
    %c0_i32_0 = arith.constant 0 : i32
    return %c0_i32, %arg1 : i32, i32
  }
  func.func @transform_3(%arg0: i32, %arg1: i32, %arg2: i32) -> (i32, i32) {
    %c0_i32 = arith.constant 0 : i32
    return %arg0, %arg1 : i32, i32
  }
}

module attributes {stable_mosaic.version = 11 : i64} {
  func.func @_transe_kernel(%arg0: i32, %arg1: memref<128x128xf32, #tpu.memory_space<vmem>>, %arg2: memref<128x128xf32, #tpu.memory_space<vmem>>, %arg3: memref<128x128xf32, #tpu.memory_space<vmem>>, %arg4: memref<1x128xf32, #tpu.memory_space<vmem>>) attributes {dimension_semantics = [#tpu.dimension_semantics<parallel>], iteration_bounds = array<i64: 1>, scalar_prefetch = 0 : i64, scratch_operands = 0 : i64, tpu.core_type = #tpu.core_type<tc>, window_params = [{transform_indices = @transform_0, window_bounds = array<i64: 128, 128>}, {transform_indices = @transform_1, window_bounds = array<i64: 128, 128>}, {transform_indices = @transform_2, window_bounds = array<i64: 128, 128>}, {transform_indices = @transform_3, window_bounds = array<i64: 1, 128>}]} {
    %c0 = arith.constant 0 : index
    %c0_0 = arith.constant 0 : index
    %0 = vector.load %arg1[%c0, %c0_0] : memref<128x128xf32, #tpu.memory_space<vmem>>, vector<128x128xf32>
    %c0_1 = arith.constant 0 : index
    %c0_2 = arith.constant 0 : index
    %1 = vector.load %arg2[%c0_1, %c0_2] : memref<128x128xf32, #tpu.memory_space<vmem>>, vector<128x128xf32>
    %c0_3 = arith.constant 0 : index
    %c0_4 = arith.constant 0 : index
    %2 = vector.load %arg3[%c0_3, %c0_4] : memref<128x128xf32, #tpu.memory_space<vmem>>, vector<128x128xf32>
    %3 = arith.mulf %0, %1 : vector<128x128xf32>
    %4 = arith.subf %3, %2 : vector<128x128xf32>
    %5 = math.absf %4 : vector<128x128xf32>
    %cst = arith.constant dense<0.000000e+00> : vector<128xf32>
    %6 = vector.multi_reduction <add>, %5, %cst [0] : vector<128x128xf32> to vector<128xf32>
    %7 = vector.shape_cast %6 : vector<128xf32> to vector<1x128xf32>
    %c0_5 = arith.constant 0 : index
    %c0_6 = arith.constant 0 : index
    %8 = vector.load %arg4[%c0_5, %c0_6] : memref<1x128xf32, #tpu.memory_space<vmem>>, vector<1x128xf32>
    tpu.vector_store %arg4[%c0_5, %c0_6], %7 {strides = array<i32>} : memref<1x128xf32, #tpu.memory_space<vmem>>, vector<1x128xf32>,
    return
  }
  func.func @transform_0(%arg0: i32) -> (i32, i32) {
    %c0_i32 = arith.constant 0 : i32
    %c0_i32_0 = arith.constant 0 : i32
    return %c0_i32, %arg0 : i32, i32
  }
  func.func @transform_1(%arg0: i32) -> (i32, i32) {
    %c0_i32 = arith.constant 0 : i32
    %c0_i32_0 = arith.constant 0 : i32
    return %c0_i32, %arg0 : i32, i32
  }
  func.func @transform_2(%arg0: i32) -> (i32, i32) {
    %c0_i32 = arith.constant 0 : i32
    %c0_i32_0 = arith.constant 0 : i32
    return %c0_i32, %arg0 : i32, i32
  }
  func.func @transform_3(%arg0: i32) -> (i32, i32) {
    %c0_i32 = arith.constant 0 : i32
    %c0_i32_0 = arith.constant 0 : i32
    return %c0_i32, %arg0 : i32, i32
  }
}

module attributes {stable_mosaic.version = 11 : i64} {
  func.func @_attn_pool_kernel(%arg0: i32, %arg1: memref<2x64x128xbf16, #tpu.memory_space<vmem>>, %arg2: memref<2x1x128xbf16, #tpu.memory_space<vmem>>, %arg3: memref<2x1x128xf32, #tpu.memory_space<vmem>>) attributes {dimension_semantics = [#tpu.dimension_semantics<parallel>], iteration_bounds = array<i64: 1>, scalar_prefetch = 0 : i64, scratch_operands = 0 : i64, tpu.core_type = #tpu.core_type<tc>, window_params = [{transform_indices = @transform_0, window_bounds = array<i64: 2, 64, 128>}, {transform_indices = @transform_1, window_bounds = array<i64: 2, 1, 128>}, {transform_indices = @transform_2, window_bounds = array<i64: 2, 1, 128>}]} {
    %c0 = arith.constant 0 : index
    %c0_0 = arith.constant 0 : index
    %c0_1 = arith.constant 0 : index
    %0 = vector.load %arg1[%c0, %c0_0, %c0_1] : memref<2x64x128xbf16, #tpu.memory_space<vmem>>, vector<2x64x128xbf16>
    %c0_2 = arith.constant 0 : index
    %c0_3 = arith.constant 0 : index
    %c0_4 = arith.constant 0 : index
    %1 = vector.load %arg2[%c0_2, %c0_3, %c0_4] : memref<2x1x128xbf16, #tpu.memory_space<vmem>>, vector<2x1x128xbf16>
    "tpu.trace_start"() <{level = 10 : i32, message = "bkd,bnd->bkn"}> : () -> ()
    %cst = arith.constant dense<0.000000e+00> : vector<2x1x64xf32>
    %2 = tpu.matmul %1, %0, %cst {dimension_numbers = #tpu.dot_dimension_numbers<[2], [2], [1], [1], [0, 0, 0, 1, 1, 1], [0], [0]>} : vector<2x1x128xbf16>, vector<2x64x128xbf16>, vector<2x1x64xf32> -> vector<2x1x64xf32>
    "tpu.trace_stop"() : () -> ()
    %3 = math.tanh %2 : vector<2x1x64xf32>
    %cst_5 = arith.constant 0.0883883461 : f32
    %4 = vector.broadcast %cst_5 : f32 to vector<2x1x64xf32>
    %5 = arith.mulf %3, %4 : vector<2x1x64xf32>
    %cst_6 = arith.constant dense<0xFF800000> : vector<2x1xf32>
    %6 = vector.multi_reduction <maximumf>, %5, %cst_6 [2] : vector<2x1x64xf32> to vector<2x1xf32>
    %7 = vector.shape_cast %6 : vector<2x1xf32> to vector<2x1x1xf32>
    %8 = vector.broadcast %7 : vector<2x1x1xf32> to vector<2x1x64xf32>
    %9 = arith.subf %5, %8 : vector<2x1x64xf32>
    %10 = math.exp %9 : vector<2x1x64xf32>
    %cst_7 = arith.constant dense<0.000000e+00> : vector<2x1xf32>
    %11 = vector.multi_reduction <add>, %10, %cst_7 [2] : vector<2x1x64xf32> to vector<2x1xf32>
    %12 = vector.shape_cast %11 : vector<2x1xf32> to vector<2x1x1xf32>
    %13 = tpu.reciprocal %12 {approx = true} : vector<2x1x1xf32> -> vector<2x1x1xf32>
    %14 = vector.broadcast %13 : vector<2x1x1xf32> to vector<2x1x64xf32>
    %15 = arith.mulf %10, %14 : vector<2x1x64xf32>
    %16 = arith.truncf %15 : vector<2x1x64xf32> to vector<2x1x64xbf16>
    "tpu.trace_start"() <{level = 10 : i32, message = "bkn,bnd->bkd"}> : () -> ()
    %cst_8 = arith.constant dense<0.000000e+00> : vector<2x1x128xf32>
    %17 = tpu.matmul %16, %0, %cst_8 {dimension_numbers = #tpu.dot_dimension_numbers<[2], [1], [1], [2], [0, 0, 0, 1, 1, 2], [0], [0]>} : vector<2x1x64xbf16>, vector<2x64x128xbf16>, vector<2x1x128xf32> -> vector<2x1x128xf32>
    "tpu.trace_stop"() : () -> ()
    %c0_9 = arith.constant 0 : index
    %c0_10 = arith.constant 0 : index
    %c0_11 = arith.constant 0 : index
    %18 = vector.load %arg3[%c0_9, %c0_10, %c0_11] : memref<2x1x128xf32, #tpu.memory_space<vmem>>, vector<2x1x128xf32>
    tpu.vector_store %arg3[%c0_9, %c0_10, %c0_11], %17 {strides = array<i32>} : memref<2x1x128xf32, #tpu.memory_space<vmem>>, vector<2x1x128xf32>,
    return
  }
  func.func @transform_0(%arg0: i32) -> (i32, i32, i32) {
    %c0_i32 = arith.constant 0 : i32
    %c0_i32_0 = arith.constant 0 : i32
    %c0_i32_1 = arith.constant 0 : i32
    return %arg0, %c0_i32, %c0_i32_0 : i32, i32, i32
  }
  func.func @transform_1(%arg0: i32) -> (i32, i32, i32) {
    %c0_i32 = arith.constant 0 : i32
    %c0_i32_0 = arith.constant 0 : i32
    %c0_i32_1 = arith.constant 0 : i32
    return %arg0, %c0_i32, %c0_i32_0 : i32, i32, i32
  }
  func.func @transform_2(%arg0: i32) -> (i32, i32, i32) {
    %c0_i32 = arith.constant 0 : i32
    %c0_i32_0 = arith.constant 0 : i32
    %c0_i32_1 = arith.constant 0 : i32
    return %arg0, %c0_i32, %c0_i32_0 : i32, i32, i32
  }
}

module attributes {stable_mosaic.version = 11 : i64} {
  func.func @_attn_pool_kernel(%arg0: i32, %arg1: memref<2x32x128xbf16, #tpu.memory_space<vmem>>, %arg2: memref<2x1x128xbf16, #tpu.memory_space<vmem>>, %arg3: memref<2x1x128xf32, #tpu.memory_space<vmem>>) attributes {dimension_semantics = [#tpu.dimension_semantics<parallel>], iteration_bounds = array<i64: 1>, scalar_prefetch = 0 : i64, scratch_operands = 0 : i64, tpu.core_type = #tpu.core_type<tc>, window_params = [{transform_indices = @transform_0, window_bounds = array<i64: 2, 32, 128>}, {transform_indices = @transform_1, window_bounds = array<i64: 2, 1, 128>}, {transform_indices = @transform_2, window_bounds = array<i64: 2, 1, 128>}]} {
    %c0 = arith.constant 0 : index
    %c0_0 = arith.constant 0 : index
    %c0_1 = arith.constant 0 : index
    %0 = vector.load %arg1[%c0, %c0_0, %c0_1] : memref<2x32x128xbf16, #tpu.memory_space<vmem>>, vector<2x32x128xbf16>
    %c0_2 = arith.constant 0 : index
    %c0_3 = arith.constant 0 : index
    %c0_4 = arith.constant 0 : index
    %1 = vector.load %arg2[%c0_2, %c0_3, %c0_4] : memref<2x1x128xbf16, #tpu.memory_space<vmem>>, vector<2x1x128xbf16>
    "tpu.trace_start"() <{level = 10 : i32, message = "bkd,bnd->bkn"}> : () -> ()
    %cst = arith.constant dense<0.000000e+00> : vector<2x1x32xf32>
    %2 = tpu.matmul %1, %0, %cst {dimension_numbers = #tpu.dot_dimension_numbers<[2], [2], [1], [1], [0, 0, 0, 1, 1, 1], [0], [0]>} : vector<2x1x128xbf16>, vector<2x32x128xbf16>, vector<2x1x32xf32> -> vector<2x1x32xf32>
    "tpu.trace_stop"() : () -> ()
    %3 = math.tanh %2 : vector<2x1x32xf32>
    %cst_5 = arith.constant 0.0883883461 : f32
    %4 = vector.broadcast %cst_5 : f32 to vector<2x1x32xf32>
    %5 = arith.mulf %3, %4 : vector<2x1x32xf32>
    %cst_6 = arith.constant dense<0xFF800000> : vector<2x1xf32>
    %6 = vector.multi_reduction <maximumf>, %5, %cst_6 [2] : vector<2x1x32xf32> to vector<2x1xf32>
    %7 = vector.shape_cast %6 : vector<2x1xf32> to vector<2x1x1xf32>
    %8 = vector.broadcast %7 : vector<2x1x1xf32> to vector<2x1x32xf32>
    %9 = arith.subf %5, %8 : vector<2x1x32xf32>
    %10 = math.exp %9 : vector<2x1x32xf32>
    %cst_7 = arith.constant dense<0.000000e+00> : vector<2x1xf32>
    %11 = vector.multi_reduction <add>, %10, %cst_7 [2] : vector<2x1x32xf32> to vector<2x1xf32>
    %12 = vector.shape_cast %11 : vector<2x1xf32> to vector<2x1x1xf32>
    %13 = tpu.reciprocal %12 {approx = true} : vector<2x1x1xf32> -> vector<2x1x1xf32>
    %14 = vector.broadcast %13 : vector<2x1x1xf32> to vector<2x1x32xf32>
    %15 = arith.mulf %10, %14 : vector<2x1x32xf32>
    %16 = arith.truncf %15 : vector<2x1x32xf32> to vector<2x1x32xbf16>
    "tpu.trace_start"() <{level = 10 : i32, message = "bkn,bnd->bkd"}> : () -> ()
    %cst_8 = arith.constant dense<0.000000e+00> : vector<2x1x128xf32>
    %17 = tpu.matmul %16, %0, %cst_8 {dimension_numbers = #tpu.dot_dimension_numbers<[2], [1], [1], [2], [0, 0, 0, 1, 1, 2], [0], [0]>} : vector<2x1x32xbf16>, vector<2x32x128xbf16>, vector<2x1x128xf32> -> vector<2x1x128xf32>
    "tpu.trace_stop"() : () -> ()
    %c0_9 = arith.constant 0 : index
    %c0_10 = arith.constant 0 : index
    %c0_11 = arith.constant 0 : index
    %18 = vector.load %arg3[%c0_9, %c0_10, %c0_11] : memref<2x1x128xf32, #tpu.memory_space<vmem>>, vector<2x1x128xf32>
    tpu.vector_store %arg3[%c0_9, %c0_10, %c0_11], %17 {strides = array<i32>} : memref<2x1x128xf32, #tpu.memory_space<vmem>>, vector<2x1x128xf32>,
    return
  }
  func.func @transform_0(%arg0: i32) -> (i32, i32, i32) {
    %c0_i32 = arith.constant 0 : i32
    %c0_i32_0 = arith.constant 0 : i32
    %c0_i32_1 = arith.constant 0 : i32
    return %arg0, %c0_i32, %c0_i32_0 : i32, i32, i32
  }
  func.func @transform_1(%arg0: i32) -> (i32, i32, i32) {
    %c0_i32 = arith.constant 0 : i32
    %c0_i32_0 = arith.constant 0 : i32
    %c0_i32_1 = arith.constant 0 : i32
    return %arg0, %c0_i32, %c0_i32_0 : i32, i32, i32
  }
  func.func @transform_2(%arg0: i32) -> (i32, i32, i32) {
    %c0_i32 = arith.constant 0 : i32
    %c0_i32_0 = arith.constant 0 : i32
    %c0_i32_1 = arith.constant 0 : i32
    return %arg0, %c0_i32, %c0_i32_0 : i32, i32, i32
  }
}

module attributes {stable_mosaic.version = 11 : i64} {
  func.func @_linear_relu_bn_kernel(%arg0: memref<2x256xbf16, #tpu.memory_space<vmem>>, %arg1: memref<256x512xbf16, #tpu.memory_space<vmem>>, %arg2: memref<1x512xf32, #tpu.memory_space<vmem>>, %arg3: memref<1x512xf32, #tpu.memory_space<vmem>>, %arg4: memref<1x512xf32, #tpu.memory_space<vmem>>, %arg5: memref<2x512xf32, #tpu.memory_space<vmem>>) attributes {dimension_semantics = [], scalar_prefetch = 0 : i64, scratch_operands = 0 : i64, tpu.core_type = #tpu.core_type<tc>} {
    %c0 = arith.constant 0 : index
    %c0_0 = arith.constant 0 : index
    %0 = vector.load %arg0[%c0, %c0_0] : memref<2x256xbf16, #tpu.memory_space<vmem>>, vector<2x256xbf16>
    %c0_1 = arith.constant 0 : index
    %c0_2 = arith.constant 0 : index
    %1 = vector.load %arg1[%c0_1, %c0_2] : memref<256x512xbf16, #tpu.memory_space<vmem>>, vector<256x512xbf16>
    %cst = arith.constant dense<0.000000e+00> : vector<2x512xf32>
    %2 = tpu.matmul %0, %1, %cst {dimension_numbers = #tpu.dot_dimension_numbers<[1], [0], [0], [1], [0, 0, 1, 1], [], []>} : vector<2x256xbf16>, vector<256x512xbf16>, vector<2x512xf32> -> vector<2x512xf32>
    %c0_3 = arith.constant 0 : index
    %c0_4 = arith.constant 0 : index
    %3 = vector.load %arg2[%c0_3, %c0_4] : memref<1x512xf32, #tpu.memory_space<vmem>>, vector<1x512xf32>
    %4 = vector.broadcast %3 : vector<1x512xf32> to vector<2x512xf32>
    %5 = arith.addf %2, %4 : vector<2x512xf32>
    %cst_5 = arith.constant 0.000000e+00 : f32
    %6 = vector.broadcast %cst_5 : f32 to vector<2x512xf32>
    %7 = arith.maximumf %5, %6 : vector<2x512xf32>
    %cst_6 = arith.constant dense<0.000000e+00> : vector<512xf32>
    %8 = vector.multi_reduction <add>, %7, %cst_6 [0] : vector<2x512xf32> to vector<512xf32>
    %9 = vector.shape_cast %8 : vector<512xf32> to vector<1x512xf32>
    %cst_7 = arith.constant 2.000000e+00 : f32
    %10 = vector.broadcast %cst_7 : f32 to vector<1x512xf32>
    %11 = arith.divf %9, %10 : vector<1x512xf32>
    %12 = vector.broadcast %11 : vector<1x512xf32> to vector<2x512xf32>
    %13 = arith.subf %7, %12 : vector<2x512xf32>
    %14 = arith.mulf %13, %13 : vector<2x512xf32>
    %cst_8 = arith.constant dense<0.000000e+00> : vector<512xf32>
    %15 = vector.multi_reduction <add>, %14, %cst_8 [0] : vector<2x512xf32> to vector<512xf32>
    %16 = vector.shape_cast %15 : vector<512xf32> to vector<1x512xf32>
    %cst_9 = arith.constant 2.000000e+00 : f32
    %17 = vector.broadcast %cst_9 : f32 to vector<1x512xf32>
    %18 = arith.divf %16, %17 : vector<1x512xf32>
    %c0_10 = arith.constant 0 : index
    %c0_11 = arith.constant 0 : index
    %19 = vector.load %arg3[%c0_10, %c0_11] : memref<1x512xf32, #tpu.memory_space<vmem>>, vector<1x512xf32>
    %20 = vector.broadcast %11 : vector<1x512xf32> to vector<2x512xf32>
    %21 = arith.subf %7, %20 : vector<2x512xf32>
    %22 = vector.broadcast %19 : vector<1x512xf32> to vector<2x512xf32>
    %23 = arith.mulf %22, %21 : vector<2x512xf32>
    %cst_12 = arith.constant 9.99999974E-6 : f32
    %24 = vector.broadcast %cst_12 : f32 to vector<1x512xf32>
    %25 = arith.addf %18, %24 : vector<1x512xf32>
    %26 = math.rsqrt %25 : vector<1x512xf32>
    %27 = vector.broadcast %26 : vector<1x512xf32> to vector<2x512xf32>
    %28 = arith.mulf %23, %27 : vector<2x512xf32>
    %c0_13 = arith.constant 0 : index
    %c0_14 = arith.constant 0 : index
    %29 = vector.load %arg4[%c0_13, %c0_14] : memref<1x512xf32, #tpu.memory_space<vmem>>, vector<1x512xf32>
    %30 = vector.broadcast %29 : vector<1x512xf32> to vector<2x512xf32>
    %31 = arith.addf %28, %30 : vector<2x512xf32>
    %c0_15 = arith.constant 0 : index
    %c0_16 = arith.constant 0 : index
    %32 = vector.load %arg5[%c0_15, %c0_16] : memref<2x512xf32, #tpu.memory_space<vmem>>, vector<2x512xf32>
    tpu.vector_store %arg5[%c0_15, %c0_16], %31 {strides = array<i32>} : memref<2x512xf32, #tpu.memory_space<vmem>>, vector<2x512xf32>,
    return
  }
}

module attributes {stable_mosaic.version = 11 : i64} {
  func.func @_linear_relu_bn_kernel(%arg0: memref<2x512xbf16, #tpu.memory_space<vmem>>, %arg1: memref<512x512xbf16, #tpu.memory_space<vmem>>, %arg2: memref<1x512xf32, #tpu.memory_space<vmem>>, %arg3: memref<1x512xf32, #tpu.memory_space<vmem>>, %arg4: memref<1x512xf32, #tpu.memory_space<vmem>>, %arg5: memref<2x512xf32, #tpu.memory_space<vmem>>) attributes {dimension_semantics = [], scalar_prefetch = 0 : i64, scratch_operands = 0 : i64, tpu.core_type = #tpu.core_type<tc>} {
    %c0 = arith.constant 0 : index
    %c0_0 = arith.constant 0 : index
    %0 = vector.load %arg0[%c0, %c0_0] : memref<2x512xbf16, #tpu.memory_space<vmem>>, vector<2x512xbf16>
    %c0_1 = arith.constant 0 : index
    %c0_2 = arith.constant 0 : index
    %1 = vector.load %arg1[%c0_1, %c0_2] : memref<512x512xbf16, #tpu.memory_space<vmem>>, vector<512x512xbf16>
    %cst = arith.constant dense<0.000000e+00> : vector<2x512xf32>
    %2 = tpu.matmul %0, %1, %cst {dimension_numbers = #tpu.dot_dimension_numbers<[1], [0], [0], [1], [0, 0, 1, 1], [], []>} : vector<2x512xbf16>, vector<512x512xbf16>, vector<2x512xf32> -> vector<2x512xf32>
    %c0_3 = arith.constant 0 : index
    %c0_4 = arith.constant 0 : index
    %3 = vector.load %arg2[%c0_3, %c0_4] : memref<1x512xf32, #tpu.memory_space<vmem>>, vector<1x512xf32>
    %4 = vector.broadcast %3 : vector<1x512xf32> to vector<2x512xf32>
    %5 = arith.addf %2, %4 : vector<2x512xf32>
    %cst_5 = arith.constant 0.000000e+00 : f32
    %6 = vector.broadcast %cst_5 : f32 to vector<2x512xf32>
    %7 = arith.maximumf %5, %6 : vector<2x512xf32>
    %cst_6 = arith.constant dense<0.000000e+00> : vector<512xf32>
    %8 = vector.multi_reduction <add>, %7, %cst_6 [0] : vector<2x512xf32> to vector<512xf32>
    %9 = vector.shape_cast %8 : vector<512xf32> to vector<1x512xf32>
    %cst_7 = arith.constant 2.000000e+00 : f32
    %10 = vector.broadcast %cst_7 : f32 to vector<1x512xf32>
    %11 = arith.divf %9, %10 : vector<1x512xf32>
    %12 = vector.broadcast %11 : vector<1x512xf32> to vector<2x512xf32>
    %13 = arith.subf %7, %12 : vector<2x512xf32>
    %14 = arith.mulf %13, %13 : vector<2x512xf32>
    %cst_8 = arith.constant dense<0.000000e+00> : vector<512xf32>
    %15 = vector.multi_reduction <add>, %14, %cst_8 [0] : vector<2x512xf32> to vector<512xf32>
    %16 = vector.shape_cast %15 : vector<512xf32> to vector<1x512xf32>
    %cst_9 = arith.constant 2.000000e+00 : f32
    %17 = vector.broadcast %cst_9 : f32 to vector<1x512xf32>
    %18 = arith.divf %16, %17 : vector<1x512xf32>
    %c0_10 = arith.constant 0 : index
    %c0_11 = arith.constant 0 : index
    %19 = vector.load %arg3[%c0_10, %c0_11] : memref<1x512xf32, #tpu.memory_space<vmem>>, vector<1x512xf32>
    %20 = vector.broadcast %11 : vector<1x512xf32> to vector<2x512xf32>
    %21 = arith.subf %7, %20 : vector<2x512xf32>
    %22 = vector.broadcast %19 : vector<1x512xf32> to vector<2x512xf32>
    %23 = arith.mulf %22, %21 : vector<2x512xf32>
    %cst_12 = arith.constant 9.99999974E-6 : f32
    %24 = vector.broadcast %cst_12 : f32 to vector<1x512xf32>
    %25 = arith.addf %18, %24 : vector<1x512xf32>
    %26 = math.rsqrt %25 : vector<1x512xf32>
    %27 = vector.broadcast %26 : vector<1x512xf32> to vector<2x512xf32>
    %28 = arith.mulf %23, %27 : vector<2x512xf32>
    %c0_13 = arith.constant 0 : index
    %c0_14 = arith.constant 0 : index
    %29 = vector.load %arg4[%c0_13, %c0_14] : memref<1x512xf32, #tpu.memory_space<vmem>>, vector<1x512xf32>
    %30 = vector.broadcast %29 : vector<1x512xf32> to vector<2x512xf32>
    %31 = arith.addf %28, %30 : vector<2x512xf32>
    %c0_15 = arith.constant 0 : index
    %c0_16 = arith.constant 0 : index
    %32 = vector.load %arg5[%c0_15, %c0_16] : memref<2x512xf32, #tpu.memory_space<vmem>>, vector<2x512xf32>
    tpu.vector_store %arg5[%c0_15, %c0_16], %31 {strides = array<i32>} : memref<2x512xf32, #tpu.memory_space<vmem>>, vector<2x512xf32>,
    return
  }
}

module attributes {stable_mosaic.version = 11 : i64} {
  func.func @_linear_relu_bn_kernel(%arg0: memref<2x512xbf16, #tpu.memory_space<vmem>>, %arg1: memref<512x128xbf16, #tpu.memory_space<vmem>>, %arg2: memref<1x128xf32, #tpu.memory_space<vmem>>, %arg3: memref<1x128xf32, #tpu.memory_space<vmem>>, %arg4: memref<1x128xf32, #tpu.memory_space<vmem>>, %arg5: memref<2x128xf32, #tpu.memory_space<vmem>>) attributes {dimension_semantics = [], scalar_prefetch = 0 : i64, scratch_operands = 0 : i64, tpu.core_type = #tpu.core_type<tc>} {
    %c0 = arith.constant 0 : index
    %c0_0 = arith.constant 0 : index
    %0 = vector.load %arg0[%c0, %c0_0] : memref<2x512xbf16, #tpu.memory_space<vmem>>, vector<2x512xbf16>
    %c0_1 = arith.constant 0 : index
    %c0_2 = arith.constant 0 : index
    %1 = vector.load %arg1[%c0_1, %c0_2] : memref<512x128xbf16, #tpu.memory_space<vmem>>, vector<512x128xbf16>
    %cst = arith.constant dense<0.000000e+00> : vector<2x128xf32>
    %2 = tpu.matmul %0, %1, %cst {dimension_numbers = #tpu.dot_dimension_numbers<[1], [0], [0], [1], [0, 0, 1, 1], [], []>} : vector<2x512xbf16>, vector<512x128xbf16>, vector<2x128xf32> -> vector<2x128xf32>
    %c0_3 = arith.constant 0 : index
    %c0_4 = arith.constant 0 : index
    %3 = vector.load %arg2[%c0_3, %c0_4] : memref<1x128xf32, #tpu.memory_space<vmem>>, vector<1x128xf32>
    %4 = vector.broadcast %3 : vector<1x128xf32> to vector<2x128xf32>
    %5 = arith.addf %2, %4 : vector<2x128xf32>
    %cst_5 = arith.constant 0.000000e+00 : f32
    %6 = vector.broadcast %cst_5 : f32 to vector<2x128xf32>
    %7 = arith.maximumf %5, %6 : vector<2x128xf32>
    %cst_6 = arith.constant dense<0.000000e+00> : vector<128xf32>
    %8 = vector.multi_reduction <add>, %7, %cst_6 [0] : vector<2x128xf32> to vector<128xf32>
    %9 = vector.shape_cast %8 : vector<128xf32> to vector<1x128xf32>
    %cst_7 = arith.constant 2.000000e+00 : f32
    %10 = vector.broadcast %cst_7 : f32 to vector<1x128xf32>
    %11 = arith.divf %9, %10 : vector<1x128xf32>
    %12 = vector.broadcast %11 : vector<1x128xf32> to vector<2x128xf32>
    %13 = arith.subf %7, %12 : vector<2x128xf32>
    %14 = arith.mulf %13, %13 : vector<2x128xf32>
    %cst_8 = arith.constant dense<0.000000e+00> : vector<128xf32>
    %15 = vector.multi_reduction <add>, %14, %cst_8 [0] : vector<2x128xf32> to vector<128xf32>
    %16 = vector.shape_cast %15 : vector<128xf32> to vector<1x128xf32>
    %cst_9 = arith.constant 2.000000e+00 : f32
    %17 = vector.broadcast %cst_9 : f32 to vector<1x128xf32>
    %18 = arith.divf %16, %17 : vector<1x128xf32>
    %c0_10 = arith.constant 0 : index
    %c0_11 = arith.constant 0 : index
    %19 = vector.load %arg3[%c0_10, %c0_11] : memref<1x128xf32, #tpu.memory_space<vmem>>, vector<1x128xf32>
    %20 = vector.broadcast %11 : vector<1x128xf32> to vector<2x128xf32>
    %21 = arith.subf %7, %20 : vector<2x128xf32>
    %22 = vector.broadcast %19 : vector<1x128xf32> to vector<2x128xf32>
    %23 = arith.mulf %22, %21 : vector<2x128xf32>
    %cst_12 = arith.constant 9.99999974E-6 : f32
    %24 = vector.broadcast %cst_12 : f32 to vector<1x128xf32>
    %25 = arith.addf %18, %24 : vector<1x128xf32>
    %26 = math.rsqrt %25 : vector<1x128xf32>
    %27 = vector.broadcast %26 : vector<1x128xf32> to vector<2x128xf32>
    %28 = arith.mulf %23, %27 : vector<2x128xf32>
    %c0_13 = arith.constant 0 : index
    %c0_14 = arith.constant 0 : index
    %29 = vector.load %arg4[%c0_13, %c0_14] : memref<1x128xf32, #tpu.memory_space<vmem>>, vector<1x128xf32>
    %30 = vector.broadcast %29 : vector<1x128xf32> to vector<2x128xf32>
    %31 = arith.addf %28, %30 : vector<2x128xf32>
    %c0_15 = arith.constant 0 : index
    %c0_16 = arith.constant 0 : index
    %32 = vector.load %arg5[%c0_15, %c0_16] : memref<2x128xf32, #tpu.memory_space<vmem>>, vector<2x128xf32>
    tpu.vector_store %arg5[%c0_15, %c0_16], %31 {strides = array<i32>} : memref<2x128xf32, #tpu.memory_space<vmem>>, vector<2x128xf32>,
    return
  }
}

module attributes {stable_mosaic.version = 11 : i64} {
  func.func @_linear_kernel(%arg0: i32, %arg1: i32, %arg2: i32, %arg3: memref<2x128xbf16, #tpu.memory_space<vmem>>, %arg4: memref<128x128xbf16, #tpu.memory_space<vmem>>, %arg5: memref<1x128xf32, #tpu.memory_space<vmem>>, %arg6: memref<2x128xf32, #tpu.memory_space<vmem>>, %arg7: memref<2x128xf32, #tpu.memory_space<vmem>>) attributes {dimension_semantics = [#tpu.dimension_semantics<parallel>, #tpu.dimension_semantics<parallel>, #tpu.dimension_semantics<arbitrary>], iteration_bounds = array<i64: 1, 1, 1>, scalar_prefetch = 0 : i64, scratch_operands = 1 : i64, tpu.core_type = #tpu.core_type<tc>, window_params = [{transform_indices = @transform_0, window_bounds = array<i64: 2, 128>}, {transform_indices = @transform_1, window_bounds = array<i64: 128, 128>}, {transform_indices = @transform_2, window_bounds = array<i64: 1, 128>}, {transform_indices = @transform_3, window_bounds = array<i64: 2, 128>}]} {
    %c0_i32 = arith.constant 0 : i32
    %0 = arith.cmpi eq, %arg2, %c0_i32 : i32
    %1 = arith.extui %0 : i1 to i32
    %c0_i32_0 = arith.constant 0 : i32
    %2 = arith.cmpi ne, %1, %c0_i32_0 : i32
    scf.if %2 {
      %cst_10 = arith.constant 0.000000e+00 : f32
      %12 = vector.broadcast %cst_10 : f32 to vector<2x128xf32>
      %c0_11 = arith.constant 0 : index
      %c0_12 = arith.constant 0 : index
      %13 = vector.load %arg7[%c0_11, %c0_12] : memref<2x128xf32, #tpu.memory_space<vmem>>, vector<2x128xf32>
      tpu.vector_store %arg7[%c0_11, %c0_12], %12 {strides = array<i32>} : memref<2x128xf32, #tpu.memory_space<vmem>>, vector<2x128xf32>,
    } else {
    }
    %c0 = arith.constant 0 : index
    %c0_1 = arith.constant 0 : index
    %3 = vector.load %arg7[%c0, %c0_1] : memref<2x128xf32, #tpu.memory_space<vmem>>, vector<2x128xf32>
    %c0_2 = arith.constant 0 : index
    %c0_3 = arith.constant 0 : index
    %4 = vector.load %arg3[%c0_2, %c0_3] : memref<2x128xbf16, #tpu.memory_space<vmem>>, vector<2x128xbf16>
    %c0_4 = arith.constant 0 : index
    %c0_5 = arith.constant 0 : index
    %5 = vector.load %arg4[%c0_4, %c0_5] : memref<128x128xbf16, #tpu.memory_space<vmem>>, vector<128x128xbf16>
    %cst = arith.constant dense<0.000000e+00> : vector<2x128xf32>
    %6 = tpu.matmul %4, %5, %cst {dimension_numbers = #tpu.dot_dimension_numbers<[1], [0], [0], [1], [0, 0, 1, 1], [], []>} : vector<2x128xbf16>, vector<128x128xbf16>, vector<2x128xf32> -> vector<2x128xf32>
    %7 = arith.addf %3, %6 : vector<2x128xf32>
    %c0_6 = arith.constant 0 : index
    %c0_7 = arith.constant 0 : index
    %8 = vector.load %arg7[%c0_6, %c0_7] : memref<2x128xf32, #tpu.memory_space<vmem>>, vector<2x128xf32>
    tpu.vector_store %arg7[%c0_6, %c0_7], %7 {strides = array<i32>} : memref<2x128xf32, #tpu.memory_space<vmem>>, vector<2x128xf32>,
    %c0_i32_8 = arith.constant 0 : i32
    %9 = arith.cmpi eq, %arg2, %c0_i32_8 : i32
    %10 = arith.extui %9 : i1 to i32
    %c0_i32_9 = arith.constant 0 : i32
    %11 = arith.cmpi ne, %10, %c0_i32_9 : i32
    scf.if %11 {
      %c0_10 = arith.constant 0 : index
      %c0_11 = arith.constant 0 : index
      %12 = vector.load %arg7[%c0_10, %c0_11] : memref<2x128xf32, #tpu.memory_space<vmem>>, vector<2x128xf32>
      %c0_12 = arith.constant 0 : index
      %c0_13 = arith.constant 0 : index
      %13 = vector.load %arg5[%c0_12, %c0_13] : memref<1x128xf32, #tpu.memory_space<vmem>>, vector<1x128xf32>
      %14 = vector.broadcast %13 : vector<1x128xf32> to vector<2x128xf32>
      %15 = arith.addf %12, %14 : vector<2x128xf32>
      %c0_14 = arith.constant 0 : index
      %c0_15 = arith.constant 0 : index
      %16 = vector.load %arg6[%c0_14, %c0_15] : memref<2x128xf32, #tpu.memory_space<vmem>>, vector<2x128xf32>
      tpu.vector_store %arg6[%c0_14, %c0_15], %15 {strides = array<i32>} : memref<2x128xf32, #tpu.memory_space<vmem>>, vector<2x128xf32>,
    } else {
    }
    return
  }
  func.func @transform_0(%arg0: i32, %arg1: i32, %arg2: i32) -> (i32, i32) {
    %c0_i32 = arith.constant 0 : i32
    return %arg0, %arg2 : i32, i32
  }
  func.func @transform_1(%arg0: i32, %arg1: i32, %arg2: i32) -> (i32, i32) {
    %c0_i32 = arith.constant 0 : i32
    return %arg2, %arg1 : i32, i32
  }
  func.func @transform_2(%arg0: i32, %arg1: i32, %arg2: i32) -> (i32, i32) {
    %c0_i32 = arith.constant 0 : i32
    %c0_i32_0 = arith.constant 0 : i32
    return %c0_i32, %arg1 : i32, i32
  }
  func.func @transform_3(%arg0: i32, %arg1: i32, %arg2: i32) -> (i32, i32) {
    %c0_i32 = arith.constant 0 : i32
    return %arg0, %arg1 : i32, i32
  }
}

</mosaic_0001>

<bundles_post_ra>
// kernel: kepla_forward.20
= control target key start
LH: loop header
LB: loop body
LE: loop exit
PB: predicated region body
PF: predicated region fallthrough
CT: control target
= control target key end

     0   :  { %vm50_vm0 = vcmask 261120   ;;  %s302_s1 = inlined_call_operand.vmem [shape: bf16[2,32,128], index: 1, kind: input, shape index: {}]   ;;  %s303_s0 = inlined_call_operand.vmem [shape: bf16[2,32,32], index: 0, kind: input, shape index: {}]   ;;  %s304_s2 = inlined_call_operand.vmem [shape: f32[2,32,128], index: 2, kind: output, shape index: {}]  }
   0x1   :  { %v231_v0 = vld [vmem:[%s302_s1 + $0x8] sm:$0xff]   ;;  %v232_v1 = vld [vmem:[%s302_s1 + $0x18] sm:$0xff]   ;;  %v233_v2 = vld [vmem:[%s302_s1] sm:$0xff]  }
   0x2   :  { %215 = vmatprep.subr.bf16.mxu0 %v231_v0  ;;  %223 = vmatprep.subr.bf16.mxu1 %v232_v1  ;;  %v234_v3 = vld [vmem:[%s302_s1 + $0x10] sm:$0xff]   ;;  %v235_v4 = vld [vmem:[%s303_s0] sm:$0xff]   ;;  %v237_v6 = vld [vmem:[%s303_s0 + $0x8] sm:$0xff]  }
   0x3   :  { %216 = vmatpush3.bf16.msra.mxu0 %v231_v0  ;;  %224 = vmatpush3.bf16.msra.mxu1 %v232_v1  ;;  %v236_v5 = vld [vmem:[%s303_s0 + $0x10] sm:$0xff]   ;;  %v238_v7 = vld [vmem:[%s303_s0 + $0x18] sm:$0xff]  }
   0x4   :  { %217 = vmatprep.subr.bf16.mxu0 %v233_v2  ;;  %225 = vmatprep.subr.bf16.mxu1 %v234_v3 }
   0x5   :  { %219 = vmatprep.mubr.msk.bf16.mxu0 %vm50_vm0, %v235_v4  ;;  %227 = vmatprep.mubr.msk.bf16.mxu1 %vm50_vm0, %v236_v5 }
   0x7   :  { %218 = vmatpush3.bf16.msra.mxu0 %v233_v2  ;;  %226 = vmatpush3.bf16.msra.mxu1 %v234_v3 }
   0xa   :  { %220 = vmatmul.mubr.msk.bf16.vlgmr.msra.gmra.mxu0 %vm50_vm0, %v237_v6  ;;  %228 = vmatmul.mubr.msk.bf16.vlgmr.msra.gmra.mxu1 %vm50_vm0, %v238_v7 }
  0xca   :  { %v221_v8 = vpop.f32.mrf.mxu0  ;;  %v229_v9 = vpop.f32.mrf.mxu1 }
  0xcb   :  { %185 = vst [vmem:[%s304_s2 + $0x10] sm:$0xff] %v221_v8  ;;  %189 = vst [vmem:[%s304_s2 + $0x30] sm:$0xff] %v229_v9 }
  0xcc   :  { %v91_v10 = vpop.f32.mrf.mxu0  ;;  %v168_v11 = vpop.f32.mrf.mxu1 }
  0xcd   :  { %183 = vst [vmem:[%s304_s2] sm:$0xff] %v91_v10  ;;  %187 = vst [vmem:[%s304_s2 + $0x20] sm:$0xff] %v168_v11 }
  0xce   :  { %v222_v12 = vpop.f32.mrf.mxu0  ;;  %v230_v13 = vpop.f32.mrf.mxu1 }
  0xcf   :  { %186 = vst [vmem:[%s304_s2 + $0x18] sm:$0xff] %v222_v12  ;;  %190 = vst [vmem:[%s304_s2 + $0x38] sm:$0xff] %v230_v13 }
  0xd0   :  { %v94_v14 = vpop.f32.mrf.mxu0  ;;  %v171_v15 = vpop.f32.mrf.mxu1 }
  0xd1   :  { %184 = vst [vmem:[%s304_s2 + $0x8] sm:$0xff] %v94_v14  ;;  %188 = vst [vmem:[%s304_s2 + $0x28] sm:$0xff] %v171_v15 }

// kernel: kepla_forward.19
= control target key start
LH: loop header
LB: loop body
LE: loop exit
PB: predicated region body
PF: predicated region fallthrough
CT: control target
= control target key end

     0   :  { %vm95_vm0 = vcmask 523264   ;;  %s355_s1 = inlined_call_operand.vmem [shape: bf16[64,128], index: 1, kind: input, shape index: {}]   ;;  %s356_s0 = inlined_call_operand.vmem [shape: bf16[64,64], index: 0, kind: input, shape index: {}]   ;;  %s357_s2 = inlined_call_operand.vmem [shape: f32[1,128], index: 2, kind: input, shape index: {}]   ;;  %s358_s3 = inlined_call_operand.vmem [shape: f32[64,128], index: 3, kind: output, shape index: {}]  }
   0x1   :  { %v272_v0 = vld [vmem:[%s355_s1 + $0x18] sm:$0xff]   ;;  %v273_v1 = vld [vmem:[%s355_s1 + $0x10] sm:$0xff]   ;;  %v274_v2 = vld [vmem:[%s355_s1 + $0x8] sm:$0xff]  }
   0x2   :  { %248 = vmatprep.subr.bf16.mxu0 %v272_v0  ;;  %264 = vmatprep.subr.bf16.mxu1 %v272_v0  ;;  %v276_v3 = vld [vmem:[%s356_s0] sm:$0xff]   ;;  %v277_v4 = vld [vmem:[%s356_s0 + $0x10] sm:$0xff]   ;;  %v278_v6 = vld [vmem:[%s356_s0 + $0x8] sm:$0xff]  }
   0x3   :  { %249 = vmatpush3.bf16.msra.mxu0 %v272_v0  ;;  %268 = vmatpush3.bf16.msra.mxu1 %v272_v0  ;;  %v275_v5 = vld [vmem:[%s355_s1] sm:$0xff]   ;;  %v279_v7 = vld [vmem:[%s356_s0 + $0x18] sm:$0xff]  }
   0x4   :  { %250 = vmatprep.subr.bf16.mxu0 %v273_v1  ;;  %265 = vmatprep.subr.bf16.mxu1 %v273_v1  ;;  %v239_v8 = vld [vmem:[%s357_s2] ss:$0 sm:$0xff] }
   0x5   :  { %256 = vmatprep.mubr.msk.bf16.mxu0 %vm95_vm0, %v276_v3  ;;  %260 = vmatprep.mubr.msk.bf16.mxu1 %vm95_vm0, %v277_v4 }
   0x7   :  { %251 = vmatpush3.bf16.msra.mxu0 %v273_v1  ;;  %269 = vmatpush3.bf16.msra.mxu1 %v273_v1 }
   0x8   :  { %252 = vmatprep.subr.bf16.mxu0 %v274_v2  ;;  %266 = vmatprep.subr.bf16.mxu1 %v274_v2 }
   0xb   :  { %253 = vmatpush3.bf16.msra.mxu0 %v274_v2  ;;  %270 = vmatpush3.bf16.msra.mxu1 %v274_v2 }
   0xc   :  { %254 = vmatprep.subr.bf16.mxu0 %v275_v5  ;;  %267 = vmatprep.subr.bf16.mxu1 %v275_v5 }
   0xf   :  { %255 = vmatpush3.bf16.msra.mxu0 %v275_v5  ;;  %271 = vmatpush3.bf16.msra.mxu1 %v275_v5 }
  0x12   :  { %257 = vmatmul.mubr.msk.bf16.vlgmr.msra.gmra.mxu0 %vm95_vm0, %v278_v6  ;;  %261 = vmatmul.mubr.msk.bf16.vlgmr.msra.gmra.mxu1 %vm95_vm0, %v279_v7 }
  0xd2   :  { %v258_v9 = vpop.f32.mrf.mxu0  ;;  %v262_v10 = vpop.f32.mrf.mxu1 }
  0xd3   :  { %v209_v11 = vadd.f32 %v258_v9, %v239_v8  ;;  %v213_v12 = vadd.f32 %v262_v10, %v239_v8 }
  0xd4   :  { %v142_v13 = vpop.f32.mrf.mxu0  ;;  %v158_v14 = vpop.f32.mrf.mxu1 }
  0xd5   :  { %217 = vst [vmem:[%s358_s3 + $0x10] sm:$0xff] %v209_v11  ;;  %221 = vst [vmem:[%s358_s3 + $0x30] sm:$0xff] %v213_v12  ;;  %v207_v15 = vadd.f32 %v239_v8, %v142_v13  ;;  %v211_v16 = vadd.f32 %v239_v8, %v158_v14 }
  0xd6   :  { %v259_v17 = vpop.f32.mrf.mxu0  ;;  %v263_v18 = vpop.f32.mrf.mxu1 }
  0xd7   :  { %215 = vst [vmem:[%s358_s3] sm:$0xff] %v207_v15  ;;  %219 = vst [vmem:[%s358_s3 + $0x20] sm:$0xff] %v211_v16  ;;  %v210_v19 = vadd.f32 %v259_v17, %v239_v8  ;;  %v214_v20 = vadd.f32 %v263_v18, %v239_v8 }
  0xd8   :  { %v145_v21 = vpop.f32.mrf.mxu0  ;;  %v161_v22 = vpop.f32.mrf.mxu1 }
  0xd9   :  { %218 = vst [vmem:[%s358_s3 + $0x18] sm:$0xff] %v210_v19  ;;  %222 = vst [vmem:[%s358_s3 + $0x38] sm:$0xff] %v214_v20  ;;  %v208_v23 = vadd.f32 %v239_v8, %v145_v21  ;;  %v212_v24 = vadd.f32 %v239_v8, %v161_v22 }
  0xdb   :  { %216 = vst [vmem:[%s358_s3 + $0x8] sm:$0xff] %v208_v23  ;;  %220 = vst [vmem:[%s358_s3 + $0x28] sm:$0xff] %v212_v24 }

// kernel: kepla_forward.34
= control target key start
LH: loop header
LB: loop body
LE: loop exit
PB: predicated region body
PF: predicated region fallthrough
CT: control target
= control target key end

     0   :  { %8 = vsyncpa [#allocation4], 0  ;;  %s229_s12 = smov [#allocation3]   ;;  %s285_s0 = inlined_call_operand.vmem [shape: bf16[2,128], index: 0, kind: input, shape index: {}]   ;;  %s286_s1 = inlined_call_operand.vmem [shape: bf16[128,128], index: 1, kind: input, shape index: {}]   ;;  %s287_s2 = inlined_call_operand.hbm [shape: f32[1,128], index: 2, kind: input, shape index: {}]   ;;  %s288_s3 = inlined_call_operand.vmem [shape: f32[2,128], index: 3, kind: output, shape index: {}]  }
   0x1   :  { %s19_s13 = sshll.u32 %s229_s12, 4  ;;  %s20_s13 = int_to_ptr.vmem [resolvable:$true] %s19_s13 }
   0x2   :  { %s215_s14 = scalar_lea.vmem %s20_s13, 16  ;;  %s219_s15 = scalar_lea.vmem %s20_s13, 32 }
   0x3   :  { %p216_p0 = scmp.ne.s32.totalorder %s20_s13, %s215_s14  ;;  %p220_p1 = scmp.lt.s32.totalorder %s20_s13, %s20_s13 }
   0x4   :  { %p221_p2 = scmp.lt.s32.totalorder %s219_s15, %s215_s14 }
   0x6   :  { %p222_p3 = por %p221_p2, %p220_p1 }
   0x8   :  { %p223_p4 = pnand %p222_p3, %p216_p0 }
   0xa   :  { %226 = shalt.err (!%p223_p4)
}
   0xb   :  { %22 = dma.hbm_to_vmem [thread:$0]  %s287_s2, 16, %s20_s13, [#allocation4]  }
   0xc   :  { %227 = dma.done.wait [#allocation4], 16  }
   0xd   :  { %228 = vsyncadd [#allocation4], 4294967280  ;;  %v230_v0 = vmov 0.0   ;;  %vm231_vm0 = vmmov 0   ;;  %v199_v1 = vld [vmem:[%s286_s1 + $0x38] sm:$0xff]   ;;  %v200_v2 = vld [vmem:[%s286_s1 + $0x30] sm:$0xff]  }
   0xe   :  { %176 = vmatprep.subr.bf16.mxu0 %v230_v0  ;;  %31 = vst [vmem:[#allocation2] sm:$0x3] %v230_v0  ;;  %192 = vmatprep.mubr.msk.bf16.mxu0 %vm231_vm0, %v230_v0  ;;  %v201_v3 = vld [vmem:[%s286_s1 + $0x28] sm:$0xff]   ;;  %v202_v4 = vld [vmem:[%s286_s1 + $0x20] sm:$0xff]   ;;  %v203_v5 = vld [vmem:[%s286_s1 + $0x18] sm:$0xff]  }
   0xf   :  { %177 = vmatpush3.bf16.msra.mxu0 %v199_v1  ;;  %v204_v6 = vld [vmem:[%s286_s1 + $0x10] sm:$0xff]   ;;  %v205_v7 = vld [vmem:[%s286_s1 + $0x8] sm:$0xff]   ;;  %v206_v8 = vld [vmem:[%s286_s1] sm:$0xff]  }
  0x10   :  { %178 = vmatprep.subr.bf16.mxu0 %v230_v0  ;;  %v33_v9 = vld [vmem:[%s285_s0] sm:$0x1]  ;;  %v166_v16 = vld [vmem:[#allocation3] ss:$0 sm:$0xff] }
  0x13   :  { %179 = vmatpush3.bf16.msra.mxu0 %v200_v2 }
  0x14   :  { %180 = vmatprep.subr.bf16.mxu0 %v230_v0 }
  0x15   :  { %v32_v10 = vld [vmem:[#allocation2] sm:$0x3] }
  0x17   :  { %181 = vmatpush3.bf16.msra.mxu0 %v201_v3 }
  0x18   :  { %182 = vmatprep.subr.bf16.mxu0 %v230_v0 }
  0x1b   :  { %183 = vmatpush3.bf16.msra.mxu0 %v202_v4 }
  0x1c   :  { %184 = vmatprep.subr.bf16.mxu0 %v230_v0 }
  0x1f   :  { %185 = vmatpush3.bf16.msra.mxu0 %v203_v5 }
  0x20   :  { %186 = vmatprep.subr.bf16.mxu0 %v230_v0 }
  0x23   :  { %187 = vmatpush3.bf16.msra.mxu0 %v204_v6 }
  0x24   :  { %188 = vmatprep.subr.bf16.mxu0 %v230_v0 }
  0x27   :  { %189 = vmatpush3.bf16.msra.mxu0 %v205_v7 }
  0x28   :  { %190 = vmatprep.subr.bf16.mxu0 %v230_v0 }
  0x2b   :  { %191 = vmatpush3.bf16.msra.mxu0 %v206_v8 }
  0x2e   :  { %193 = vmatmul.mubr.bf16.vlgmr.msra.gmra.mxu0 %v33_v9 }
  0xee   :  { %v132_v11 = vpop.f32.mrf.mxu0 }
  0xef   :  { %v138_v12 = vadd.f32 %v132_v11, %v32_v10 }
  0xf0   :  { %v194_v13 = vpop.f32.mrf.mxu0 }
  0xf1   :  { %139 = vst [vmem:[#allocation2] sm:$0x3] %v138_v12 }
  0xf2   :  { %v135_v14 = vpop.f32.mrf.mxu0 }
  0xf4   :  { %v195_v15 = vpop.f32.mrf.mxu0 }
  0xf8   :  { %v143_v17 = vld [vmem:[#allocation2] sm:$0x3] }
  0xf9   :  { %v151_v18 = vadd.f32 %v166_v16, %v143_v17 }
  0xfb   :  { %152 = vst [vmem:[%s288_s3] sm:$0x3] %v151_v18 }
  0xfc   :  { %157 = vsyncpa [#allocation4], 1 }

// kernel: kepla_forward.21
= control target key start
LH: loop header
LB: loop body
LE: loop exit
PB: predicated region body
PF: predicated region fallthrough
CT: control target
= control target key end

     0   :  { %8 = vsyncpa [#allocation4], 0  ;;  %s371_s12 = smov [#allocation3]   ;;  %s455_s0 = inlined_call_operand.vmem [shape: bf16[64,128], index: 0, kind: input, shape index: {}]   ;;  %s456_s1 = inlined_call_operand.vmem [shape: bf16[128,128], index: 1, kind: input, shape index: {}]   ;;  %s457_s2 = inlined_call_operand.hbm [shape: f32[1,128], index: 2, kind: input, shape index: {}]   ;;  %s458_s3 = inlined_call_operand.vmem [shape: f32[64,128], index: 3, kind: output, shape index: {}]  }
   0x1   :  { %s19_s13 = sshll.u32 %s371_s12, 4  ;;  %s20_s13 = int_to_ptr.vmem [resolvable:$true] %s19_s13 }
   0x2   :  { %s357_s14 = scalar_lea.vmem %s20_s13, 16  ;;  %s361_s15 = scalar_lea.vmem %s20_s13, 32 }
   0x3   :  { %p358_p0 = scmp.ne.s32.totalorder %s20_s13, %s357_s14  ;;  %p362_p1 = scmp.lt.s32.totalorder %s20_s13, %s20_s13 }
   0x4   :  { %p363_p2 = scmp.lt.s32.totalorder %s361_s15, %s357_s14 }
   0x6   :  { %p364_p3 = por %p363_p2, %p362_p1 }
   0x8   :  { %p365_p4 = pnand %p364_p3, %p358_p0 }
   0xa   :  { %368 = shalt.err (!%p365_p4)
}
   0xb   :  { %22 = dma.hbm_to_vmem [thread:$0]  %s457_s2, 16, %s20_s13, [#allocation4]  }
   0xc   :  { %369 = dma.done.wait [#allocation4], 16  }
   0xd   :  { %370 = vsyncadd [#allocation4], 4294967280  ;;  %v337_v0 = vld [vmem:[%s456_s1 + $0x38] sm:$0xff]   ;;  %v338_v1 = vld [vmem:[%s456_s1 + $0x30] sm:$0xff]  }
   0xe   :  { %296 = vmatprep.subr.bf16.mxu0 %v337_v0  ;;  %320 = vmatprep.subr.bf16.mxu1 %v337_v0  ;;  %v339_v2 = vld [vmem:[%s456_s1 + $0x28] sm:$0xff]   ;;  %v340_v3 = vld [vmem:[%s456_s1 + $0x20] sm:$0xff]   ;;  %v346_v5 = vld [vmem:[%s455_s0 + $0x10] sm:$0xff]  }
   0xf   :  { %297 = vmatpush3.bf16.msra.mxu0 %v337_v0  ;;  %328 = vmatpush3.bf16.msra.mxu1 %v337_v0  ;;  %v345_v4 = vld [vmem:[%s455_s0] sm:$0xff]   ;;  %v341_v6 = vld [vmem:[%s456_s1 + $0x18] sm:$0xff]   ;;  %v342_v7 = vld [vmem:[%s456_s1 + $0x10] sm:$0xff]  }
  0x10   :  { %298 = vmatprep.subr.bf16.mxu0 %v338_v1  ;;  %321 = vmatprep.subr.bf16.mxu1 %v338_v1  ;;  %v343_v8 = vld [vmem:[%s456_s1 + $0x8] sm:$0xff]   ;;  %v344_v9 = vld [vmem:[%s456_s1] sm:$0xff]   ;;  %v348_v11 = vld [vmem:[%s455_s0 + $0x18] sm:$0xff]  }
  0x11   :  { %312 = vmatprep.mubr.bf16.mxu0 %v345_v4  ;;  %316 = vmatprep.mubr.bf16.mxu1 %v346_v5  ;;  %v347_v10 = vld [vmem:[%s455_s0 + $0x8] sm:$0xff]   ;;  %v283_v12 = vld [vmem:[#allocation3] ss:$0 sm:$0xff] }
  0x13   :  { %299 = vmatpush3.bf16.msra.mxu0 %v338_v1  ;;  %329 = vmatpush3.bf16.msra.mxu1 %v338_v1 }
  0x14   :  { %300 = vmatprep.subr.bf16.mxu0 %v339_v2  ;;  %322 = vmatprep.subr.bf16.mxu1 %v339_v2 }
  0x17   :  { %301 = vmatpush3.bf16.msra.mxu0 %v339_v2  ;;  %330 = vmatpush3.bf16.msra.mxu1 %v339_v2 }
  0x18   :  { %302 = vmatprep.subr.bf16.mxu0 %v340_v3  ;;  %323 = vmatprep.subr.bf16.mxu1 %v340_v3 }
  0x1b   :  { %303 = vmatpush3.bf16.msra.mxu0 %v340_v3  ;;  %331 = vmatpush3.bf16.msra.mxu1 %v340_v3 }
  0x1c   :  { %304 = vmatprep.subr.bf16.mxu0 %v341_v6  ;;  %324 = vmatprep.subr.bf16.mxu1 %v341_v6 }
  0x1f   :  { %305 = vmatpush3.bf16.msra.mxu0 %v341_v6  ;;  %332 = vmatpush3.bf16.msra.mxu1 %v341_v6 }
  0x20   :  { %306 = vmatprep.subr.bf16.mxu0 %v342_v7  ;;  %325 = vmatprep.subr.bf16.mxu1 %v342_v7 }
  0x23   :  { %307 = vmatpush3.bf16.msra.mxu0 %v342_v7  ;;  %333 = vmatpush3.bf16.msra.mxu1 %v342_v7 }
  0x24   :  { %308 = vmatprep.subr.bf16.mxu0 %v343_v8  ;;  %326 = vmatprep.subr.bf16.mxu1 %v343_v8 }
  0x27   :  { %309 = vmatpush3.bf16.msra.mxu0 %v343_v8  ;;  %334 = vmatpush3.bf16.msra.mxu1 %v343_v8 }
  0x28   :  { %310 = vmatprep.subr.bf16.mxu0 %v344_v9  ;;  %327 = vmatprep.subr.bf16.mxu1 %v344_v9 }
  0x2b   :  { %311 = vmatpush3.bf16.msra.mxu0 %v344_v9  ;;  %335 = vmatpush3.bf16.msra.mxu1 %v344_v9 }
  0x2e   :  { %313 = vmatmul.mubr.bf16.vlgmr.msra.gmra.mxu0 %v347_v10  ;;  %317 = vmatmul.mubr.bf16.vlgmr.msra.gmra.mxu1 %v348_v11 }
  0xee   :  { %v314_v13 = vpop.f32.mrf.mxu0  ;;  %v318_v14 = vpop.f32.mrf.mxu1 }
  0xef   :  { %v244_v15 = vadd.f32 %v314_v13, %v283_v12  ;;  %v248_v16 = vadd.f32 %v318_v14, %v283_v12 }
  0xf0   :  { %v177_v17 = vpop.f32.mrf.mxu0  ;;  %v193_v18 = vpop.f32.mrf.mxu1 }
  0xf1   :  { %v252_v19 = vmax.f32 %v244_v15, 0.0  ;;  %v256_v20 = vmax.f32 %v248_v16, 0.0  ;;  %v242_v21 = vadd.f32 %v283_v12, %v177_v17  ;;  %v246_v22 = vadd.f32 %v283_v12, %v193_v18 }
  0xf2   :  { %v315_v23 = vpop.f32.mrf.mxu0  ;;  %v319_v24 = vpop.f32.mrf.mxu1 }
  0xf3   :  { %260 = vst [vmem:[%s458_s3 + $0x10] sm:$0xff] %v252_v19  ;;  %264 = vst [vmem:[%s458_s3 + $0x30] sm:$0xff] %v256_v20  ;;  %v250_v25 = vmax.f32 %v242_v21, 0.0  ;;  %v254_v26 = vmax.f32 %v246_v22, 0.0  ;;  %v245_v27 = vadd.f32 %v315_v23, %v283_v12  ;;  %v249_v28 = vadd.f32 %v319_v24, %v283_v12 }
  0xf4   :  { %v180_v29 = vpop.f32.mrf.mxu0  ;;  %v196_v30 = vpop.f32.mrf.mxu1 }
  0xf5   :  { %258 = vst [vmem:[%s458_s3] sm:$0xff] %v250_v25  ;;  %262 = vst [vmem:[%s458_s3 + $0x20] sm:$0xff] %v254_v26  ;;  %v253_v31 = vmax.f32 %v245_v27, 0.0  ;;  %v257_v32 = vmax.f32 %v249_v28, 0.0  ;;  %v243_v33 = vadd.f32 %v283_v12, %v180_v29  ;;  %v247_v34 = vadd.f32 %v283_v12, %v196_v30 }
  0xf7   :  { %261 = vst [vmem:[%s458_s3 + $0x18] sm:$0xff] %v253_v31  ;;  %265 = vst [vmem:[%s458_s3 + $0x38] sm:$0xff] %v257_v32  ;;  %v251_v35 = vmax.f32 %v243_v33, 0.0  ;;  %v255_v36 = vmax.f32 %v247_v34, 0.0 }
  0xf9   :  { %259 = vst [vmem:[%s458_s3 + $0x8] sm:$0xff] %v251_v35  ;;  %263 = vst [vmem:[%s458_s3 + $0x28] sm:$0xff] %v255_v36 }
  0xfa   :  { %270 = vsyncpa [#allocation4], 1 }

// kernel: kepla_forward.37
= control target key start
LH: loop header
LB: loop body
LE: loop exit
PB: predicated region body
PF: predicated region fallthrough
CT: control target
= control target key end

     0   :  { %s312_s0 = inlined_call_operand.vmem [shape: f32[128,128], index: 0, kind: input, shape index: {}]   ;;  %s313_s1 = inlined_call_operand.vmem [shape: f32[128,128], index: 1, kind: input, shape index: {}]   ;;  %s314_s2 = inlined_call_operand.vmem [shape: f32[128,128], index: 2, kind: input, shape index: {}]   ;;  %s315_s3 = inlined_call_operand.vmem [shape: f32[1,128], index: 3, kind: output, shape index: {}]  }
   0x1   :  { %v14_v0 = vld [vmem:[%s312_s0] sm:$0xff]  ;;  %v15_v1 = vld [vmem:[%s312_s0 + $0x8] sm:$0xff]  ;;  %v16_v4 = vld [vmem:[%s312_s0 + $0x10] sm:$0xff] }
   0x2   :  { %v30_v2 = vld [vmem:[%s313_s1] sm:$0xff]  ;;  %v31_v3 = vld [vmem:[%s313_s1 + $0x8] sm:$0xff]  ;;  %v32_v5 = vld [vmem:[%s313_s1 + $0x10] sm:$0xff] }
   0x3   :  { %v62_v6 = vadd.f32 %v30_v2, %v14_v0  ;;  %v63_v7 = vadd.f32 %v31_v3, %v15_v1  ;;  %v17_v8 = vld [vmem:[%s312_s0 + $0x18] sm:$0xff]  ;;  %v18_v10 = vld [vmem:[%s312_s0 + $0x20] sm:$0xff]  ;;  %v64_v12 = vadd.f32 %v32_v5, %v16_v4  ;;  %v47_v14 = vld [vmem:[%s314_s2 + $0x8] sm:$0xff] }
   0x4   :  { %v33_v9 = vld [vmem:[%s313_s1 + $0x18] sm:$0xff]  ;;  %v46_v11 = vld [vmem:[%s314_s2] sm:$0xff]  ;;  %v48_v15 = vld [vmem:[%s314_s2 + $0x10] sm:$0xff] }
   0x5   :  { %v34_v13 = vld [vmem:[%s313_s1 + $0x20] sm:$0xff]  ;;  %v65_v16 = vadd.f32 %v33_v9, %v17_v8  ;;  %v78_v17 = vsub.f32 %v62_v6, %v46_v11  ;;  %v79_v18 = vsub.f32 %v63_v7, %v47_v14  ;;  %v19_v19 = vld [vmem:[%s312_s0 + $0x28] sm:$0xff]  ;;  %v49_v21 = vld [vmem:[%s314_s2 + $0x18] sm:$0xff]  ;;  %v80_v23 = vsub.f32 %v64_v12, %v48_v15 }
   0x6   :  { %v35_v20 = vld [vmem:[%s313_s1 + $0x28] sm:$0xff]  ;;  %v66_v22 = vadd.f32 %v34_v13, %v18_v10  ;;  %v20_v24 = vld [vmem:[%s312_s0 + $0x30] sm:$0xff]  ;;  %v50_v26 = vld [vmem:[%s314_s2 + $0x20] sm:$0xff] }
   0x7   :  { %v36_v25 = vld [vmem:[%s313_s1 + $0x30] sm:$0xff]  ;;  %v67_v27 = vadd.f32 %v35_v20, %v19_v19  ;;  %v81_v28 = vsub.f32 %v65_v16, %v49_v21  ;;  %v94_v29 = vmul.f32 %v78_v17, %v78_v17  ;;  %v95_v30 = vmul.f32 %v79_v18, %v79_v18  ;;  %v21_v31 = vld [vmem:[%s312_s0 + $0x38] sm:$0xff]  ;;  %v51_v33 = vld [vmem:[%s314_s2 + $0x28] sm:$0xff] }
   0x8   :  { %v37_v32 = vld [vmem:[%s313_s1 + $0x38] sm:$0xff]  ;;  %v68_v34 = vadd.f32 %v36_v25, %v20_v24  ;;  %v82_v35 = vsub.f32 %v66_v22, %v50_v26  ;;  %v96_v36 = vmul.f32 %v80_v23, %v80_v23  ;;  %v22_v37 = vld [vmem:[%s312_s0 + $0x40] sm:$0xff]  ;;  %v52_v39 = vld [vmem:[%s314_s2 + $0x30] sm:$0xff] }
   0x9   :  { %v38_v38 = vld [vmem:[%s313_s1 + $0x40] sm:$0xff]  ;;  %v69_v40 = vadd.f32 %v37_v32, %v21_v31  ;;  %v83_v41 = vsub.f32 %v67_v27, %v51_v33  ;;  %v97_v42 = vmul.f32 %v81_v28, %v81_v28  ;;  %v110_v43 = vadd.f32 %v95_v30, %v94_v29  ;;  %v23_v44 = vld [vmem:[%s312_s0 + $0x48] sm:$0xff]  ;;  %v53_v46 = vld [vmem:[%s314_s2 + $0x38] sm:$0xff] }
   0xa   :  { %v39_v45 = vld [vmem:[%s313_s1 + $0x48] sm:$0xff]  ;;  %v70_v47 = vadd.f32 %v38_v38, %v22_v37  ;;  %v84_v48 = vsub.f32 %v68_v34, %v52_v39  ;;  %v98_v49 = vmul.f32 %v82_v35, %v82_v35  ;;  %v24_v51 = vld [vmem:[%s312_s0 + $0x50] sm:$0xff]  ;;  %v54_v53 = vld [vmem:[%s314_s2 + $0x40] sm:$0xff] }
   0xb   :  { %v111_v50 = vadd.f32 %v110_v43, %v96_v36  ;;  %v40_v52 = vld [vmem:[%s313_s1 + $0x50] sm:$0xff]  ;;  %v71_v54 = vadd.f32 %v39_v45, %v23_v44  ;;  %v85_v55 = vsub.f32 %v69_v40, %v53_v46  ;;  %v99_v56 = vmul.f32 %v83_v41, %v83_v41  ;;  %v25_v58 = vld [vmem:[%s312_s0 + $0x58] sm:$0xff]  ;;  %v55_v60 = vld [vmem:[%s314_s2 + $0x48] sm:$0xff] }
   0xc   :  { %v41_v59 = vld [vmem:[%s313_s1 + $0x58] sm:$0xff]  ;;  %v72_v61 = vadd.f32 %v40_v52, %v24_v51  ;;  %v86_v62 = vsub.f32 %v70_v47, %v54_v53  ;;  %v100_v63 = vmul.f32 %v84_v48, %v84_v48  ;;  %v26_v1 = vld [vmem:[%s312_s0 + $0x60] sm:$0xff]  ;;  %v56_v3 = vld [vmem:[%s314_s2 + $0x50] sm:$0xff] }
   0xd   :  { %v112_v57 = vadd.f32 %v111_v50, %v97_v42  ;;  %v42_v2 = vld [vmem:[%s313_s1 + $0x60] sm:$0xff]  ;;  %v73_v4 = vadd.f32 %v41_v59, %v25_v58  ;;  %v87_v5 = vsub.f32 %v71_v54, %v55_v60  ;;  %v101_v6 = vmul.f32 %v85_v55, %v85_v55  ;;  %v27_v8 = vld [vmem:[%s312_s0 + $0x68] sm:$0xff]  ;;  %v57_v10 = vld [vmem:[%s314_s2 + $0x58] sm:$0xff] }
   0xe   :  { %v43_v9 = vld [vmem:[%s313_s1 + $0x68] sm:$0xff]  ;;  %v74_v11 = vadd.f32 %v42_v2, %v26_v1  ;;  %v88_v12 = vsub.f32 %v72_v61, %v56_v3  ;;  %v102_v13 = vmul.f32 %v86_v62, %v86_v62  ;;  %v28_v15 = vld [vmem:[%s312_s0 + $0x70] sm:$0xff]  ;;  %v58_v17 = vld [vmem:[%s314_s2 + $0x60] sm:$0xff] }
   0xf   :  { %v113_v0 = vadd.f32 %v112_v57, %v98_v49  ;;  %v44_v16 = vld [vmem:[%s313_s1 + $0x70] sm:$0xff]  ;;  %v75_v18 = vadd.f32 %v43_v9, %v27_v8  ;;  %v89_v19 = vsub.f32 %v73_v4, %v57_v10  ;;  %v103_v20 = vmul.f32 %v87_v5, %v87_v5  ;;  %v29_v22 = vld [vmem:[%s312_s0 + $0x78] sm:$0xff]  ;;  %v59_v24 = vld [vmem:[%s314_s2 + $0x68] sm:$0xff] }
  0x10   :  { %v45_v23 = vld [vmem:[%s313_s1 + $0x78] sm:$0xff]  ;;  %v76_v25 = vadd.f32 %v44_v16, %v28_v15  ;;  %v90_v26 = vsub.f32 %v74_v11, %v58_v17  ;;  %v104_v27 = vmul.f32 %v88_v12, %v88_v12  ;;  %v60_v29 = vld [vmem:[%s314_s2 + $0x70] sm:$0xff] }
  0x11   :  { %v114_v7 = vadd.f32 %v113_v0, %v99_v56  ;;  %v77_v30 = vadd.f32 %v45_v23, %v29_v22  ;;  %v91_v31 = vsub.f32 %v75_v18, %v59_v24  ;;  %v105_v32 = vmul.f32 %v89_v19, %v89_v19  ;;  %v61_v34 = vld [vmem:[%s314_s2 + $0x78] sm:$0xff] }
  0x12   :  { %v92_v35 = vsub.f32 %v76_v25, %v60_v29  ;;  %v106_v36 = vmul.f32 %v90_v26, %v90_v26 }
  0x13   :  { %v115_v14 = vadd.f32 %v114_v7, %v100_v63  ;;  %v93_v38 = vsub.f32 %v77_v30, %v61_v34  ;;  %v107_v39 = vmul.f32 %v91_v31, %v91_v31 }
  0x14   :  { %v108_v41 = vmul.f32 %v92_v35, %v92_v35 }
  0x15   :  { %v116_v21 = vadd.f32 %v115_v14, %v101_v6  ;;  %v109_v43 = vmul.f32 %v93_v38, %v93_v38 }
  0x17   :  { %v117_v28 = vadd.f32 %v116_v21, %v102_v13 }
  0x19   :  { %v118_v33 = vadd.f32 %v117_v28, %v103_v20 }
  0x1b   :  { %v119_v37 = vadd.f32 %v118_v33, %v104_v27 }
  0x1d   :  { %v120_v40 = vadd.f32 %v119_v37, %v105_v32 }
  0x1f   :  { %v121_v42 = vadd.f32 %v120_v40, %v106_v36 }
  0x21   :  { %v122_v44 = vadd.f32 %v121_v42, %v107_v39 }
  0x23   :  { %v123_v45 = vadd.f32 %v122_v44, %v108_v41 }
  0x25   :  { %v124_v46 = vadd.f32 %v123_v45, %v109_v43 }
  0x27   :  { %v125_v47 = vrot.slane %v124_v46, 4 }
  0x29   :  { %v126_v48 = vadd.f32 %v125_v47, %v124_v46 }
  0x2b   :  { %v127_v49 = vrot.slane %v126_v48, 2 }
  0x2d   :  { %v128_v50 = vadd.f32 %v127_v49, %v126_v48 }
  0x2f   :  { %v129_v51 = vrot.slane %v128_v50, 1 }
  0x31   :  { %v130_v52 = vadd.f32 %v129_v51, %v128_v50 }
  0x33   :  { %143 = vrsqrt.f32 %v130_v52  ;;  %vm133_vm0 = vcmp.eq.f32.partialorder %v130_v52, inf  ;;  %v136_v54 = vand.u32 2147483648, %v130_v52  ;;  %vm135_vm1 = vcmp.eq.f32.partialorder %v130_v52, 0.0 }
  0x40   :  { %v144_v53 = vpop.eup %143 }
  0x41   :  { %v132_v55 = vmul.f32 %v144_v53, %v130_v52 }
  0x43   :  { %v134_v56 = vsel %vm133_vm0, %v130_v52, %v132_v55 }
  0x44   :  { %v137_v57 = vsel %vm135_vm1, %v136_v54, %v134_v56 }
  0x45   :  { %138 = vst [vmem:[%s315_s3] sm:$0x1] %v137_v57 }

// kernel: kepla_forward.27
= control target key start
LH: loop header
LB: loop body
LE: loop exit
PB: predicated region body
PF: predicated region fallthrough
CT: control target
= control target key end

     0   :  { %s1357_s1 = inlined_call_operand.vmem [shape: bf16[512,128], index: 1, kind: input, shape index: {}]   ;;  %s1358_s0 = inlined_call_operand.vmem [shape: bf16[128,512], index: 0, kind: input, shape index: {}]   ;;  %s1359_s2 = inlined_call_operand.vmem [shape: f32[1,128], index: 2, kind: input, shape index: {}]   ;;  %s1360_s3 = inlined_call_operand.vmem [shape: f32[128,128], index: 3, kind: output, shape index: {}]  }
   0x1   :  { %v996_v0 = vld [vmem:[%s1357_s1 + $0x78] sm:$0xff]   ;;  %v1000_v4 = vld [vmem:[%s1357_s1 + $0x70] sm:$0xff]   ;;  %v1004_v8 = vld [vmem:[%s1357_s1 + $0x68] sm:$0xff]  }
   0x2   :  { %v997_v1 = vld [vmem:[%s1357_s1 + $0xf8] sm:$0xff]   ;;  %868 = vmatprep.subr.bf16.mxu0 %v996_v0  ;;  %v1001_v5 = vld [vmem:[%s1357_s1 + $0xf0] sm:$0xff]   ;;  %v1005_v9 = vld [vmem:[%s1357_s1 + $0xe8] sm:$0xff]  }
   0x3   :  { %v998_v2 = vld [vmem:[%s1357_s1 + $0x38] sm:$0xff]   ;;  %932 = vmatprep.subr.bf16.mxu1 %v997_v1  ;;  %v1002_v6 = vld [vmem:[%s1357_s1 + $0x30] sm:$0xff]   ;;  %v1006_v10 = vld [vmem:[%s1357_s1 + $0x28] sm:$0xff]  }
   0x4   :  { %v999_v3 = vld [vmem:[%s1357_s1 + $0xb8] sm:$0xff]   ;;  %869 = vmatpush3.bf16.msra.mxu0 %v998_v2  ;;  %v1003_v7 = vld [vmem:[%s1357_s1 + $0xb0] sm:$0xff]   ;;  %v1007_v11 = vld [vmem:[%s1357_s1 + $0xa8] sm:$0xff]  }
   0x5   :  { %933 = vmatpush3.bf16.msra.mxu1 %v999_v3  ;;  %870 = vmatprep.subr.bf16.mxu0 %v1000_v4  ;;  %v1008_v12 = vld [vmem:[%s1357_s1 + $0x60] sm:$0xff]   ;;  %v1012_v16 = vld [vmem:[%s1357_s1 + $0x58] sm:$0xff]   ;;  %v1016_v20 = vld [vmem:[%s1357_s1 + $0x50] sm:$0xff]  }
   0x6   :  { %934 = vmatprep.subr.bf16.mxu1 %v1001_v5  ;;  %v1009_v13 = vld [vmem:[%s1357_s1 + $0xe0] sm:$0xff]   ;;  %v1013_v17 = vld [vmem:[%s1357_s1 + $0xd8] sm:$0xff]   ;;  %v1017_v21 = vld [vmem:[%s1357_s1 + $0xd0] sm:$0xff]  }
   0x7   :  { %v1010_v14 = vld [vmem:[%s1357_s1 + $0x20] sm:$0xff]   ;;  %v1014_v18 = vld [vmem:[%s1357_s1 + $0x18] sm:$0xff]   ;;  %v1018_v22 = vld [vmem:[%s1357_s1 + $0x10] sm:$0xff]  }
   0x8   :  { %871 = vmatpush3.bf16.msra.mxu0 %v1002_v6  ;;  %v1011_v15 = vld [vmem:[%s1357_s1 + $0xa0] sm:$0xff]   ;;  %v1015_v19 = vld [vmem:[%s1357_s1 + $0x98] sm:$0xff]   ;;  %v1019_v23 = vld [vmem:[%s1357_s1 + $0x90] sm:$0xff]  }
   0x9   :  { %935 = vmatpush3.bf16.msra.mxu1 %v1003_v7  ;;  %872 = vmatprep.subr.bf16.mxu0 %v1004_v8  ;;  %v1020_v24 = vld [vmem:[%s1357_s1 + $0x48] sm:$0xff]   ;;  %v1024_v28 = vld [vmem:[%s1357_s1 + $0x40] sm:$0xff]  }
   0xa   :  { %936 = vmatprep.subr.bf16.mxu1 %v1005_v9  ;;  %v1021_v25 = vld [vmem:[%s1357_s1 + $0xc8] sm:$0xff]   ;;  %v1025_v29 = vld [vmem:[%s1357_s1 + $0xc0] sm:$0xff]  }
   0xb   :  { %v1022_v26 = vld [vmem:[%s1357_s1 + $0x8] sm:$0xff]   ;;  %v1026_v30 = vld [vmem:[%s1357_s1] sm:$0xff]  }
   0xc   :  { %873 = vmatpush3.bf16.msra.mxu0 %v1006_v10  ;;  %v1023_v27 = vld [vmem:[%s1357_s1 + $0x88] sm:$0xff]   ;;  %v1027_v31 = vld [vmem:[%s1357_s1 + $0x80] sm:$0xff]  }
   0xd   :  { %937 = vmatpush3.bf16.msra.mxu1 %v1007_v11  ;;  %874 = vmatprep.subr.bf16.mxu0 %v1008_v12  ;;  %v1028_v32 = vld [vmem:[%s1358_s0] ss:$16 sps:$4 sm:$0xff]   ;;  %v1030_v33 = vld [vmem:[%s1358_s0 + $0x4] ss:$16 sps:$4 sm:$0xff]   ;;  %v1031_v34 = vld [vmem:[%s1358_s0 + $0x8] ss:$16 sps:$4 sm:$0xff]  }
   0xe   :  { %938 = vmatprep.subr.bf16.mxu1 %v1009_v13  ;;  %v1033_v35 = vld [vmem:[%s1358_s0 + $0xc] ss:$16 sps:$4 sm:$0xff]   ;;  %531 = vmatprep.mubr.bf16.mxu0 %v1030_v33  ;;  %v1034_v36 = vld [vmem:[%s1358_s0 + $0x24] ss:$16 sps:$4 sm:$0xff]   ;;  %v1038_v38 = vld [vmem:[%s1358_s0 + $0x20] ss:$16 sps:$4 sm:$0xff]  }
   0xf   :  { %628 = vmatprep.mubr.bf16.mxu1 %v1033_v35  ;;  %v1036_v37 = vld [vmem:[%s1358_s0 + $0x2c] ss:$16 sps:$4 sm:$0xff]   ;;  %v1039_v39 = vld [vmem:[%s1358_s0 + $0x28] ss:$16 sps:$4 sm:$0xff]   ;;  %v1040_v40 = vld [vmem:[%s1358_s0 + $0x44] ss:$16 sps:$4 sm:$0xff]  }
  0x10   :  { %875 = vmatpush3.bf16.msra.mxu0 %v1010_v14  ;;  %v1042_v41 = vld [vmem:[%s1358_s0 + $0x4c] ss:$16 sps:$4 sm:$0xff]   ;;  %v1044_v42 = vld [vmem:[%s1358_s0 + $0x40] ss:$16 sps:$4 sm:$0xff]   ;;  %v1045_v43 = vld [vmem:[%s1358_s0 + $0x48] ss:$16 sps:$4 sm:$0xff]  }
  0x11   :  { %939 = vmatpush3.bf16.msra.mxu1 %v1011_v15  ;;  %876 = vmatprep.subr.bf16.mxu0 %v1012_v16  ;;  %v1046_v44 = vld [vmem:[%s1358_s0 + $0x64] ss:$16 sps:$4 sm:$0xff]   ;;  %v1048_v45 = vld [vmem:[%s1358_s0 + $0x6c] ss:$16 sps:$4 sm:$0xff]   ;;  %v1050_v46 = vld [vmem:[%s1358_s0 + $0x60] ss:$16 sps:$4 sm:$0xff]  }
  0x12   :  { %940 = vmatprep.subr.bf16.mxu1 %v1013_v17  ;;  %v1051_v47 = vld [vmem:[%s1358_s0 + $0x68] ss:$16 sps:$4 sm:$0xff]   ;;  %v1052_v48 = vld [vmem:[%s1358_s0 + $0x84] ss:$16 sps:$4 sm:$0xff]   ;;  %v1054_v49 = vld [vmem:[%s1358_s0 + $0x8c] ss:$16 sps:$4 sm:$0xff]  }
  0x13   :  { %v1056_v50 = vld [vmem:[%s1358_s0 + $0x80] ss:$16 sps:$4 sm:$0xff]   ;;  %v1057_v51 = vld [vmem:[%s1358_s0 + $0x88] ss:$16 sps:$4 sm:$0xff]   ;;  %v1058_v52 = vld [vmem:[%s1358_s0 + $0xa4] ss:$16 sps:$4 sm:$0xff]  }
  0x14   :  { %877 = vmatpush3.bf16.msra.mxu0 %v1014_v18  ;;  %v1060_v53 = vld [vmem:[%s1358_s0 + $0xac] ss:$16 sps:$4 sm:$0xff]   ;;  %v1062_v54 = vld [vmem:[%s1358_s0 + $0xa0] ss:$16 sps:$4 sm:$0xff]   ;;  %v1063_v55 = vld [vmem:[%s1358_s0 + $0xa8] ss:$16 sps:$4 sm:$0xff]  }
  0x15   :  { %941 = vmatpush3.bf16.msra.mxu1 %v1015_v19  ;;  %878 = vmatprep.subr.bf16.mxu0 %v1016_v20  ;;  %v1064_v56 = vld [vmem:[%s1358_s0 + $0xc4] ss:$16 sps:$4 sm:$0xff]   ;;  %v1066_v57 = vld [vmem:[%s1358_s0 + $0xcc] ss:$16 sps:$4 sm:$0xff]   ;;  %v1068_v58 = vld [vmem:[%s1358_s0 + $0xc0] ss:$16 sps:$4 sm:$0xff]  }
  0x16   :  { %942 = vmatprep.subr.bf16.mxu1 %v1017_v21  ;;  %v1069_v59 = vld [vmem:[%s1358_s0 + $0xc8] ss:$16 sps:$4 sm:$0xff]   ;;  %v1070_v60 = vld [vmem:[%s1358_s0 + $0xe4] ss:$16 sps:$4 sm:$0xff]   ;;  %v1072_v61 = vld [vmem:[%s1358_s0 + $0xec] ss:$16 sps:$4 sm:$0xff]  }
  0x17   :  { %v1074_v62 = vld [vmem:[%s1358_s0 + $0xe0] ss:$16 sps:$4 sm:$0xff]   ;;  %v1075_v63 = vld [vmem:[%s1358_s0 + $0xe8] ss:$16 sps:$4 sm:$0xff]  }
  0x18   :  { %879 = vmatpush3.bf16.msra.mxu0 %v1018_v22  ;;  %v1291_v7 = vld [vmem:[%s1359_s2] ss:$0 sm:$0xff] }
  0x19   :  { %943 = vmatpush3.bf16.msra.mxu1 %v1019_v23  ;;  %880 = vmatprep.subr.bf16.mxu0 %v1020_v24 }
  0x1a   :  { %944 = vmatprep.subr.bf16.mxu1 %v1021_v25 }
  0x1c   :  { %881 = vmatpush3.bf16.msra.mxu0 %v1022_v26 }
  0x1d   :  { %945 = vmatpush3.bf16.msra.mxu1 %v1023_v27  ;;  %882 = vmatprep.subr.bf16.mxu0 %v1024_v28 }
  0x1e   :  { %946 = vmatprep.subr.bf16.mxu1 %v1025_v29 }
  0x20   :  { %883 = vmatpush3.bf16.msra.mxu0 %v1026_v30 }
  0x21   :  { %947 = vmatpush3.bf16.msra.mxu1 %v1027_v31 }
  0x23   :  { %532 = vmatmul.mubr.bf16.vlgmr.msra.gmra.mxu0 %v1028_v32 }
  0x24   :  { %629 = vmatmul.mubr.bf16.vlgmr.msra.gmra.mxu1 %v1031_v34  ;;  %539 = vmatprep.mubr.bf16.mxu0 %v1034_v36 }
  0x25   :  { %636 = vmatprep.mubr.bf16.mxu1 %v1036_v37 }
  0x2b   :  { %540 = vmatmul.mubr.bf16.gmra.mxu0 %v1038_v38 }
  0x2c   :  { %637 = vmatmul.mubr.bf16.gmra.mxu1 %v1039_v39  ;;  %547 = vmatprep.mubr.bf16.mxu0 %v1040_v40 }
  0x2d   :  { %644 = vmatprep.mubr.bf16.mxu1 %v1042_v41 }
  0x33   :  { %548 = vmatmul.mubr.bf16.gmra.mxu0 %v1044_v42 }
  0x34   :  { %645 = vmatmul.mubr.bf16.gmra.mxu1 %v1045_v43  ;;  %555 = vmatprep.mubr.bf16.mxu0 %v1046_v44 }
  0x35   :  { %652 = vmatprep.mubr.bf16.mxu1 %v1048_v45 }
  0x3b   :  { %556 = vmatmul.mubr.bf16.gmra.mxu0 %v1050_v46 }
  0x3c   :  { %653 = vmatmul.mubr.bf16.gmra.mxu1 %v1051_v47  ;;  %563 = vmatprep.mubr.bf16.mxu0 %v1052_v48 }
  0x3d   :  { %660 = vmatprep.mubr.bf16.mxu1 %v1054_v49 }
  0x43   :  { %564 = vmatmul.mubr.bf16.gmra.mxu0 %v1056_v50 }
  0x44   :  { %661 = vmatmul.mubr.bf16.gmra.mxu1 %v1057_v51  ;;  %571 = vmatprep.mubr.bf16.mxu0 %v1058_v52 }
  0x45   :  { %668 = vmatprep.mubr.bf16.mxu1 %v1060_v53 }
  0x4b   :  { %572 = vmatmul.mubr.bf16.gmra.mxu0 %v1062_v54 }
  0x4c   :  { %669 = vmatmul.mubr.bf16.gmra.mxu1 %v1063_v55  ;;  %579 = vmatprep.mubr.bf16.mxu0 %v1064_v56 }
  0x4d   :  { %676 = vmatprep.mubr.bf16.mxu1 %v1066_v57 }
  0x53   :  { %580 = vmatmul.mubr.bf16.gmra.mxu0 %v1068_v58 }
  0x54   :  { %677 = vmatmul.mubr.bf16.gmra.mxu1 %v1069_v59  ;;  %587 = vmatprep.mubr.bf16.mxu0 %v1070_v60 }
  0x55   :  { %684 = vmatprep.mubr.bf16.mxu1 %v1072_v61 }
  0x5b   :  { %588 = vmatmul.mubr.bf16.gmra.mxu0 %v1074_v62 }
  0x5c   :  { %685 = vmatmul.mubr.bf16.gmra.mxu1 %v1075_v63 }
  0xe3   :  { %v884_v0 = vpop.f32.mrf.mxu0 }
  0xe4   :  { %v948_v1 = vpop.f32.mrf.mxu1 }
  0xe5   :  { %v885_v2 = vpop.f32.mrf.mxu0 }
  0xe6   :  { %v886_v3 = vadd.f32 %v885_v2, %v884_v0  ;;  %v949_v4 = vpop.f32.mrf.mxu1 }
  0xe7   :  { %v950_v5 = vadd.f32 %v949_v4, %v948_v1  ;;  %v887_v6 = vpop.f32.mrf.mxu0 }
  0xe8   :  { %v951_v8 = vpop.f32.mrf.mxu1 }
  0xe9   :  { %v631_v9 = vadd.f32 %v950_v5, %v886_v3  ;;  %v888_v10 = vpop.f32.mrf.mxu0 }
  0xea   :  { %v889_v11 = vadd.f32 %v888_v10, %v887_v6  ;;  %v952_v12 = vpop.f32.mrf.mxu1 }
  0xeb   :  { %v751_v13 = vadd.f32 %v1291_v7, %v631_v9  ;;  %v953_v14 = vadd.f32 %v952_v12, %v951_v8  ;;  %v890_v15 = vpop.f32.mrf.mxu0 }
  0xec   :  { %v954_v16 = vpop.f32.mrf.mxu1 }
  0xed   :  { %v767_v17 = vmax.f32 %v751_v13, 0.0  ;;  %v634_v18 = vadd.f32 %v953_v14, %v889_v11  ;;  %v891_v19 = vpop.f32.mrf.mxu0 }
  0xee   :  { %v892_v20 = vadd.f32 %v891_v19, %v890_v15  ;;  %v955_v21 = vpop.f32.mrf.mxu1 }
  0xef   :  { %783 = vst [vmem:[%s1360_s3] sm:$0xff] %v767_v17  ;;  %v752_v22 = vadd.f32 %v1291_v7, %v634_v18  ;;  %v956_v23 = vadd.f32 %v955_v21, %v954_v16  ;;  %v893_v24 = vpop.f32.mrf.mxu0 }
  0xf0   :  { %v957_v25 = vpop.f32.mrf.mxu1 }
  0xf1   :  { %v768_v26 = vmax.f32 %v752_v22, 0.0  ;;  %v639_v27 = vadd.f32 %v956_v23, %v892_v20  ;;  %v894_v28 = vpop.f32.mrf.mxu0 }
  0xf2   :  { %v895_v29 = vadd.f32 %v894_v28, %v893_v24  ;;  %v958_v30 = vpop.f32.mrf.mxu1 }
  0xf3   :  { %784 = vst [vmem:[%s1360_s3 + $0x8] sm:$0xff] %v768_v26  ;;  %v753_v31 = vadd.f32 %v1291_v7, %v639_v27  ;;  %v959_v32 = vadd.f32 %v958_v30, %v957_v25  ;;  %v896_v33 = vpop.f32.mrf.mxu0 }
  0xf4   :  { %v960_v34 = vpop.f32.mrf.mxu1 }
  0xf5   :  { %v769_v35 = vmax.f32 %v753_v31, 0.0  ;;  %v642_v36 = vadd.f32 %v959_v32, %v895_v29  ;;  %v897_v37 = vpop.f32.mrf.mxu0 }
  0xf6   :  { %v898_v38 = vadd.f32 %v897_v37, %v896_v33  ;;  %v961_v39 = vpop.f32.mrf.mxu1 }
  0xf7   :  { %785 = vst [vmem:[%s1360_s3 + $0x10] sm:$0xff] %v769_v35  ;;  %v754_v40 = vadd.f32 %v1291_v7, %v642_v36  ;;  %v962_v41 = vadd.f32 %v961_v39, %v960_v34  ;;  %v899_v42 = vpop.f32.mrf.mxu0 }
  0xf8   :  { %v963_v43 = vpop.f32.mrf.mxu1 }
  0xf9   :  { %v770_v44 = vmax.f32 %v754_v40, 0.0  ;;  %v647_v45 = vadd.f32 %v962_v41, %v898_v38  ;;  %v900_v46 = vpop.f32.mrf.mxu0 }
  0xfa   :  { %v901_v47 = vadd.f32 %v900_v46, %v899_v42  ;;  %v964_v48 = vpop.f32.mrf.mxu1 }
  0xfb   :  { %786 = vst [vmem:[%s1360_s3 + $0x18] sm:$0xff] %v770_v44  ;;  %v755_v49 = vadd.f32 %v1291_v7, %v647_v45  ;;  %v965_v50 = vadd.f32 %v964_v48, %v963_v43  ;;  %v902_v51 = vpop.f32.mrf.mxu0 }
  0xfc   :  { %v966_v52 = vpop.f32.mrf.mxu1 }
  0xfd   :  { %v771_v53 = vmax.f32 %v755_v49, 0.0  ;;  %v650_v54 = vadd.f32 %v965_v50, %v901_v47  ;;  %v903_v55 = vpop.f32.mrf.mxu0 }
  0xfe   :  { %v904_v56 = vadd.f32 %v903_v55, %v902_v51  ;;  %v967_v57 = vpop.f32.mrf.mxu1 }
  0xff   :  { %787 = vst [vmem:[%s1360_s3 + $0x20] sm:$0xff] %v771_v53  ;;  %v756_v58 = vadd.f32 %v1291_v7, %v650_v54  ;;  %v968_v59 = vadd.f32 %v967_v57, %v966_v52  ;;  %v905_v60 = vpop.f32.mrf.mxu0 }
 0x100   :  { %v969_v61 = vpop.f32.mrf.mxu1 }
 0x101   :  { %v772_v62 = vmax.f32 %v756_v58, 0.0  ;;  %v655_v63 = vadd.f32 %v968_v59, %v904_v56  ;;  %v906_v0 = vpop.f32.mrf.mxu0 }
 0x102   :  { %v907_v1 = vadd.f32 %v906_v0, %v905_v60  ;;  %v970_v2 = vpop.f32.mrf.mxu1 }
 0x103   :  { %788 = vst [vmem:[%s1360_s3 + $0x28] sm:$0xff] %v772_v62  ;;  %v757_v3 = vadd.f32 %v1291_v7, %v655_v63  ;;  %v971_v4 = vadd.f32 %v970_v2, %v969_v61  ;;  %v908_v5 = vpop.f32.mrf.mxu0 }
 0x104   :  { %v972_v6 = vpop.f32.mrf.mxu1 }
 0x105   :  { %v773_v8 = vmax.f32 %v757_v3, 0.0  ;;  %v658_v9 = vadd.f32 %v971_v4, %v907_v1  ;;  %v909_v10 = vpop.f32.mrf.mxu0 }
 0x106   :  { %v910_v11 = vadd.f32 %v909_v10, %v908_v5  ;;  %v973_v12 = vpop.f32.mrf.mxu1 }
 0x107   :  { %789 = vst [vmem:[%s1360_s3 + $0x30] sm:$0xff] %v773_v8  ;;  %v758_v13 = vadd.f32 %v1291_v7, %v658_v9  ;;  %v974_v14 = vadd.f32 %v973_v12, %v972_v6  ;;  %v911_v15 = vpop.f32.mrf.mxu0 }
 0x108   :  { %v975_v16 = vpop.f32.mrf.mxu1 }
 0x109   :  { %v774_v17 = vmax.f32 %v758_v13, 0.0  ;;  %v663_v18 = vadd.f32 %v974_v14, %v910_v11  ;;  %v912_v19 = vpop.f32.mrf.mxu0 }
 0x10a   :  { %v913_v20 = vadd.f32 %v912_v19, %v911_v15  ;;  %v976_v21 = vpop.f32.mrf.mxu1 }
 0x10b   :  { %790 = vst [vmem:[%s1360_s3 + $0x38] sm:$0xff] %v774_v17  ;;  %v759_v22 = vadd.f32 %v1291_v7, %v663_v18  ;;  %v977_v23 = vadd.f32 %v976_v21, %v975_v16  ;;  %v914_v24 = vpop.f32.mrf.mxu0 }
 0x10c   :  { %v978_v25 = vpop.f32.mrf.mxu1 }
 0x10d   :  { %v775_v26 = vmax.f32 %v759_v22, 0.0  ;;  %v666_v27 = vadd.f32 %v977_v23, %v913_v20  ;;  %v915_v28 = vpop.f32.mrf.mxu0 }
 0x10e   :  { %v916_v29 = vadd.f32 %v915_v28, %v914_v24  ;;  %v979_v30 = vpop.f32.mrf.mxu1 }
 0x10f   :  { %791 = vst [vmem:[%s1360_s3 + $0x40] sm:$0xff] %v775_v26  ;;  %v760_v31 = vadd.f32 %v1291_v7, %v666_v27  ;;  %v980_v32 = vadd.f32 %v979_v30, %v978_v25  ;;  %v917_v33 = vpop.f32.mrf.mxu0 }
 0x110   :  { %v981_v34 = vpop.f32.mrf.mxu1 }
 0x111   :  { %v776_v35 = vmax.f32 %v760_v31, 0.0  ;;  %v671_v36 = vadd.f32 %v980_v32, %v916_v29  ;;  %v918_v37 = vpop.f32.mrf.mxu0 }
 0x112   :  { %v919_v38 = vadd.f32 %v918_v37, %v917_v33  ;;  %v982_v39 = vpop.f32.mrf.mxu1 }
 0x113   :  { %792 = vst [vmem:[%s1360_s3 + $0x48] sm:$0xff] %v776_v35  ;;  %v761_v40 = vadd.f32 %v1291_v7, %v671_v36  ;;  %v983_v41 = vadd.f32 %v982_v39, %v981_v34  ;;  %v920_v42 = vpop.f32.mrf.mxu0 }
 0x114   :  { %v984_v43 = vpop.f32.mrf.mxu1 }
 0x115   :  { %v777_v44 = vmax.f32 %v761_v40, 0.0  ;;  %v674_v45 = vadd.f32 %v983_v41, %v919_v38  ;;  %v921_v46 = vpop.f32.mrf.mxu0 }
 0x116   :  { %v922_v47 = vadd.f32 %v921_v46, %v920_v42  ;;  %v985_v48 = vpop.f32.mrf.mxu1 }
 0x117   :  { %793 = vst [vmem:[%s1360_s3 + $0x50] sm:$0xff] %v777_v44  ;;  %v762_v49 = vadd.f32 %v1291_v7, %v674_v45  ;;  %v986_v50 = vadd.f32 %v985_v48, %v984_v43  ;;  %v923_v51 = vpop.f32.mrf.mxu0 }
 0x118   :  { %v987_v52 = vpop.f32.mrf.mxu1 }
 0x119   :  { %v778_v53 = vmax.f32 %v762_v49, 0.0  ;;  %v679_v54 = vadd.f32 %v986_v50, %v922_v47  ;;  %v924_v55 = vpop.f32.mrf.mxu0 }
 0x11a   :  { %v925_v56 = vadd.f32 %v924_v55, %v923_v51  ;;  %v988_v57 = vpop.f32.mrf.mxu1 }
 0x11b   :  { %794 = vst [vmem:[%s1360_s3 + $0x58] sm:$0xff] %v778_v53  ;;  %v763_v58 = vadd.f32 %v1291_v7, %v679_v54  ;;  %v989_v59 = vadd.f32 %v988_v57, %v987_v52  ;;  %v926_v60 = vpop.f32.mrf.mxu0 }
 0x11c   :  { %v990_v61 = vpop.f32.mrf.mxu1 }
 0x11d   :  { %v779_v62 = vmax.f32 %v763_v58, 0.0  ;;  %v682_v63 = vadd.f32 %v989_v59, %v925_v56  ;;  %v927_v0 = vpop.f32.mrf.mxu0 }
 0x11e   :  { %v928_v1 = vadd.f32 %v927_v0, %v926_v60  ;;  %v991_v2 = vpop.f32.mrf.mxu1 }
 0x11f   :  { %795 = vst [vmem:[%s1360_s3 + $0x60] sm:$0xff] %v779_v62  ;;  %v764_v3 = vadd.f32 %v1291_v7, %v682_v63  ;;  %v992_v4 = vadd.f32 %v991_v2, %v990_v61  ;;  %v929_v5 = vpop.f32.mrf.mxu0 }
 0x120   :  { %v993_v6 = vpop.f32.mrf.mxu1 }
 0x121   :  { %v780_v8 = vmax.f32 %v764_v3, 0.0  ;;  %v687_v9 = vadd.f32 %v992_v4, %v928_v1  ;;  %v930_v10 = vpop.f32.mrf.mxu0 }
 0x122   :  { %v931_v11 = vadd.f32 %v930_v10, %v929_v5  ;;  %v994_v12 = vpop.f32.mrf.mxu1 }
 0x123   :  { %796 = vst [vmem:[%s1360_s3 + $0x68] sm:$0xff] %v780_v8  ;;  %v765_v13 = vadd.f32 %v1291_v7, %v687_v9  ;;  %v995_v14 = vadd.f32 %v994_v12, %v993_v6 }
 0x125   :  { %v781_v15 = vmax.f32 %v765_v13, 0.0  ;;  %v690_v16 = vadd.f32 %v995_v14, %v931_v11 }
 0x127   :  { %797 = vst [vmem:[%s1360_s3 + $0x70] sm:$0xff] %v781_v15  ;;  %v766_v17 = vadd.f32 %v1291_v7, %v690_v16 }
 0x129   :  { %v782_v18 = vmax.f32 %v766_v17, 0.0 }
 0x12b   :  { %798 = vst [vmem:[%s1360_s3 + $0x78] sm:$0xff] %v782_v18 }

// kernel: kepla_forward.26
= control target key start
LH: loop header
LB: loop body
LE: loop exit
PB: predicated region body
PF: predicated region fallthrough
CT: control target
= control target key end

     0   :  { %s2952_s12 = smov 0   ;;  %s2954_s13 = smov 0   ;;  %s3694_s0 = inlined_call_operand.vmem [shape: bf16[128,2560], index: 0, kind: input, shape index: {}]   ;;  %s3695_s1 = inlined_call_operand.vmem [shape: bf16[2560,512], index: 1, kind: input, shape index: {}]   ;;  %s3696_s2 = inlined_call_operand.vmem [shape: f32[1,512], index: 2, kind: input, shape index: {}]   ;;  %s3697_s3 = inlined_call_operand.vmem [shape: f32[128,512], index: 3, kind: output, shape index: {}]  }
   0x1   :  { %s2956_s14 = smov 0   ;;  %s2958_s15 = smov 0  }
   0x2   :  { %s2960_s16 = smov 0  }
   0x3 LB: > { %s25_s17 = sadd.s32 1, %s2925_s15  ;;  %p48_p1 = scmp.ne.s32.totalorder %s2917_s13, %s2913_s12  ;;  %s2929_s16 = sphi %s2960_s16, %s13_s16   ;;  %s2925_s15 = sphi %s2958_s15, %s3701_s15   ;;  %s2921_s14 = sphi %s2956_s14, %s3700_s14   ;;  %s2917_s13 = sphi %s2954_s13, %s3699_s13   ;;  %s2913_s12 = sphi %s2952_s12, %s3698_s12  }
   0x4   : > { %p26_p0 = scmp.ge.s32.totalorder %s25_s17, 5  ;;  %p49_p2 = scmp.eq.s32.totalorder %s2929_s16, 0 }
   0x5   : > { %s41_s19 = sadd.s32 1, %s2917_s13  ;;  %p2433_p5 = scmp.ge.s32.totalorder %s2929_s16, 5 }
   0x6   : > { %s3703_s17 = smov (%p26_p0, %s25_s17), 0  ;;  %p50_p3 = por %p49_p2, %p48_p1 }
   0x7   : > { %s37_s18 = ssub.s32 %s2925_s15, %s3703_s17  ;;  %164 = sbr.rel (%p2433_p5) target bundleno = 32 (0x20), region = 20 }
   0x8   : > { %p39_p4 = scmp.eq.s32.totalorder %s37_s18, 0 }
   0xa   : > { %s2987_s20 = scalar_select %p39_p4, %s2917_s13, %s41_s19  }
   0xc   : > { %167 = sbr.rel (!%p50_p3) target bundleno = 32 (0x20), region = 24  ;;  %s169_s21 = sand.u32 (%p50_p3), 1, %s2917_s13  }
   0xd   : > { %s2608_s22 = sshll.u32 (%p50_p3), %s2925_s15, 4  ;;  %s2434_s23 = sshll.u32 (%p50_p3), %s169_s21, 8 }
   0xe   : > { %s2995_s26 = scalar_lea.vmem (%p50_p3), %s3694_s0, %s2608_s22  ;;  %s3000_s27 = scalar_lea.vmem (%p50_p3), [#allocation3], %s2434_s23 }
   0xf   : > { %v190_v0 = vld [vmem:[%s2995_s26] sm:$0xff] (%p50_p3)  ;;  %v192_v1 = vld [vmem:[%s2995_s26 + $0x8] sm:$0xff] (%p50_p3)  ;;  %v194_v2 = vld [vmem:[%s2995_s26 + $0x50] sm:$0xff] (%p50_p3) }
  0x10   : > { %191 = vst [vmem:[%s3000_s27] sm:$0xff] (%p50_p3), %v190_v0  ;;  %193 = vst [vmem:[%s3000_s27 + $0x8] sm:$0xff] (%p50_p3), %v192_v1  ;;  %v196_v3 = vld [vmem:[%s2995_s26 + $0x58] sm:$0xff] (%p50_p3)  ;;  %v198_v4 = vld [vmem:[%s2995_s26 + $0xa0] sm:$0xff] (%p50_p3) }
  0x11   : > { %195 = vst [vmem:[%s3000_s27 + $0x10] sm:$0xff] %v194_v2  ;;  %v200_v5 = vld [vmem:[%s2995_s26 + $0xa8] sm:$0xff]  ;;  %197 = vst [vmem:[%s3000_s27 + $0x18] sm:$0xff] %v196_v3  ;;  %v202_v6 = vld [vmem:[%s2995_s26 + $0xf0] sm:$0xff] }
  0x12   : > { %199 = vst [vmem:[%s3000_s27 + $0x20] sm:$0xff] %v198_v4  ;;  %201 = vst [vmem:[%s3000_s27 + $0x28] sm:$0xff] %v200_v5  ;;  %v204_v7 = vld [vmem:[%s2995_s26 + $0xf8] sm:$0xff]  ;;  %v206_v8 = vld [vmem:[%s2995_s26 + $0x140] sm:$0xff] }
  0x13   : > { %203 = vst [vmem:[%s3000_s27 + $0x30] sm:$0xff] %v202_v6  ;;  %205 = vst [vmem:[%s3000_s27 + $0x38] sm:$0xff] %v204_v7  ;;  %v208_v9 = vld [vmem:[%s2995_s26 + $0x148] sm:$0xff]  ;;  %v210_v10 = vld [vmem:[%s2995_s26 + $0x190] sm:$0xff] }
  0x14   : > { %207 = vst [vmem:[%s3000_s27 + $0x40] sm:$0xff] %v206_v8  ;;  %v212_v11 = vld [vmem:[%s2995_s26 + $0x198] sm:$0xff]  ;;  %209 = vst [vmem:[%s3000_s27 + $0x48] sm:$0xff] %v208_v9  ;;  %v214_v12 = vld [vmem:[%s2995_s26 + $0x1e0] sm:$0xff] }
  0x15   : > { %211 = vst [vmem:[%s3000_s27 + $0x50] sm:$0xff] %v210_v10  ;;  %213 = vst [vmem:[%s3000_s27 + $0x58] sm:$0xff] %v212_v11  ;;  %v216_v13 = vld [vmem:[%s2995_s26 + $0x1e8] sm:$0xff]  ;;  %v218_v14 = vld [vmem:[%s2995_s26 + $0x230] sm:$0xff] }
  0x16   : > { %215 = vst [vmem:[%s3000_s27 + $0x60] sm:$0xff] %v214_v12  ;;  %217 = vst [vmem:[%s3000_s27 + $0x68] sm:$0xff] %v216_v13  ;;  %v220_v15 = vld [vmem:[%s2995_s26 + $0x238] sm:$0xff]  ;;  %v222_v16 = vld [vmem:[%s2995_s26 + $0x280] sm:$0xff] }
  0x17   : > { %219 = vst [vmem:[%s3000_s27 + $0x70] sm:$0xff] %v218_v14  ;;  %v224_v17 = vld [vmem:[%s2995_s26 + $0x288] sm:$0xff]  ;;  %221 = vst [vmem:[%s3000_s27 + $0x78] sm:$0xff] %v220_v15  ;;  %v226_v18 = vld [vmem:[%s2995_s26 + $0x2d0] sm:$0xff] }
  0x18   : > { %223 = vst [vmem:[%s3000_s27 + $0x80] sm:$0xff] %v222_v16  ;;  %225 = vst [vmem:[%s3000_s27 + $0x88] sm:$0xff] %v224_v17  ;;  %v228_v19 = vld [vmem:[%s2995_s26 + $0x2d8] sm:$0xff]  ;;  %v230_v20 = vld [vmem:[%s2995_s26 + $0x320] sm:$0xff] }
  0x19   : > { %227 = vst [vmem:[%s3000_s27 + $0x90] sm:$0xff] %v226_v18  ;;  %229 = vst [vmem:[%s3000_s27 + $0x98] sm:$0xff] %v228_v19  ;;  %v232_v21 = vld [vmem:[%s2995_s26 + $0x328] sm:$0xff]  ;;  %v234_v22 = vld [vmem:[%s2995_s26 + $0x370] sm:$0xff] }
  0x1a   : > { %231 = vst [vmem:[%s3000_s27 + $0xa0] sm:$0xff] %v230_v20  ;;  %v236_v23 = vld [vmem:[%s2995_s26 + $0x378] sm:$0xff]  ;;  %233 = vst [vmem:[%s3000_s27 + $0xa8] sm:$0xff] %v232_v21  ;;  %v238_v24 = vld [vmem:[%s2995_s26 + $0x3c0] sm:$0xff] }
  0x1b   : > { %235 = vst [vmem:[%s3000_s27 + $0xb0] sm:$0xff] %v234_v22  ;;  %237 = vst [vmem:[%s3000_s27 + $0xb8] sm:$0xff] %v236_v23  ;;  %v240_v25 = vld [vmem:[%s2995_s26 + $0x3c8] sm:$0xff]  ;;  %v242_v26 = vld [vmem:[%s2995_s26 + $0x410] sm:$0xff] }
  0x1c   : > { %239 = vst [vmem:[%s3000_s27 + $0xc0] sm:$0xff] %v238_v24  ;;  %241 = vst [vmem:[%s3000_s27 + $0xc8] sm:$0xff] %v240_v25  ;;  %v244_v27 = vld [vmem:[%s2995_s26 + $0x418] sm:$0xff]  ;;  %v246_v28 = vld [vmem:[%s2995_s26 + $0x460] sm:$0xff] }
  0x1d   : > { %243 = vst [vmem:[%s3000_s27 + $0xd0] sm:$0xff] %v242_v26  ;;  %v248_v29 = vld [vmem:[%s2995_s26 + $0x468] sm:$0xff]  ;;  %245 = vst [vmem:[%s3000_s27 + $0xd8] sm:$0xff] %v244_v27  ;;  %v250_v30 = vld [vmem:[%s2995_s26 + $0x4b0] sm:$0xff] }
  0x1e   : > { %247 = vst [vmem:[%s3000_s27 + $0xe0] sm:$0xff] %v246_v28  ;;  %249 = vst [vmem:[%s3000_s27 + $0xe8] sm:$0xff] %v248_v29  ;;  %v252_v31 = vld [vmem:[%s2995_s26 + $0x4b8] sm:$0xff] }
  0x1f   : > { %251 = vst [vmem:[%s3000_s27 + $0xf0] sm:$0xff] %v250_v30  ;;  %253 = vst [vmem:[%s3000_s27 + $0xf8] sm:$0xff] %v252_v31 }
  0x20 PF: > { %p2437_p6 = scmp.ge.s32.totalorder %s2929_s16, 1  ;;  %p273_p7 = scmp.lt.s32.totalorder %s2929_s16, 6 }
  0x22   : > { %p274_p8 = pnand %p2437_p6, %p273_p7 }
  0x23   : > { %s280_s28 = sand.u32 (!%p274_p8), 1, %s2913_s12   ;;  %s2439_s29 = sshll.u32 (!%p274_p8), %s2921_s14, 6 }
  0x24   : > { %277 = sbr.rel (%p274_p8) target bundleno = 514 (0x202), region = 51  ;;  %s2438_s30 = sshll.u32 (!%p274_p8), %s280_s28, 8 }
  0x25   : > { %p326_p9 = scmp.lt.s32.totalorder (!%p274_p8), %s2439_s29, 319  ;;  %s3072_s8 = scalar_lea.vmem (!%p274_p8), [#allocation3], %s2438_s30 }
  0x26   : > { %p2442_p10 = scmp.ne.s32.totalorder (!%p274_p8), %s2921_s14, 0 }
  0x29   : > { %s3705_s29 = smov (!%p326_p9, %s2439_s29), 319  ;;  %356 = sbr.rel (%p2442_p10) target bundleno = 79 (0x4f), region = 59 }
  0x2a   : > { %s2609_s4 = sshll.u32 %s3705_s29, 4 }
  0x2b   : > { %s3070_s7 = scalar_lea.vmem %s3695_s1, %s2609_s4 }
  0x2e   : > { %v2931_v32 = vmov 0.0  }
  0x2f   : > { %357 = vst [vmem:[#allocation2 + $0xb0] sm:$0xff] %v2931_v32  ;;  %358 = vst [vmem:[#allocation2 + $0x1b0] sm:$0xff] %v2931_v32 }
  0x30   : > { %359 = vst [vmem:[#allocation2 + $0xd8] sm:$0xff] %v2931_v32  ;;  %360 = vst [vmem:[#allocation2 + $0x18] sm:$0xff] %v2931_v32 }
  0x31   : > { %361 = vst [vmem:[#allocation2 + $0x50] sm:$0xff] %v2931_v32  ;;  %362 = vst [vmem:[#allocation2 + $0x168] sm:$0xff] %v2931_v32 }
  0x32   : > { %363 = vst [vmem:[#allocation2 + $0x130] sm:$0xff] %v2931_v32  ;;  %364 = vst [vmem:[#allocation2 + $0x48] sm:$0xff] %v2931_v32 }
  0x33   : > { %365 = vst [vmem:[#allocation2 + $0x180] sm:$0xff] %v2931_v32  ;;  %366 = vst [vmem:[#allocation2 + $0x110] sm:$0xff] %v2931_v32 }
  0x34   : > { %367 = vst [vmem:[#allocation2 + $0x118] sm:$0xff] %v2931_v32  ;;  %368 = vst [vmem:[#allocation2 + $0x98] sm:$0xff] %v2931_v32 }
  0x35   : > { %369 = vst [vmem:[#allocation2 + $0x120] sm:$0xff] %v2931_v32  ;;  %370 = vst [vmem:[#allocation2 + $0x150] sm:$0xff] %v2931_v32 }
  0x36   : > { %371 = vst [vmem:[#allocation2 + $0x108] sm:$0xff] %v2931_v32  ;;  %372 = vst [vmem:[#allocation2 + $0x60] sm:$0xff] %v2931_v32 }
  0x37   : > { %373 = vst [vmem:[#allocation2 + $0xe0] sm:$0xff] %v2931_v32  ;;  %374 = vst [vmem:[#allocation2 + $0x188] sm:$0xff] %v2931_v32 }
  0x38   : > { %375 = vst [vmem:[#allocation2 + $0x138] sm:$0xff] %v2931_v32  ;;  %376 = vst [vmem:[#allocation2 + $0x140] sm:$0xff] %v2931_v32 }
  0x39   : > { %377 = vst [vmem:[#allocation2 + $0x80] sm:$0xff] %v2931_v32  ;;  %378 = vst [vmem:[#allocation2 + $0x1a8] sm:$0xff] %v2931_v32 }
  0x3a   : > { %379 = vst [vmem:[#allocation2 + $0x1b8] sm:$0xff] %v2931_v32  ;;  %380 = vst [vmem:[#allocation2 + $0x28] sm:$0xff] %v2931_v32 }
  0x3b   : > { %381 = vst [vmem:[#allocation2 + $0x1e8] sm:$0xff] %v2931_v32  ;;  %382 = vst [vmem:[#allocation2 + $0xf8] sm:$0xff] %v2931_v32 }
  0x3c   : > { %383 = vst [vmem:[#allocation2 + $0x160] sm:$0xff] %v2931_v32  ;;  %384 = vst [vmem:[#allocation2 + $0x30] sm:$0xff] %v2931_v32 }
  0x3d   : > { %385 = vst [vmem:[#allocation2 + $0x1e0] sm:$0xff] %v2931_v32  ;;  %386 = vst [vmem:[#allocation2] sm:$0xff] %v2931_v32 }
  0x3e   : > { %387 = vst [vmem:[#allocation2 + $0xf0] sm:$0xff] %v2931_v32  ;;  %388 = vst [vmem:[#allocation2 + $0x8] sm:$0xff] %v2931_v32 }
  0x3f   : > { %389 = vst [vmem:[#allocation2 + $0x148] sm:$0xff] %v2931_v32  ;;  %390 = vst [vmem:[#allocation2 + $0x1d0] sm:$0xff] %v2931_v32 }
  0x40   : > { %391 = vst [vmem:[#allocation2 + $0x100] sm:$0xff] %v2931_v32  ;;  %392 = vst [vmem:[#allocation2 + $0xc8] sm:$0xff] %v2931_v32 }
  0x41   : > { %393 = vst [vmem:[#allocation2 + $0x40] sm:$0xff] %v2931_v32  ;;  %394 = vst [vmem:[#allocation2 + $0x1f8] sm:$0xff] %v2931_v32 }
  0x42   : > { %395 = vst [vmem:[#allocation2 + $0x20] sm:$0xff] %v2931_v32  ;;  %396 = vst [vmem:[#allocation2 + $0x128] sm:$0xff] %v2931_v32 }
  0x43   : > { %397 = vst [vmem:[#allocation2 + $0x1a0] sm:$0xff] %v2931_v32  ;;  %398 = vst [vmem:[#allocation2 + $0x1f0] sm:$0xff] %v2931_v32 }
  0x44   : > { %399 = vst [vmem:[#allocation2 + $0xe8] sm:$0xff] %v2931_v32  ;;  %400 = vst [vmem:[#allocation2 + $0x78] sm:$0xff] %v2931_v32 }
  0x45   : > { %401 = vst [vmem:[#allocation2 + $0x70] sm:$0xff] %v2931_v32  ;;  %402 = vst [vmem:[#allocation2 + $0x90] sm:$0xff] %v2931_v32 }
  0x46   : > { %403 = vst [vmem:[#allocation2 + $0x1d8] sm:$0xff] %v2931_v32  ;;  %404 = vst [vmem:[#allocation2 + $0xd0] sm:$0xff] %v2931_v32 }
  0x47   : > { %405 = vst [vmem:[#allocation2 + $0xb8] sm:$0xff] %v2931_v32  ;;  %406 = vst [vmem:[#allocation2 + $0x88] sm:$0xff] %v2931_v32 }
  0x48   : > { %407 = vst [vmem:[#allocation2 + $0xa8] sm:$0xff] %v2931_v32  ;;  %408 = vst [vmem:[#allocation2 + $0x1c8] sm:$0xff] %v2931_v32 }
  0x49   : > { %409 = vst [vmem:[#allocation2 + $0x170] sm:$0xff] %v2931_v32  ;;  %410 = vst [vmem:[#allocation2 + $0x178] sm:$0xff] %v2931_v32 }
  0x4a   : > { %411 = vst [vmem:[#allocation2 + $0x68] sm:$0xff] %v2931_v32  ;;  %412 = vst [vmem:[#allocation2 + $0x190] sm:$0xff] %v2931_v32 }
  0x4b   : > { %413 = vst [vmem:[#allocation2 + $0x198] sm:$0xff] %v2931_v32  ;;  %414 = vst [vmem:[#allocation2 + $0x38] sm:$0xff] %v2931_v32 }
  0x4c   : > { %415 = vst [vmem:[#allocation2 + $0xc0] sm:$0xff] %v2931_v32  ;;  %416 = vst [vmem:[#allocation2 + $0x1c0] sm:$0xff] %v2931_v32 }
  0x4d   : > { %417 = vst [vmem:[#allocation2 + $0x158] sm:$0xff] %v2931_v32  ;;  %418 = vst [vmem:[#allocation2 + $0x10] sm:$0xff] %v2931_v32 }
  0x4e   : > { %419 = vst [vmem:[#allocation2 + $0x58] sm:$0xff] %v2931_v32  ;;  %420 = vst [vmem:[#allocation2 + $0xa0] sm:$0xff] %v2931_v32 }
  0x4f PF: > { %v2651_v33 = vld [vmem:[%s3070_s7 + $0xe4] ss:$16 sps:$4 sm:$0xff]   ;;  %v2655_v35 = vld [vmem:[%s3070_s7 + $0xe0] ss:$16 sps:$4 sm:$0xff]   ;;  %v3193_v20 = vld [vmem:[%s3072_s8 + $0xc] ss:$16 sps:$4 sm:$0xff]  }
  0x50   : > { %v2653_v34 = vld [vmem:[%s3070_s7 + $0x2e4] ss:$16 sps:$4 sm:$0xff]   ;;  %1445 = vmatprep.subr.bf16.mxu0 %v2651_v33  ;;  %v2656_v36 = vld [vmem:[%s3070_s7 + $0x2e0] ss:$16 sps:$4 sm:$0xff]   ;;  %1590 = vmatprep.mubr.bf16.mxu1 %v3193_v20  ;;  %p2603_p11 = scmp.ne.s32.totalorder %s2921_s14, 4 }
  0x51   : > { %1558 = vmatprep.subr.bf16.mxu1 %v2653_v34  ;;  %v2657_v37 = vld [vmem:[%s3070_s7 + $0xc4] ss:$16 sps:$4 sm:$0xff]   ;;  %1446 = vmatpush1.bf16.msra.mxu0 %v2655_v35  ;;  %v2661_v39 = vld [vmem:[%s3070_s7 + $0xc0] ss:$16 sps:$4 sm:$0xff]   ;;  %v2755_v35 = vld [vmem:[%s3070_s7 + $0xec] ss:$16 sps:$4 sm:$0xff]  }
  0x52   : > { %1559 = vmatpush1.bf16.msra.mxu1 %v2656_v36  ;;  %v2659_v38 = vld [vmem:[%s3070_s7 + $0x2c4] ss:$16 sps:$4 sm:$0xff]   ;;  %1447 = vmatprep.subr.bf16.mxu0 %v2657_v37  ;;  %v2662_v40 = vld [vmem:[%s3070_s7 + $0x2c0] ss:$16 sps:$4 sm:$0xff]   ;;  %v2758_v36 = vld [vmem:[%s3070_s7 + $0x2ec] ss:$16 sps:$4 sm:$0xff]  }
  0x53   : > { %1560 = vmatprep.subr.bf16.mxu1 %v2659_v38  ;;  %v2663_v41 = vld [vmem:[%s3070_s7 + $0xa4] ss:$16 sps:$4 sm:$0xff]   ;;  %v2667_v43 = vld [vmem:[%s3070_s7 + $0xa0] ss:$16 sps:$4 sm:$0xff]   ;;  %v3217_v38 = vld [vmem:[%s3072_s8 + $0x8] ss:$16 sps:$4 sm:$0xff]  }
  0x54   : > { %v2665_v42 = vld [vmem:[%s3070_s7 + $0x2a4] ss:$16 sps:$4 sm:$0xff]   ;;  %v2668_v44 = vld [vmem:[%s3070_s7 + $0x2a0] ss:$16 sps:$4 sm:$0xff]  }
  0x55   : > { %1448 = vmatpush1.bf16.msra.mxu0 %v2661_v39  ;;  %v2669_v45 = vld [vmem:[%s3070_s7 + $0x84] ss:$16 sps:$4 sm:$0xff]   ;;  %v2673_v47 = vld [vmem:[%s3070_s7 + $0x80] ss:$16 sps:$4 sm:$0xff]   ;;  %v2753_v39 = vld [vmem:[%s3070_s7 + $0xe8] ss:$16 sps:$4 sm:$0xff]  }
  0x56   : > { %1561 = vmatpush1.bf16.msra.mxu1 %v2662_v40  ;;  %1449 = vmatprep.subr.bf16.mxu0 %v2663_v41  ;;  %v2671_v46 = vld [vmem:[%s3070_s7 + $0x284] ss:$16 sps:$4 sm:$0xff]   ;;  %v2674_v48 = vld [vmem:[%s3070_s7 + $0x280] ss:$16 sps:$4 sm:$0xff]   ;;  %v2756_v40 = vld [vmem:[%s3070_s7 + $0x2e8] ss:$16 sps:$4 sm:$0xff]  }
  0x57   : > { %1562 = vmatprep.subr.bf16.mxu1 %v2665_v42  ;;  %v2675_v49 = vld [vmem:[%s3070_s7 + $0x64] ss:$16 sps:$4 sm:$0xff]   ;;  %v2679_v51 = vld [vmem:[%s3070_s7 + $0x60] ss:$16 sps:$4 sm:$0xff]   ;;  %v2761_v41 = vld [vmem:[%s3070_s7 + $0xcc] ss:$16 sps:$4 sm:$0xff]  }
  0x58   : > { %v2677_v50 = vld [vmem:[%s3070_s7 + $0x264] ss:$16 sps:$4 sm:$0xff]   ;;  %v2680_v52 = vld [vmem:[%s3070_s7 + $0x260] ss:$16 sps:$4 sm:$0xff]   ;;  %v2764_v42 = vld [vmem:[%s3070_s7 + $0x2cc] ss:$16 sps:$4 sm:$0xff]  }
  0x59   : > { %1450 = vmatpush1.bf16.msra.mxu0 %v2667_v43  ;;  %v2681_v53 = vld [vmem:[%s3070_s7 + $0x44] ss:$16 sps:$4 sm:$0xff]   ;;  %v2685_v55 = vld [vmem:[%s3070_s7 + $0x40] ss:$16 sps:$4 sm:$0xff]  }
  0x5a   : > { %1563 = vmatpush1.bf16.msra.mxu1 %v2668_v44  ;;  %1451 = vmatprep.subr.bf16.mxu0 %v2669_v45  ;;  %v2683_v54 = vld [vmem:[%s3070_s7 + $0x244] ss:$16 sps:$4 sm:$0xff]   ;;  %v2686_v56 = vld [vmem:[%s3070_s7 + $0x240] ss:$16 sps:$4 sm:$0xff]   ;;  %v3227_v44 = vld [vmem:[%s3072_s8 + $0x2c] ss:$16 sps:$4 sm:$0xff]  }
  0x5b   : > { %1564 = vmatprep.subr.bf16.mxu1 %v2671_v46  ;;  %v2687_v57 = vld [vmem:[%s3070_s7 + $0x24] ss:$16 sps:$4 sm:$0xff]   ;;  %v2691_v59 = vld [vmem:[%s3070_s7 + $0x20] ss:$16 sps:$4 sm:$0xff]   ;;  %v2759_v45 = vld [vmem:[%s3070_s7 + $0xc8] ss:$16 sps:$4 sm:$0xff]  }
  0x5c   : > { %v2689_v58 = vld [vmem:[%s3070_s7 + $0x224] ss:$16 sps:$4 sm:$0xff]   ;;  %v2692_v60 = vld [vmem:[%s3070_s7 + $0x220] ss:$16 sps:$4 sm:$0xff]   ;;  %v2762_v46 = vld [vmem:[%s3070_s7 + $0x2c8] ss:$16 sps:$4 sm:$0xff]  }
  0x5d   : > { %1452 = vmatpush1.bf16.msra.mxu0 %v2673_v47  ;;  %v2693_v61 = vld [vmem:[%s3070_s7 + $0x4] ss:$16 sps:$4 sm:$0xff]   ;;  %v2697_v63 = vld [vmem:[%s3070_s7] ss:$16 sps:$4 sm:$0xff]   ;;  %v2773_v47 = vld [vmem:[%s3070_s7 + $0xac] ss:$16 sps:$4 sm:$0xff]  }
  0x5e   : > { %1565 = vmatpush1.bf16.msra.mxu1 %v2674_v48  ;;  %1453 = vmatprep.subr.bf16.mxu0 %v2675_v49  ;;  %v2695_v62 = vld [vmem:[%s3070_s7 + $0x204] ss:$16 sps:$4 sm:$0xff]   ;;  %v2698_v0 = vld [vmem:[%s3070_s7 + $0x200] ss:$16 sps:$4 sm:$0xff]   ;;  %v2776_v48 = vld [vmem:[%s3070_s7 + $0x2ac] ss:$16 sps:$4 sm:$0xff]  }
  0x5f   : > { %1566 = vmatprep.subr.bf16.mxu1 %v2677_v50  ;;  %v2699_v1 = vld [vmem:[%s3070_s7 + $0x1e4] ss:$16 sps:$4 sm:$0xff]   ;;  %v2703_v3 = vld [vmem:[%s3070_s7 + $0x1e0] ss:$16 sps:$4 sm:$0xff]   ;;  %v3241_v50 = vld [vmem:[%s3072_s8 + $0x28] ss:$16 sps:$4 sm:$0xff]  }
  0x60   : > { %v2701_v2 = vld [vmem:[%s3070_s7 + $0x3e4] ss:$16 sps:$4 sm:$0xff]   ;;  %v2704_v4 = vld [vmem:[%s3070_s7 + $0x3e0] ss:$16 sps:$4 sm:$0xff]  }
  0x61   : > { %1454 = vmatpush1.bf16.msra.mxu0 %v2679_v51  ;;  %v2705_v5 = vld [vmem:[%s3070_s7 + $0x1c4] ss:$16 sps:$4 sm:$0xff]   ;;  %v2709_v7 = vld [vmem:[%s3070_s7 + $0x1c0] ss:$16 sps:$4 sm:$0xff]   ;;  %v2771_v51 = vld [vmem:[%s3070_s7 + $0xa8] ss:$16 sps:$4 sm:$0xff]  }
  0x62   : > { %1567 = vmatpush1.bf16.msra.mxu1 %v2680_v52  ;;  %1455 = vmatprep.subr.bf16.mxu0 %v2681_v53  ;;  %v2707_v6 = vld [vmem:[%s3070_s7 + $0x3c4] ss:$16 sps:$4 sm:$0xff]   ;;  %v2710_v8 = vld [vmem:[%s3070_s7 + $0x3c0] ss:$16 sps:$4 sm:$0xff]   ;;  %v2774_v52 = vld [vmem:[%s3070_s7 + $0x2a8] ss:$16 sps:$4 sm:$0xff]  }
  0x63   : > { %1568 = vmatprep.subr.bf16.mxu1 %v2683_v54  ;;  %v2711_v9 = vld [vmem:[%s3070_s7 + $0x1a4] ss:$16 sps:$4 sm:$0xff]   ;;  %v2715_v11 = vld [vmem:[%s3070_s7 + $0x1a0] ss:$16 sps:$4 sm:$0xff]   ;;  %v2779_v53 = vld [vmem:[%s3070_s7 + $0x8c] ss:$16 sps:$4 sm:$0xff]  }
  0x64   : > { %v2713_v10 = vld [vmem:[%s3070_s7 + $0x3a4] ss:$16 sps:$4 sm:$0xff]   ;;  %v2716_v12 = vld [vmem:[%s3070_s7 + $0x3a0] ss:$16 sps:$4 sm:$0xff]   ;;  %v2782_v54 = vld [vmem:[%s3070_s7 + $0x28c] ss:$16 sps:$4 sm:$0xff]  }
  0x65   : > { %1456 = vmatpush1.bf16.msra.mxu0 %v2685_v55  ;;  %v2717_v13 = vld [vmem:[%s3070_s7 + $0x184] ss:$16 sps:$4 sm:$0xff]   ;;  %v2721_v15 = vld [vmem:[%s3070_s7 + $0x180] ss:$16 sps:$4 sm:$0xff]  }
  0x66   : > { %1569 = vmatpush1.bf16.msra.mxu1 %v2686_v56  ;;  %1457 = vmatprep.subr.bf16.mxu0 %v2687_v57  ;;  %v2719_v14 = vld [vmem:[%s3070_s7 + $0x384] ss:$16 sps:$4 sm:$0xff]   ;;  %v2722_v16 = vld [vmem:[%s3070_s7 + $0x380] ss:$16 sps:$4 sm:$0xff]   ;;  %v3251_v56 = vld [vmem:[%s3072_s8 + $0x4c] ss:$16 sps:$4 sm:$0xff]  }
  0x67   : > { %1570 = vmatprep.subr.bf16.mxu1 %v2689_v58  ;;  %v2723_v17 = vld [vmem:[%s3070_s7 + $0x164] ss:$16 sps:$4 sm:$0xff]   ;;  %v2727_v21 = vld [vmem:[%s3070_s7 + $0x160] ss:$16 sps:$4 sm:$0xff]   ;;  %v2777_v57 = vld [vmem:[%s3070_s7 + $0x88] ss:$16 sps:$4 sm:$0xff]  }
  0x68   : > { %v3189_v18 = vld [vmem:[%s3072_s8 + $0x4] ss:$16 sps:$4 sm:$0xff]   ;;  %v2728_v22 = vld [vmem:[%s3070_s7 + $0x360] ss:$16 sps:$4 sm:$0xff]   ;;  %v2780_v58 = vld [vmem:[%s3070_s7 + $0x288] ss:$16 sps:$4 sm:$0xff]  }
  0x69   : > { %1458 = vmatpush1.bf16.msra.mxu0 %v2691_v59  ;;  %v2725_v19 = vld [vmem:[%s3070_s7 + $0x364] ss:$16 sps:$4 sm:$0xff]   ;;  %1477 = vmatprep.mubr.bf16.mxu0 %v3189_v18  ;;  %v2733_v25 = vld [vmem:[%s3070_s7 + $0x140] ss:$16 sps:$4 sm:$0xff]   ;;  %v2791_v59 = vld [vmem:[%s3070_s7 + $0x6c] ss:$16 sps:$4 sm:$0xff]  }
  0x6a   : > { %1571 = vmatpush1.bf16.msra.mxu1 %v2692_v60  ;;  %1459 = vmatprep.subr.bf16.mxu0 %v2693_v61  ;;  %v2729_v23 = vld [vmem:[%s3070_s7 + $0x144] ss:$16 sps:$4 sm:$0xff]   ;;  %v2734_v26 = vld [vmem:[%s3070_s7 + $0x340] ss:$16 sps:$4 sm:$0xff]   ;;  %v2794_v60 = vld [vmem:[%s3070_s7 + $0x26c] ss:$16 sps:$4 sm:$0xff]  }
  0x6b   : > { %1572 = vmatprep.subr.bf16.mxu1 %v2695_v62  ;;  %v2731_v24 = vld [vmem:[%s3070_s7 + $0x344] ss:$16 sps:$4 sm:$0xff]   ;;  %v2739_v29 = vld [vmem:[%s3070_s7 + $0x120] ss:$16 sps:$4 sm:$0xff]   ;;  %v3265_v62 = vld [vmem:[%s3072_s8 + $0x48] ss:$16 sps:$4 sm:$0xff]  }
  0x6c   : > { %v2735_v27 = vld [vmem:[%s3070_s7 + $0x124] ss:$16 sps:$4 sm:$0xff]   ;;  %v2740_v30 = vld [vmem:[%s3070_s7 + $0x320] ss:$16 sps:$4 sm:$0xff]  }
  0x6d   : > { %1460 = vmatpush1.bf16.msra.mxu0 %v2697_v63  ;;  %v2737_v28 = vld [vmem:[%s3070_s7 + $0x324] ss:$16 sps:$4 sm:$0xff]   ;;  %v2745_v33 = vld [vmem:[%s3070_s7 + $0x100] ss:$16 sps:$4 sm:$0xff]   ;;  %v2789_v63 = vld [vmem:[%s3070_s7 + $0x68] ss:$16 sps:$4 sm:$0xff]  }
  0x6e   : > { %1573 = vmatpush1.bf16.msra.mxu1 %v2698_v0  ;;  %1461 = vmatprep.subr.bf16.mxu0 %v2699_v1  ;;  %v2741_v31 = vld [vmem:[%s3070_s7 + $0x104] ss:$16 sps:$4 sm:$0xff]   ;;  %v2746_v34 = vld [vmem:[%s3070_s7 + $0x300] ss:$16 sps:$4 sm:$0xff]   ;;  %v2792_v0 = vld [vmem:[%s3070_s7 + $0x268] ss:$16 sps:$4 sm:$0xff]  }
  0x6f   : > { %1574 = vmatprep.subr.bf16.mxu1 %v2701_v2  ;;  %v2743_v32 = vld [vmem:[%s3070_s7 + $0x304] ss:$16 sps:$4 sm:$0xff]   ;;  %v3214_v37 = vld [vmem:[%s3072_s8] ss:$16 sps:$4 sm:$0xff]   ;;  %v2797_v1 = vld [vmem:[%s3070_s7 + $0x4c] ss:$16 sps:$4 sm:$0xff]  }
  0x70   : > { %v3224_v43 = vld [vmem:[%s3072_s8 + $0x24] ss:$16 sps:$4 sm:$0xff]   ;;  %v3238_v49 = vld [vmem:[%s3072_s8 + $0x20] ss:$16 sps:$4 sm:$0xff]   ;;  %v2800_v2 = vld [vmem:[%s3070_s7 + $0x24c] ss:$16 sps:$4 sm:$0xff]  }
  0x71   : > { %1462 = vmatpush2.bf16.msra.mxu0 %v2703_v3  ;;  %v3248_v55 = vld [vmem:[%s3072_s8 + $0x44] ss:$16 sps:$4 sm:$0xff]   ;;  %v3262_v61 = vld [vmem:[%s3072_s8 + $0x40] ss:$16 sps:$4 sm:$0xff]  }
  0x72   : > { %1575 = vmatpush2.bf16.msra.mxu1 %v2704_v4  ;;  %1463 = vmatprep.subr.bf16.mxu0 %v2705_v5  ;;  %v3272_v3 = vld [vmem:[%s3072_s8 + $0x64] ss:$16 sps:$4 sm:$0xff]   ;;  %v3275_v4 = vld [vmem:[%s3072_s8 + $0x6c] ss:$16 sps:$4 sm:$0xff]   ;;  %v2795_v5 = vld [vmem:[%s3070_s7 + $0x48] ss:$16 sps:$4 sm:$0xff]  }
  0x73   : > { %1576 = vmatprep.subr.bf16.mxu1 %v2707_v6  ;;  %v2798_v6 = vld [vmem:[%s3070_s7 + $0x248] ss:$16 sps:$4 sm:$0xff]  }
  0x75   : > { %1464 = vmatpush2.bf16.msra.mxu0 %v2709_v7  ;;  %v2809_v7 = vld [vmem:[%s3070_s7 + $0x2c] ss:$16 sps:$4 sm:$0xff]  }
  0x76   : > { %1577 = vmatpush2.bf16.msra.mxu1 %v2710_v8  ;;  %1465 = vmatprep.subr.bf16.mxu0 %v2711_v9  ;;  %v2812_v8 = vld [vmem:[%s3070_s7 + $0x22c] ss:$16 sps:$4 sm:$0xff]   ;;  %v3286_v9 = vld [vmem:[%s3072_s8 + $0x60] ss:$16 sps:$4 sm:$0xff]  }
  0x77   : > { %1578 = vmatprep.subr.bf16.mxu1 %v2713_v10  ;;  %v3289_v10 = vld [vmem:[%s3072_s8 + $0x68] ss:$16 sps:$4 sm:$0xff]  }
  0x79   : > { %1466 = vmatpush2.bf16.msra.mxu0 %v2715_v11  ;;  %v2807_v11 = vld [vmem:[%s3070_s7 + $0x28] ss:$16 sps:$4 sm:$0xff]  }
  0x7a   : > { %1579 = vmatpush2.bf16.msra.mxu1 %v2716_v12  ;;  %1467 = vmatprep.subr.bf16.mxu0 %v2717_v13  ;;  %v2810_v12 = vld [vmem:[%s3070_s7 + $0x228] ss:$16 sps:$4 sm:$0xff]   ;;  %v2815_v13 = vld [vmem:[%s3070_s7 + $0xc] ss:$16 sps:$4 sm:$0xff]  }
  0x7b   : > { %1580 = vmatprep.subr.bf16.mxu1 %v2719_v14  ;;  %v2818_v14 = vld [vmem:[%s3070_s7 + $0x20c] ss:$16 sps:$4 sm:$0xff]  }
  0x7d   : > { %1468 = vmatpush2.bf16.msra.mxu0 %v2721_v15  ;;  %v3296_v15 = vld [vmem:[%s3072_s8 + $0x84] ss:$16 sps:$4 sm:$0xff]  }
  0x7e   : > { %1581 = vmatpush2.bf16.msra.mxu1 %v2722_v16  ;;  %1469 = vmatprep.subr.bf16.mxu0 %v2723_v17  ;;  %v3299_v16 = vld [vmem:[%s3072_s8 + $0x8c] ss:$16 sps:$4 sm:$0xff]   ;;  %v2813_v17 = vld [vmem:[%s3070_s7 + $0x8] ss:$16 sps:$4 sm:$0xff]  }
  0x7f   : > { %1582 = vmatprep.subr.bf16.mxu1 %v2725_v19  ;;  %v2816_v19 = vld [vmem:[%s3070_s7 + $0x208] ss:$16 sps:$4 sm:$0xff]  }
  0x81   : > { %1470 = vmatpush2.bf16.msra.mxu0 %v2727_v21  ;;  %v2827_v21 = vld [vmem:[%s3070_s7 + $0x1ec] ss:$16 sps:$4 sm:$0xff]  }
  0x82   : > { %1583 = vmatpush2.bf16.msra.mxu1 %v2728_v22  ;;  %1471 = vmatprep.subr.bf16.mxu0 %v2729_v23  ;;  %v2830_v22 = vld [vmem:[%s3070_s7 + $0x3ec] ss:$16 sps:$4 sm:$0xff]   ;;  %v3310_v23 = vld [vmem:[%s3072_s8 + $0x80] ss:$16 sps:$4 sm:$0xff]  }
  0x83   : > { %1584 = vmatprep.subr.bf16.mxu1 %v2731_v24  ;;  %v3313_v24 = vld [vmem:[%s3072_s8 + $0x88] ss:$16 sps:$4 sm:$0xff]  }
  0x85   : > { %1472 = vmatpush2.bf16.msra.mxu0 %v2733_v25  ;;  %v2825_v25 = vld [vmem:[%s3070_s7 + $0x1e8] ss:$16 sps:$4 sm:$0xff]  }
  0x86   : > { %1585 = vmatpush2.bf16.msra.mxu1 %v2734_v26  ;;  %1473 = vmatprep.subr.bf16.mxu0 %v2735_v27  ;;  %v2828_v26 = vld [vmem:[%s3070_s7 + $0x3e8] ss:$16 sps:$4 sm:$0xff]   ;;  %v2833_v27 = vld [vmem:[%s3070_s7 + $0x1cc] ss:$16 sps:$4 sm:$0xff]  }
  0x87   : > { %1586 = vmatprep.subr.bf16.mxu1 %v2737_v28  ;;  %v2836_v28 = vld [vmem:[%s3070_s7 + $0x3cc] ss:$16 sps:$4 sm:$0xff]  }
  0x89   : > { %1474 = vmatpush2.bf16.msra.mxu0 %v2739_v29  ;;  %v3320_v29 = vld [vmem:[%s3072_s8 + $0xa4] ss:$16 sps:$4 sm:$0xff]  }
  0x8a   : > { %1587 = vmatpush2.bf16.msra.mxu1 %v2740_v30  ;;  %1475 = vmatprep.subr.bf16.mxu0 %v2741_v31  ;;  %v3323_v30 = vld [vmem:[%s3072_s8 + $0xac] ss:$16 sps:$4 sm:$0xff]   ;;  %v2831_v31 = vld [vmem:[%s3070_s7 + $0x1c8] ss:$16 sps:$4 sm:$0xff]  }
  0x8b   : > { %1588 = vmatprep.subr.bf16.mxu1 %v2743_v32  ;;  %v2834_v32 = vld [vmem:[%s3070_s7 + $0x3c8] ss:$16 sps:$4 sm:$0xff]  }
  0x8d   : > { %1476 = vmatpush2.bf16.msra.mxu0 %v2745_v33  ;;  %v2845_v33 = vld [vmem:[%s3070_s7 + $0x1ac] ss:$16 sps:$4 sm:$0xff]  }
  0x8e   : > { %1589 = vmatpush2.bf16.msra.mxu1 %v2746_v34  ;;  %1671 = vmatprep.subr.bf16.mxu0 %v2755_v35  ;;  %v2848_v34 = vld [vmem:[%s3070_s7 + $0x3ac] ss:$16 sps:$4 sm:$0xff]   ;;  %v3334_v35 = vld [vmem:[%s3072_s8 + $0xa0] ss:$16 sps:$4 sm:$0xff]  }
  0x8f   : > { %1784 = vmatprep.subr.bf16.mxu1 %v2758_v36  ;;  %v3337_v36 = vld [vmem:[%s3072_s8 + $0xa8] ss:$16 sps:$4 sm:$0xff]  }
  0x90   : > { %1478 = vmatmul.mubr.bf16.vlgmr.msra.gmra.mxu0 %v3214_v37 }
  0x91   : > { %1591 = vmatmul.mubr.bf16.vlgmr.msra.gmra.mxu1 %v3217_v38  ;;  %1672 = vmatpush1.bf16.msra.mxu0 %v2753_v39  ;;  %v2843_v39 = vld [vmem:[%s3070_s7 + $0x1a8] ss:$16 sps:$4 sm:$0xff]  }
  0x92   : > { %1785 = vmatpush1.bf16.msra.mxu1 %v2756_v40  ;;  %1673 = vmatprep.subr.bf16.mxu0 %v2761_v41  ;;  %v2846_v40 = vld [vmem:[%s3070_s7 + $0x3a8] ss:$16 sps:$4 sm:$0xff]   ;;  %v2851_v41 = vld [vmem:[%s3070_s7 + $0x18c] ss:$16 sps:$4 sm:$0xff]  }
  0x93   : > { %1786 = vmatprep.subr.bf16.mxu1 %v2764_v42  ;;  %1487 = vmatprep.mubr.bf16.mxu0 %v3224_v43  ;;  %v2854_v42 = vld [vmem:[%s3070_s7 + $0x38c] ss:$16 sps:$4 sm:$0xff]  }
  0x94   : > { %1600 = vmatprep.mubr.bf16.mxu1 %v3227_v44 }
  0x95   : > { %1674 = vmatpush1.bf16.msra.mxu0 %v2759_v45  ;;  %v3344_v45 = vld [vmem:[%s3072_s8 + $0xc4] ss:$16 sps:$4 sm:$0xff]  }
  0x96   : > { %1787 = vmatpush1.bf16.msra.mxu1 %v2762_v46  ;;  %1675 = vmatprep.subr.bf16.mxu0 %v2773_v47  ;;  %v3347_v46 = vld [vmem:[%s3072_s8 + $0xcc] ss:$16 sps:$4 sm:$0xff]   ;;  %v2849_v47 = vld [vmem:[%s3070_s7 + $0x188] ss:$16 sps:$4 sm:$0xff]  }
  0x97   : > { %1788 = vmatprep.subr.bf16.mxu1 %v2776_v48  ;;  %v2852_v48 = vld [vmem:[%s3070_s7 + $0x388] ss:$16 sps:$4 sm:$0xff]  }
  0x98   : > { %1488 = vmatmul.mubr.bf16.gmra.mxu0 %v3238_v49 }
  0x99   : > { %1601 = vmatmul.mubr.bf16.gmra.mxu1 %v3241_v50  ;;  %1676 = vmatpush1.bf16.msra.mxu0 %v2771_v51  ;;  %v2863_v51 = vld [vmem:[%s3070_s7 + $0x16c] ss:$16 sps:$4 sm:$0xff]  }
  0x9a   : > { %1789 = vmatpush1.bf16.msra.mxu1 %v2774_v52  ;;  %1677 = vmatprep.subr.bf16.mxu0 %v2779_v53  ;;  %v2866_v52 = vld [vmem:[%s3070_s7 + $0x36c] ss:$16 sps:$4 sm:$0xff]   ;;  %v3358_v53 = vld [vmem:[%s3072_s8 + $0xc0] ss:$16 sps:$4 sm:$0xff]  }
  0x9b   : > { %1790 = vmatprep.subr.bf16.mxu1 %v2782_v54  ;;  %1497 = vmatprep.mubr.bf16.mxu0 %v3248_v55  ;;  %v3361_v54 = vld [vmem:[%s3072_s8 + $0xc8] ss:$16 sps:$4 sm:$0xff]  }
  0x9c   : > { %1610 = vmatprep.mubr.bf16.mxu1 %v3251_v56 }
  0x9d   : > { %1678 = vmatpush1.bf16.msra.mxu0 %v2777_v57  ;;  %v2861_v57 = vld [vmem:[%s3070_s7 + $0x168] ss:$16 sps:$4 sm:$0xff]  }
  0x9e   : > { %1791 = vmatpush1.bf16.msra.mxu1 %v2780_v58  ;;  %1679 = vmatprep.subr.bf16.mxu0 %v2791_v59  ;;  %v2864_v58 = vld [vmem:[%s3070_s7 + $0x368] ss:$16 sps:$4 sm:$0xff]   ;;  %v2869_v59 = vld [vmem:[%s3070_s7 + $0x14c] ss:$16 sps:$4 sm:$0xff]  }
  0x9f   : > { %1792 = vmatprep.subr.bf16.mxu1 %v2794_v60  ;;  %v2872_v60 = vld [vmem:[%s3070_s7 + $0x34c] ss:$16 sps:$4 sm:$0xff]  }
  0xa0   : > { %1498 = vmatmul.mubr.bf16.gmra.mxu0 %v3262_v61 }
  0xa1   : > { %1611 = vmatmul.mubr.bf16.gmra.mxu1 %v3265_v62  ;;  %1680 = vmatpush1.bf16.msra.mxu0 %v2789_v63  ;;  %v2873_v63 = vld [vmem:[%s3072_s8 + $0xe4] ss:$16 sps:$4 sm:$0xff]  }
  0xa2   : > { %1793 = vmatpush1.bf16.msra.mxu1 %v2792_v0  ;;  %1681 = vmatprep.subr.bf16.mxu0 %v2797_v1  ;;  %v2875_v0 = vld [vmem:[%s3072_s8 + $0xec] ss:$16 sps:$4 sm:$0xff]   ;;  %v2867_v1 = vld [vmem:[%s3070_s7 + $0x148] ss:$16 sps:$4 sm:$0xff]  }
  0xa3   : > { %1794 = vmatprep.subr.bf16.mxu1 %v2800_v2  ;;  %1507 = vmatprep.mubr.bf16.mxu0 %v3272_v3  ;;  %v2870_v2 = vld [vmem:[%s3070_s7 + $0x348] ss:$16 sps:$4 sm:$0xff]  }
  0xa4   : > { %1620 = vmatprep.mubr.bf16.mxu1 %v3275_v4 }
  0xa5   : > { %1682 = vmatpush1.bf16.msra.mxu0 %v2795_v5  ;;  %v2881_v5 = vld [vmem:[%s3070_s7 + $0x12c] ss:$16 sps:$4 sm:$0xff]  }
  0xa6   : > { %1795 = vmatpush1.bf16.msra.mxu1 %v2798_v6  ;;  %1683 = vmatprep.subr.bf16.mxu0 %v2809_v7  ;;  %v2884_v6 = vld [vmem:[%s3070_s7 + $0x32c] ss:$16 sps:$4 sm:$0xff]   ;;  %v2877_v7 = vld [vmem:[%s3072_s8 + $0xe0] ss:$16 sps:$4 sm:$0xff]  }
  0xa7   : > { %1796 = vmatprep.subr.bf16.mxu1 %v2812_v8  ;;  %v2878_v8 = vld [vmem:[%s3072_s8 + $0xe8] ss:$16 sps:$4 sm:$0xff]  }
  0xa8   : > { %1508 = vmatmul.mubr.bf16.gmra.mxu0 %v3286_v9 }
  0xa9   : > { %1621 = vmatmul.mubr.bf16.gmra.mxu1 %v3289_v10  ;;  %1684 = vmatpush1.bf16.msra.mxu0 %v2807_v11  ;;  %v2879_v11 = vld [vmem:[%s3070_s7 + $0x128] ss:$16 sps:$4 sm:$0xff]  }
  0xaa   : > { %1797 = vmatpush1.bf16.msra.mxu1 %v2810_v12  ;;  %1685 = vmatprep.subr.bf16.mxu0 %v2815_v13  ;;  %v2882_v12 = vld [vmem:[%s3070_s7 + $0x328] ss:$16 sps:$4 sm:$0xff]   ;;  %v2887_v13 = vld [vmem:[%s3070_s7 + $0x10c] ss:$16 sps:$4 sm:$0xff]  }
  0xab   : > { %1798 = vmatprep.subr.bf16.mxu1 %v2818_v14  ;;  %1517 = vmatprep.mubr.bf16.mxu0 %v3296_v15  ;;  %v2890_v14 = vld [vmem:[%s3070_s7 + $0x30c] ss:$16 sps:$4 sm:$0xff]  }
  0xac   : > { %1630 = vmatprep.mubr.bf16.mxu1 %v3299_v16 }
  0xad   : > { %1686 = vmatpush1.bf16.msra.mxu0 %v2813_v17  ;;  %v2885_v17 = vld [vmem:[%s3070_s7 + $0x108] ss:$16 sps:$4 sm:$0xff]  }
  0xae   : > { %1799 = vmatpush1.bf16.msra.mxu1 %v2816_v19  ;;  %1687 = vmatprep.subr.bf16.mxu0 %v2827_v21  ;;  %v2888_v19 = vld [vmem:[%s3070_s7 + $0x308] ss:$16 sps:$4 sm:$0xff]  }
  0xaf   : > { %1800 = vmatprep.subr.bf16.mxu1 %v2830_v22 }
  0xb0   : > { %1518 = vmatmul.mubr.bf16.gmra.mxu0 %v3310_v23 }
  0xb1   : > { %1631 = vmatmul.mubr.bf16.gmra.mxu1 %v3313_v24  ;;  %1688 = vmatpush2.bf16.msra.mxu0 %v2825_v25 }
  0xb2   : > { %1801 = vmatpush2.bf16.msra.mxu1 %v2828_v26  ;;  %1689 = vmatprep.subr.bf16.mxu0 %v2833_v27 }
  0xb3   : > { %1802 = vmatprep.subr.bf16.mxu1 %v2836_v28  ;;  %1527 = vmatprep.mubr.bf16.mxu0 %v3320_v29  ;;  %v430_v28 = vld [vmem:[#allocation2 + $0x110] sm:$0xff] }
  0xb4   : > { %1640 = vmatprep.mubr.bf16.mxu1 %v3323_v30 }
  0xb5   : > { %1690 = vmatpush2.bf16.msra.mxu0 %v2831_v31 }
  0xb6   : > { %1803 = vmatpush2.bf16.msra.mxu1 %v2834_v32  ;;  %1691 = vmatprep.subr.bf16.mxu0 %v2845_v33  ;;  %v433_v33 = vld [vmem:[#allocation2 + $0x120] sm:$0xff] }
  0xb7   : > { %1804 = vmatprep.subr.bf16.mxu1 %v2848_v34 }
  0xb8   : > { %1528 = vmatmul.mubr.bf16.gmra.mxu0 %v3334_v35 }
  0xb9   : > { %1641 = vmatmul.mubr.bf16.gmra.mxu1 %v3337_v36  ;;  %1692 = vmatpush2.bf16.msra.mxu0 %v2843_v39 }
  0xba   : > { %1805 = vmatpush2.bf16.msra.mxu1 %v2846_v40  ;;  %1693 = vmatprep.subr.bf16.mxu0 %v2851_v41  ;;  %v434_v40 = vld [vmem:[#allocation2 + $0x150] sm:$0xff] }
  0xbb   : > { %1806 = vmatprep.subr.bf16.mxu1 %v2854_v42  ;;  %1537 = vmatprep.mubr.bf16.mxu0 %v3344_v45 }
  0xbc   : > { %1650 = vmatprep.mubr.bf16.mxu1 %v3347_v46 }
  0xbd   : > { %1694 = vmatpush2.bf16.msra.mxu0 %v2849_v47  ;;  %v437_v47 = vld [vmem:[#allocation2 + $0xe0] sm:$0xff] }
  0xbe   : > { %1807 = vmatpush2.bf16.msra.mxu1 %v2852_v48  ;;  %1695 = vmatprep.subr.bf16.mxu0 %v2863_v51 }
  0xbf   : > { %1808 = vmatprep.subr.bf16.mxu1 %v2866_v52 }
  0xc0   : > { %1538 = vmatmul.mubr.bf16.gmra.mxu0 %v3358_v53 }
  0xc1   : > { %1651 = vmatmul.mubr.bf16.gmra.mxu1 %v3361_v54  ;;  %1696 = vmatpush2.bf16.msra.mxu0 %v2861_v57 }
  0xc2   : > { %1809 = vmatpush2.bf16.msra.mxu1 %v2864_v58  ;;  %1697 = vmatprep.subr.bf16.mxu0 %v2869_v59 }
  0xc3   : > { %1810 = vmatprep.subr.bf16.mxu1 %v2872_v60  ;;  %1547 = vmatprep.mubr.bf16.mxu0 %v2873_v63 }
  0xc4   : > { %1660 = vmatprep.mubr.bf16.mxu1 %v2875_v0 }
  0xc5   : > { %1698 = vmatpush2.bf16.msra.mxu0 %v2867_v1 }
  0xc6   : > { %1811 = vmatpush2.bf16.msra.mxu1 %v2870_v2  ;;  %1699 = vmatprep.subr.bf16.mxu0 %v2881_v5 }
  0xc7   : > { %1812 = vmatprep.subr.bf16.mxu1 %v2884_v6  ;;  %v442_v6 = vld [vmem:[#allocation2 + $0x1a8] sm:$0xff] }
  0xc8   : > { %1548 = vmatmul.mubr.bf16.gmra.mxu0 %v2877_v7 }
  0xc9   : > { %1661 = vmatmul.mubr.bf16.gmra.mxu1 %v2878_v8  ;;  %1700 = vmatpush2.bf16.msra.mxu0 %v2879_v11 }
  0xca   : > { %1813 = vmatpush2.bf16.msra.mxu1 %v2882_v12  ;;  %1701 = vmatprep.subr.bf16.mxu0 %v2887_v13  ;;  %v445_v13 = vld [vmem:[#allocation2 + $0x1e8] sm:$0xff] }
  0xcb   : > { %1814 = vmatprep.subr.bf16.mxu1 %v2890_v14  ;;  %1703 = vmatprep.mubr.bf16.mxu0 %v3189_v18 }
  0xcc   : > { %1816 = vmatprep.mubr.bf16.mxu1 %v3193_v20  ;;  %v421_v20 = vld [vmem:[#allocation2 + $0xb0] sm:$0xff] }
  0xcd   : > { %1702 = vmatpush2.bf16.msra.mxu0 %v2885_v17 }
  0xce   : > { %1815 = vmatpush2.bf16.msra.mxu1 %v2888_v19 }
  0xd0   : > { %1704 = vmatmul.mubr.bf16.vlgmr.msra.gmra.mxu0 %v3214_v37 }
  0xd1   : > { %1817 = vmatmul.mubr.bf16.vlgmr.msra.gmra.mxu1 %v3217_v38  ;;  %1713 = vmatprep.mubr.bf16.mxu0 %v3224_v43 }
  0xd2   : > { %1826 = vmatprep.mubr.bf16.mxu1 %v3227_v44  ;;  %v422_v44 = vld [vmem:[#allocation2 + $0x1b0] sm:$0xff] }
  0xd8   : > { %1714 = vmatmul.mubr.bf16.gmra.mxu0 %v3238_v49 }
  0xd9   : > { %1827 = vmatmul.mubr.bf16.gmra.mxu1 %v3241_v50  ;;  %1723 = vmatprep.mubr.bf16.mxu0 %v3248_v55 }
  0xda   : > { %1836 = vmatprep.mubr.bf16.mxu1 %v3251_v56 }
  0xe0   : > { %1724 = vmatmul.mubr.bf16.gmra.mxu0 %v3262_v61  ;;  %v425_v61 = vld [vmem:[#allocation2 + $0x50] sm:$0xff] }
  0xe1   : > { %1837 = vmatmul.mubr.bf16.gmra.mxu1 %v3265_v62  ;;  %1733 = vmatprep.mubr.bf16.mxu0 %v3272_v3 }
  0xe2   : > { %1846 = vmatprep.mubr.bf16.mxu1 %v3275_v4 }
  0xe8   : > { %1734 = vmatmul.mubr.bf16.gmra.mxu0 %v3286_v9 }
  0xe9   : > { %1847 = vmatmul.mubr.bf16.gmra.mxu1 %v3289_v10  ;;  %1743 = vmatprep.mubr.bf16.mxu0 %v3296_v15  ;;  %v426_v10 = vld [vmem:[#allocation2 + $0x168] sm:$0xff] }
  0xea   : > { %1856 = vmatprep.mubr.bf16.mxu1 %v3299_v16 }
  0xf0   : > { %1744 = vmatmul.mubr.bf16.gmra.mxu0 %v3310_v23  ;;  %v429_v23 = vld [vmem:[#allocation2 + $0x180] sm:$0xff] }
  0xf1   : > { %1857 = vmatmul.mubr.bf16.gmra.mxu1 %v3313_v24  ;;  %1753 = vmatprep.mubr.bf16.mxu0 %v3320_v29 }
  0xf2   : > { %1866 = vmatprep.mubr.bf16.mxu1 %v3323_v30 }
  0xf8   : > { %1754 = vmatmul.mubr.bf16.gmra.mxu0 %v3334_v35 }
  0xf9   : > { %1867 = vmatmul.mubr.bf16.gmra.mxu1 %v3337_v36  ;;  %1763 = vmatprep.mubr.bf16.mxu0 %v3344_v45 }
  0xfa   : > { %1876 = vmatprep.mubr.bf16.mxu1 %v3347_v46 }
 0x100   : > { %1764 = vmatmul.mubr.bf16.gmra.mxu0 %v3358_v53 }
 0x101   : > { %1877 = vmatmul.mubr.bf16.gmra.mxu1 %v3361_v54  ;;  %1773 = vmatprep.mubr.bf16.mxu0 %v2873_v63  ;;  %v438_v54 = vld [vmem:[#allocation2 + $0x188] sm:$0xff]  ;;  %v441_v63 = vld [vmem:[#allocation2 + $0x80] sm:$0xff] }
 0x102   : > { %1886 = vmatprep.mubr.bf16.mxu1 %v2875_v0 }
 0x108   : > { %1774 = vmatmul.mubr.bf16.gmra.mxu0 %v2877_v7 }
 0x109   : > { %1887 = vmatmul.mubr.bf16.gmra.mxu1 %v2878_v8 }
 0x150   : > { %v1479_v18 = vpop.f32.mrf.mxu0 }
 0x151   : > { %v1592_v37 = vpop.f32.mrf.mxu1 }
 0x152   : > { %v1593_v38 = vadd.f32 %v1592_v37, %v1479_v18  ;;  %v1481_v43 = vpop.f32.mrf.mxu0 }
 0x153   : > { %v1594_v49 = vpop.f32.mrf.mxu1 }
 0x154   : > { %v1897_v50 = vadd.f32 %v1593_v38, %v421_v20  ;;  %v1595_v55 = vadd.f32 %v1594_v49, %v1481_v43  ;;  %v1483_v56 = vpop.f32.mrf.mxu0  ;;  %v446_v20 = vld [vmem:[#allocation2 + $0xf8] sm:$0xff]  ;;  %v449_v49 = vld [vmem:[#allocation2 + $0x1e0] sm:$0xff] }
 0x155   : > { %v1596_v62 = vpop.f32.mrf.mxu1 }
 0x156   : > { %1961 = vst [vmem:[#allocation2 + $0xb0] sm:$0xff] %v1897_v50  ;;  %v1898_v3 = vadd.f32 %v1595_v55, %v422_v44  ;;  %v1597_v4 = vadd.f32 %v1596_v62, %v1483_v56  ;;  %v1485_v9 = vpop.f32.mrf.mxu0  ;;  %v450_v62 = vld [vmem:[#allocation2] sm:$0xff] }
 0x157   : > { %v1598_v15 = vpop.f32.mrf.mxu1 }
 0x158   : > { %1962 = vst [vmem:[#allocation2 + $0x1b0] sm:$0xff] %v1898_v3  ;;  %v1901_v16 = vadd.f32 %v1597_v4, %v425_v61  ;;  %v1599_v21 = vadd.f32 %v1598_v15, %v1485_v9  ;;  %v1489_v22 = vpop.f32.mrf.mxu0  ;;  %v453_v15 = vld [vmem:[#allocation2 + $0x148] sm:$0xff] }
 0x159   : > { %v1602_v24 = vpop.f32.mrf.mxu1 }
 0x15a   : > { %1965 = vst [vmem:[#allocation2 + $0x50] sm:$0xff] %v1901_v16  ;;  %v1902_v25 = vadd.f32 %v1599_v21, %v426_v10  ;;  %v1603_v26 = vadd.f32 %v1602_v24, %v1489_v22  ;;  %v1491_v27 = vpop.f32.mrf.mxu0  ;;  %v454_v24 = vld [vmem:[#allocation2 + $0x1d0] sm:$0xff] }
 0x15b   : > { %v1604_v29 = vpop.f32.mrf.mxu1 }
 0x15c   : > { %1966 = vst [vmem:[#allocation2 + $0x168] sm:$0xff] %v1902_v25  ;;  %v1905_v30 = vadd.f32 %v1603_v26, %v429_v23  ;;  %v1605_v31 = vadd.f32 %v1604_v29, %v1491_v27  ;;  %v1493_v32 = vpop.f32.mrf.mxu0  ;;  %v457_v29 = vld [vmem:[#allocation2 + $0x40] sm:$0xff] }
 0x15d   : > { %v1606_v34 = vpop.f32.mrf.mxu1 }
 0x15e   : > { %1969 = vst [vmem:[#allocation2 + $0x180] sm:$0xff] %v1905_v30  ;;  %v1906_v35 = vadd.f32 %v1605_v31, %v430_v28  ;;  %v1607_v36 = vadd.f32 %v1606_v34, %v1493_v32  ;;  %v1495_v39 = vpop.f32.mrf.mxu0  ;;  %v458_v34 = vld [vmem:[#allocation2 + $0x1f8] sm:$0xff] }
 0x15f   : > { %v1608_v41 = vpop.f32.mrf.mxu1 }
 0x160   : > { %1970 = vst [vmem:[#allocation2 + $0x110] sm:$0xff] %v1906_v35  ;;  %v1909_v42 = vadd.f32 %v1607_v36, %v433_v33  ;;  %v1609_v45 = vadd.f32 %v1608_v41, %v1495_v39  ;;  %v1499_v46 = vpop.f32.mrf.mxu0  ;;  %v461_v41 = vld [vmem:[#allocation2 + $0x1a0] sm:$0xff] }
 0x161   : > { %v1612_v48 = vpop.f32.mrf.mxu1 }
 0x162   : > { %1973 = vst [vmem:[#allocation2 + $0x120] sm:$0xff] %v1909_v42  ;;  %v1910_v51 = vadd.f32 %v1609_v45, %v434_v40  ;;  %v1613_v52 = vadd.f32 %v1612_v48, %v1499_v46  ;;  %v1501_v53 = vpop.f32.mrf.mxu0  ;;  %v462_v48 = vld [vmem:[#allocation2 + $0x1f0] sm:$0xff] }
 0x163   : > { %v1614_v57 = vpop.f32.mrf.mxu1 }
 0x164   : > { %1974 = vst [vmem:[#allocation2 + $0x150] sm:$0xff] %v1910_v51  ;;  %v1913_v58 = vadd.f32 %v1613_v52, %v437_v47  ;;  %v1615_v59 = vadd.f32 %v1614_v57, %v1501_v53  ;;  %v1503_v60 = vpop.f32.mrf.mxu0  ;;  %v465_v57 = vld [vmem:[#allocation2 + $0x70] sm:$0xff] }
 0x165   : > { %v1616_v0 = vpop.f32.mrf.mxu1 }
 0x166   : > { %1977 = vst [vmem:[#allocation2 + $0xe0] sm:$0xff] %v1913_v58  ;;  %v1914_v1 = vadd.f32 %v1615_v59, %v438_v54  ;;  %v1617_v2 = vadd.f32 %v1616_v0, %v1503_v60  ;;  %v1505_v5 = vpop.f32.mrf.mxu0  ;;  %v466_v0 = vld [vmem:[#allocation2 + $0x90] sm:$0xff] }
 0x167   : > { %v1618_v7 = vpop.f32.mrf.mxu1 }
 0x168   : > { %1978 = vst [vmem:[#allocation2 + $0x188] sm:$0xff] %v1914_v1  ;;  %v1917_v8 = vadd.f32 %v1617_v2, %v441_v63  ;;  %v1619_v11 = vadd.f32 %v1618_v7, %v1505_v5  ;;  %v1509_v12 = vpop.f32.mrf.mxu0  ;;  %v469_v7 = vld [vmem:[#allocation2 + $0xb8] sm:$0xff] }
 0x169   : > { %v1622_v14 = vpop.f32.mrf.mxu1 }
 0x16a   : > { %1981 = vst [vmem:[#allocation2 + $0x80] sm:$0xff] %v1917_v8  ;;  %v1918_v17 = vadd.f32 %v1619_v11, %v442_v6  ;;  %v1623_v19 = vadd.f32 %v1622_v14, %v1509_v12  ;;  %v1511_v18 = vpop.f32.mrf.mxu0  ;;  %v470_v14 = vld [vmem:[#allocation2 + $0x88] sm:$0xff] }
 0x16b   : > { %v1624_v37 = vpop.f32.mrf.mxu1 }
 0x16c   : > { %1982 = vst [vmem:[#allocation2 + $0x1a8] sm:$0xff] %v1918_v17  ;;  %v1921_v38 = vadd.f32 %v1623_v19, %v445_v13  ;;  %v1625_v43 = vadd.f32 %v1624_v37, %v1511_v18  ;;  %v1513_v44 = vpop.f32.mrf.mxu0  ;;  %v473_v37 = vld [vmem:[#allocation2 + $0x170] sm:$0xff] }
 0x16d   : > { %v1626_v50 = vpop.f32.mrf.mxu1 }
 0x16e   : > { %1985 = vst [vmem:[#allocation2 + $0x1e8] sm:$0xff] %v1921_v38  ;;  %v1922_v55 = vadd.f32 %v1625_v43, %v446_v20  ;;  %v1627_v56 = vadd.f32 %v1626_v50, %v1513_v44  ;;  %v1515_v61 = vpop.f32.mrf.mxu0  ;;  %v474_v50 = vld [vmem:[#allocation2 + $0x178] sm:$0xff] }
 0x16f   : > { %v1628_v3 = vpop.f32.mrf.mxu1 }
 0x170   : > { %1986 = vst [vmem:[#allocation2 + $0xf8] sm:$0xff] %v1922_v55  ;;  %v1925_v4 = vadd.f32 %v1627_v56, %v449_v49  ;;  %v1629_v9 = vadd.f32 %v1628_v3, %v1515_v61  ;;  %v1519_v10 = vpop.f32.mrf.mxu0  ;;  %v477_v3 = vld [vmem:[#allocation2 + $0x198] sm:$0xff] }
 0x171   : > { %v1632_v16 = vpop.f32.mrf.mxu1 }
 0x172   : > { %1989 = vst [vmem:[#allocation2 + $0x1e0] sm:$0xff] %v1925_v4  ;;  %v1926_v21 = vadd.f32 %v1629_v9, %v450_v62  ;;  %v1633_v22 = vadd.f32 %v1632_v16, %v1519_v10  ;;  %v1521_v23 = vpop.f32.mrf.mxu0  ;;  %v478_v16 = vld [vmem:[#allocation2 + $0x38] sm:$0xff] }
 0x173   : > { %v1634_v25 = vpop.f32.mrf.mxu1 }
 0x174   : > { %1990 = vst [vmem:[#allocation2] sm:$0xff] %v1926_v21  ;;  %v1929_v26 = vadd.f32 %v1633_v22, %v453_v15  ;;  %v1635_v27 = vadd.f32 %v1634_v25, %v1521_v23  ;;  %v1523_v28 = vpop.f32.mrf.mxu0  ;;  %v481_v25 = vld [vmem:[#allocation2 + $0x158] sm:$0xff] }
 0x175   : > { %v1636_v30 = vpop.f32.mrf.mxu1 }
 0x176   : > { %1993 = vst [vmem:[#allocation2 + $0x148] sm:$0xff] %v1929_v26  ;;  %v1930_v31 = vadd.f32 %v1635_v27, %v454_v24  ;;  %v1637_v32 = vadd.f32 %v1636_v30, %v1523_v28  ;;  %v1525_v33 = vpop.f32.mrf.mxu0  ;;  %v482_v30 = vld [vmem:[#allocation2 + $0x10] sm:$0xff] }
 0x177   : > { %v1638_v35 = vpop.f32.mrf.mxu1 }
 0x178   : > { %1994 = vst [vmem:[#allocation2 + $0x1d0] sm:$0xff] %v1930_v31  ;;  %v1933_v36 = vadd.f32 %v1637_v32, %v457_v29  ;;  %v1639_v39 = vadd.f32 %v1638_v35, %v1525_v33  ;;  %v1529_v40 = vpop.f32.mrf.mxu0  ;;  %v423_v35 = vld [vmem:[#allocation2 + $0xd8] sm:$0xff] }
 0x179   : > { %v1642_v42 = vpop.f32.mrf.mxu1 }
 0x17a   : > { %1997 = vst [vmem:[#allocation2 + $0x40] sm:$0xff] %v1933_v36  ;;  %v1934_v45 = vadd.f32 %v1639_v39, %v458_v34  ;;  %v1643_v46 = vadd.f32 %v1642_v42, %v1529_v40  ;;  %v1531_v47 = vpop.f32.mrf.mxu0  ;;  %v424_v42 = vld [vmem:[#allocation2 + $0x18] sm:$0xff] }
 0x17b   : > { %v1644_v51 = vpop.f32.mrf.mxu1 }
 0x17c   : > { %1998 = vst [vmem:[#allocation2 + $0x1f8] sm:$0xff] %v1934_v45  ;;  %v1937_v52 = vadd.f32 %v1643_v46, %v461_v41  ;;  %v1645_v53 = vadd.f32 %v1644_v51, %v1531_v47  ;;  %v1533_v54 = vpop.f32.mrf.mxu0  ;;  %v427_v51 = vld [vmem:[#allocation2 + $0x130] sm:$0xff] }
 0x17d   : > { %v1646_v58 = vpop.f32.mrf.mxu1 }
 0x17e   : > { %2001 = vst [vmem:[#allocation2 + $0x1a0] sm:$0xff] %v1937_v52  ;;  %v1938_v59 = vadd.f32 %v1645_v53, %v462_v48  ;;  %v1647_v60 = vadd.f32 %v1646_v58, %v1533_v54  ;;  %v1535_v63 = vpop.f32.mrf.mxu0  ;;  %v428_v58 = vld [vmem:[#allocation2 + $0x48] sm:$0xff] }
 0x17f   : > { %v1648_v1 = vpop.f32.mrf.mxu1 }
 0x180   : > { %2002 = vst [vmem:[#allocation2 + $0x1f0] sm:$0xff] %v1938_v59  ;;  %v1941_v2 = vadd.f32 %v1647_v60, %v465_v57  ;;  %v1649_v5 = vadd.f32 %v1648_v1, %v1535_v63  ;;  %v1539_v6 = vpop.f32.mrf.mxu0  ;;  %v431_v1 = vld [vmem:[#allocation2 + $0x118] sm:$0xff] }
 0x181   : > { %v1652_v8 = vpop.f32.mrf.mxu1 }
 0x182   : > { %2005 = vst [vmem:[#allocation2 + $0x70] sm:$0xff] %v1941_v2  ;;  %v1942_v11 = vadd.f32 %v1649_v5, %v466_v0  ;;  %v1653_v12 = vadd.f32 %v1652_v8, %v1539_v6  ;;  %v1541_v13 = vpop.f32.mrf.mxu0  ;;  %v432_v8 = vld [vmem:[#allocation2 + $0x98] sm:$0xff] }
 0x183   : > { %v1654_v17 = vpop.f32.mrf.mxu1 }
 0x184   : > { %2006 = vst [vmem:[#allocation2 + $0x90] sm:$0xff] %v1942_v11  ;;  %v1945_v19 = vadd.f32 %v1653_v12, %v469_v7  ;;  %v1655_v18 = vadd.f32 %v1654_v17, %v1541_v13  ;;  %v1543_v20 = vpop.f32.mrf.mxu0  ;;  %v435_v17 = vld [vmem:[#allocation2 + $0x108] sm:$0xff] }
 0x185   : > { %v1656_v38 = vpop.f32.mrf.mxu1 }
 0x186   : > { %2009 = vst [vmem:[#allocation2 + $0xb8] sm:$0xff] %v1945_v19  ;;  %v1946_v43 = vadd.f32 %v1655_v18, %v470_v14  ;;  %v1657_v44 = vadd.f32 %v1656_v38, %v1543_v20  ;;  %v1545_v49 = vpop.f32.mrf.mxu0  ;;  %v436_v38 = vld [vmem:[#allocation2 + $0x60] sm:$0xff] }
 0x187   : > { %v1658_v55 = vpop.f32.mrf.mxu1 }
 0x188   : > { %2010 = vst [vmem:[#allocation2 + $0x88] sm:$0xff] %v1946_v43  ;;  %v1949_v56 = vadd.f32 %v1657_v44, %v473_v37  ;;  %v1659_v61 = vadd.f32 %v1658_v55, %v1545_v49  ;;  %v1549_v62 = vpop.f32.mrf.mxu0  ;;  %v439_v55 = vld [vmem:[#allocation2 + $0x138] sm:$0xff] }
 0x189   : > { %v1662_v4 = vpop.f32.mrf.mxu1 }
 0x18a   : > { %2013 = vst [vmem:[#allocation2 + $0x170] sm:$0xff] %v1949_v56  ;;  %v1950_v9 = vadd.f32 %v1659_v61, %v474_v50  ;;  %v1663_v10 = vadd.f32 %v1662_v4, %v1549_v62  ;;  %v1551_v15 = vpop.f32.mrf.mxu0  ;;  %v440_v4 = vld [vmem:[#allocation2 + $0x140] sm:$0xff] }
 0x18b   : > { %v1664_v21 = vpop.f32.mrf.mxu1 }
 0x18c   : > { %2014 = vst [vmem:[#allocation2 + $0x178] sm:$0xff] %v1950_v9  ;;  %v1953_v22 = vadd.f32 %v1663_v10, %v477_v3  ;;  %v1665_v23 = vadd.f32 %v1664_v21, %v1551_v15  ;;  %v1553_v24 = vpop.f32.mrf.mxu0  ;;  %v443_v21 = vld [vmem:[#allocation2 + $0x1b8] sm:$0xff] }
 0x18d   : > { %v1666_v26 = vpop.f32.mrf.mxu1 }
 0x18e   : > { %2017 = vst [vmem:[#allocation2 + $0x198] sm:$0xff] %v1953_v22  ;;  %v1954_v27 = vadd.f32 %v1665_v23, %v478_v16  ;;  %v1667_v28 = vadd.f32 %v1666_v26, %v1553_v24  ;;  %v1555_v29 = vpop.f32.mrf.mxu0  ;;  %v444_v26 = vld [vmem:[#allocation2 + $0x28] sm:$0xff] }
 0x18f   : > { %v1668_v31 = vpop.f32.mrf.mxu1 }
 0x190   : > { %2018 = vst [vmem:[#allocation2 + $0x38] sm:$0xff] %v1954_v27  ;;  %v1957_v32 = vadd.f32 %v1667_v28, %v481_v25  ;;  %v1669_v33 = vadd.f32 %v1668_v31, %v1555_v29  ;;  %v1705_v34 = vpop.f32.mrf.mxu0  ;;  %v447_v31 = vld [vmem:[#allocation2 + $0x160] sm:$0xff] }
 0x191   : > { %v1818_v36 = vpop.f32.mrf.mxu1 }
 0x192   : > { %2021 = vst [vmem:[#allocation2 + $0x158] sm:$0xff] %v1957_v32  ;;  %v1958_v39 = vadd.f32 %v1669_v33, %v482_v30  ;;  %v1819_v40 = vadd.f32 %v1818_v36, %v1705_v34  ;;  %v1707_v41 = vpop.f32.mrf.mxu0  ;;  %v448_v36 = vld [vmem:[#allocation2 + $0x30] sm:$0xff] }
 0x193   : > { %v1820_v45 = vpop.f32.mrf.mxu1 }
 0x194   : > { %2022 = vst [vmem:[#allocation2 + $0x10] sm:$0xff] %v1958_v39  ;;  %v1899_v46 = vadd.f32 %v1819_v40, %v423_v35  ;;  %v1821_v47 = vadd.f32 %v1820_v45, %v1707_v41  ;;  %v1709_v48 = vpop.f32.mrf.mxu0  ;;  %v451_v45 = vld [vmem:[#allocation2 + $0xf0] sm:$0xff] }
 0x195   : > { %v1822_v52 = vpop.f32.mrf.mxu1 }
 0x196   : > { %1963 = vst [vmem:[#allocation2 + $0xd8] sm:$0xff] %v1899_v46  ;;  %v1900_v53 = vadd.f32 %v1821_v47, %v424_v42  ;;  %v1823_v54 = vadd.f32 %v1822_v52, %v1709_v48  ;;  %v1711_v57 = vpop.f32.mrf.mxu0  ;;  %v452_v52 = vld [vmem:[#allocation2 + $0x8] sm:$0xff] }
 0x197   : > { %v1824_v59 = vpop.f32.mrf.mxu1 }
 0x198   : > { %1964 = vst [vmem:[#allocation2 + $0x18] sm:$0xff] %v1900_v53  ;;  %v1903_v60 = vadd.f32 %v1823_v54, %v427_v51  ;;  %v1825_v63 = vadd.f32 %v1824_v59, %v1711_v57  ;;  %v1715_v0 = vpop.f32.mrf.mxu0  ;;  %v455_v59 = vld [vmem:[#allocation2 + $0x100] sm:$0xff] }
 0x199   : > { %v1828_v2 = vpop.f32.mrf.mxu1 }
 0x19a   : > { %1967 = vst [vmem:[#allocation2 + $0x130] sm:$0xff] %v1903_v60  ;;  %v1904_v5 = vadd.f32 %v1825_v63, %v428_v58  ;;  %v1829_v6 = vadd.f32 %v1828_v2, %v1715_v0  ;;  %v1717_v7 = vpop.f32.mrf.mxu0  ;;  %v456_v2 = vld [vmem:[#allocation2 + $0xc8] sm:$0xff] }
 0x19b   : > { %v1830_v11 = vpop.f32.mrf.mxu1 }
 0x19c   : > { %1968 = vst [vmem:[#allocation2 + $0x48] sm:$0xff] %v1904_v5  ;;  %v1907_v12 = vadd.f32 %v1829_v6, %v431_v1  ;;  %v1831_v13 = vadd.f32 %v1830_v11, %v1717_v7  ;;  %v1719_v14 = vpop.f32.mrf.mxu0  ;;  %v459_v11 = vld [vmem:[#allocation2 + $0x20] sm:$0xff] }
 0x19d   : > { %v1832_v19 = vpop.f32.mrf.mxu1 }
 0x19e   : > { %1971 = vst [vmem:[#allocation2 + $0x118] sm:$0xff] %v1907_v12  ;;  %v1908_v18 = vadd.f32 %v1831_v13, %v432_v8  ;;  %v1833_v20 = vadd.f32 %v1832_v19, %v1719_v14  ;;  %v1721_v37 = vpop.f32.mrf.mxu0  ;;  %v460_v19 = vld [vmem:[#allocation2 + $0x128] sm:$0xff] }
 0x19f   : > { %v1834_v43 = vpop.f32.mrf.mxu1 }
 0x1a0   : > { %1972 = vst [vmem:[#allocation2 + $0x98] sm:$0xff] %v1908_v18  ;;  %v1911_v44 = vadd.f32 %v1833_v20, %v435_v17  ;;  %v1835_v49 = vadd.f32 %v1834_v43, %v1721_v37  ;;  %v1725_v50 = vpop.f32.mrf.mxu0  ;;  %v463_v43 = vld [vmem:[#allocation2 + $0xe8] sm:$0xff] }
 0x1a1   : > { %v1838_v56 = vpop.f32.mrf.mxu1 }
 0x1a2   : > { %1975 = vst [vmem:[#allocation2 + $0x108] sm:$0xff] %v1911_v44  ;;  %v1912_v61 = vadd.f32 %v1835_v49, %v436_v38  ;;  %v1839_v62 = vadd.f32 %v1838_v56, %v1725_v50  ;;  %v1727_v3 = vpop.f32.mrf.mxu0  ;;  %v464_v56 = vld [vmem:[#allocation2 + $0x78] sm:$0xff] }
 0x1a3   : > { %v1840_v9 = vpop.f32.mrf.mxu1 }
 0x1a4   : > { %1976 = vst [vmem:[#allocation2 + $0x60] sm:$0xff] %v1912_v61  ;;  %v1915_v10 = vadd.f32 %v1839_v62, %v439_v55  ;;  %v1841_v15 = vadd.f32 %v1840_v9, %v1727_v3  ;;  %v1729_v16 = vpop.f32.mrf.mxu0  ;;  %v467_v9 = vld [vmem:[#allocation2 + $0x1d8] sm:$0xff] }
 0x1a5   : > { %v1842_v22 = vpop.f32.mrf.mxu1 }
 0x1a6   : > { %1979 = vst [vmem:[#allocation2 + $0x138] sm:$0xff] %v1915_v10  ;;  %v1916_v23 = vadd.f32 %v1841_v15, %v440_v4  ;;  %v1843_v24 = vadd.f32 %v1842_v22, %v1729_v16  ;;  %v1731_v25 = vpop.f32.mrf.mxu0  ;;  %v468_v22 = vld [vmem:[#allocation2 + $0xd0] sm:$0xff] }
 0x1a7   : > { %v1844_v27 = vpop.f32.mrf.mxu1 }
 0x1a8   : > { %1980 = vst [vmem:[#allocation2 + $0x140] sm:$0xff] %v1916_v23  ;;  %v1919_v28 = vadd.f32 %v1843_v24, %v443_v21  ;;  %v1845_v29 = vadd.f32 %v1844_v27, %v1731_v25  ;;  %v1735_v30 = vpop.f32.mrf.mxu0  ;;  %v471_v27 = vld [vmem:[#allocation2 + $0xa8] sm:$0xff] }
 0x1a9   : > { %v1848_v32 = vpop.f32.mrf.mxu1 }
 0x1aa   : > { %1983 = vst [vmem:[#allocation2 + $0x1b8] sm:$0xff] %v1919_v28  ;;  %v1920_v33 = vadd.f32 %v1845_v29, %v444_v26  ;;  %v1849_v34 = vadd.f32 %v1848_v32, %v1735_v30  ;;  %v1737_v35 = vpop.f32.mrf.mxu0  ;;  %v472_v32 = vld [vmem:[#allocation2 + $0x1c8] sm:$0xff] }
 0x1ab   : > { %v1850_v39 = vpop.f32.mrf.mxu1 }
 0x1ac   : > { %1984 = vst [vmem:[#allocation2 + $0x28] sm:$0xff] %v1920_v33  ;;  %v1923_v40 = vadd.f32 %v1849_v34, %v447_v31  ;;  %v1851_v41 = vadd.f32 %v1850_v39, %v1737_v35  ;;  %v1739_v42 = vpop.f32.mrf.mxu0  ;;  %v475_v39 = vld [vmem:[#allocation2 + $0x68] sm:$0xff] }
 0x1ad   : > { %v1852_v46 = vpop.f32.mrf.mxu1 }
 0x1ae   : > { %1987 = vst [vmem:[#allocation2 + $0x160] sm:$0xff] %v1923_v40  ;;  %v1924_v47 = vadd.f32 %v1851_v41, %v448_v36  ;;  %v1853_v48 = vadd.f32 %v1852_v46, %v1739_v42  ;;  %v1741_v51 = vpop.f32.mrf.mxu0  ;;  %v476_v46 = vld [vmem:[#allocation2 + $0x190] sm:$0xff] }
 0x1af   : > { %v1854_v53 = vpop.f32.mrf.mxu1 }
 0x1b0   : > { %1988 = vst [vmem:[#allocation2 + $0x30] sm:$0xff] %v1924_v47  ;;  %v1927_v54 = vadd.f32 %v1853_v48, %v451_v45  ;;  %v1855_v57 = vadd.f32 %v1854_v53, %v1741_v51  ;;  %v1745_v58 = vpop.f32.mrf.mxu0  ;;  %v479_v53 = vld [vmem:[#allocation2 + $0xc0] sm:$0xff] }
 0x1b1   : > { %v1858_v60 = vpop.f32.mrf.mxu1 }
 0x1b2   : > { %1991 = vst [vmem:[#allocation2 + $0xf0] sm:$0xff] %v1927_v54  ;;  %v1928_v63 = vadd.f32 %v1855_v57, %v452_v52  ;;  %v1859_v0 = vadd.f32 %v1858_v60, %v1745_v58  ;;  %v1747_v1 = vpop.f32.mrf.mxu0  ;;  %v480_v60 = vld [vmem:[#allocation2 + $0x1c0] sm:$0xff] }
 0x1b3   : > { %v1860_v5 = vpop.f32.mrf.mxu1 }
 0x1b4   : > { %1992 = vst [vmem:[#allocation2 + $0x8] sm:$0xff] %v1928_v63  ;;  %v1931_v6 = vadd.f32 %v1859_v0, %v455_v59  ;;  %v1861_v7 = vadd.f32 %v1860_v5, %v1747_v1  ;;  %v1749_v8 = vpop.f32.mrf.mxu0  ;;  %v483_v5 = vld [vmem:[#allocation2 + $0x58] sm:$0xff] }
 0x1b5   : > { %v1862_v12 = vpop.f32.mrf.mxu1 }
 0x1b6   : > { %1995 = vst [vmem:[#allocation2 + $0x100] sm:$0xff] %v1931_v6  ;;  %v1932_v13 = vadd.f32 %v1861_v7, %v456_v2  ;;  %v1863_v14 = vadd.f32 %v1862_v12, %v1749_v8  ;;  %v1751_v17 = vpop.f32.mrf.mxu0  ;;  %v484_v12 = vld [vmem:[#allocation2 + $0xa0] sm:$0xff] }
 0x1b7   : > { %v1864_v18 = vpop.f32.mrf.mxu1 }
 0x1b8   : > { %1996 = vst [vmem:[#allocation2 + $0xc8] sm:$0xff] %v1932_v13  ;;  %v1935_v20 = vadd.f32 %v1863_v14, %v459_v11  ;;  %v1865_v37 = vadd.f32 %v1864_v18, %v1751_v17  ;;  %v1755_v38 = vpop.f32.mrf.mxu0 }
 0x1b9   : > { %v1868_v44 = vpop.f32.mrf.mxu1 }
 0x1ba   : > { %1999 = vst [vmem:[#allocation2 + $0x20] sm:$0xff] %v1935_v20  ;;  %v1936_v49 = vadd.f32 %v1865_v37, %v460_v19  ;;  %v1869_v50 = vadd.f32 %v1868_v44, %v1755_v38  ;;  %v1757_v55 = vpop.f32.mrf.mxu0 }
 0x1bb   : > { %v1870_v61 = vpop.f32.mrf.mxu1 }
 0x1bc   : > { %2000 = vst [vmem:[#allocation2 + $0x128] sm:$0xff] %v1936_v49  ;;  %v1939_v62 = vadd.f32 %v1869_v50, %v463_v43  ;;  %v1871_v3 = vadd.f32 %v1870_v61, %v1757_v55  ;;  %v1759_v4 = vpop.f32.mrf.mxu0 }
 0x1bd   : > { %v1872_v10 = vpop.f32.mrf.mxu1 }
 0x1be   : > { %2003 = vst [vmem:[#allocation2 + $0xe8] sm:$0xff] %v1939_v62  ;;  %v1940_v15 = vadd.f32 %v1871_v3, %v464_v56  ;;  %v1873_v16 = vadd.f32 %v1872_v10, %v1759_v4  ;;  %v1761_v21 = vpop.f32.mrf.mxu0 }
 0x1bf   : > { %v1874_v23 = vpop.f32.mrf.mxu1 }
 0x1c0   : > { %2004 = vst [vmem:[#allocation2 + $0x78] sm:$0xff] %v1940_v15  ;;  %v1943_v24 = vadd.f32 %v1873_v16, %v467_v9  ;;  %v1875_v25 = vadd.f32 %v1874_v23, %v1761_v21  ;;  %v1765_v26 = vpop.f32.mrf.mxu0 }
 0x1c1   : > { %v1878_v28 = vpop.f32.mrf.mxu1 }
 0x1c2   : > { %2007 = vst [vmem:[#allocation2 + $0x1d8] sm:$0xff] %v1943_v24  ;;  %v1944_v29 = vadd.f32 %v1875_v25, %v468_v22  ;;  %v1879_v30 = vadd.f32 %v1878_v28, %v1765_v26  ;;  %v1767_v31 = vpop.f32.mrf.mxu0 }
 0x1c3   : > { %v1880_v33 = vpop.f32.mrf.mxu1 }
 0x1c4   : > { %2008 = vst [vmem:[#allocation2 + $0xd0] sm:$0xff] %v1944_v29  ;;  %v1947_v34 = vadd.f32 %v1879_v30, %v471_v27  ;;  %v1881_v35 = vadd.f32 %v1880_v33, %v1767_v31  ;;  %v1769_v36 = vpop.f32.mrf.mxu0 }
 0x1c5   : > { %v1882_v40 = vpop.f32.mrf.mxu1 }
 0x1c6   : > { %2011 = vst [vmem:[#allocation2 + $0xa8] sm:$0xff] %v1947_v34  ;;  %v1948_v41 = vadd.f32 %v1881_v35, %v472_v32  ;;  %v1883_v42 = vadd.f32 %v1882_v40, %v1769_v36  ;;  %v1771_v45 = vpop.f32.mrf.mxu0 }
 0x1c7   : > { %v1884_v47 = vpop.f32.mrf.mxu1 }
 0x1c8   : > { %2012 = vst [vmem:[#allocation2 + $0x1c8] sm:$0xff] %v1948_v41  ;;  %v1951_v48 = vadd.f32 %v1883_v42, %v475_v39  ;;  %v1885_v51 = vadd.f32 %v1884_v47, %v1771_v45  ;;  %v1775_v52 = vpop.f32.mrf.mxu0 }
 0x1c9   : > { %v1888_v54 = vpop.f32.mrf.mxu1 }
 0x1ca   : > { %2015 = vst [vmem:[#allocation2 + $0x68] sm:$0xff] %v1951_v48  ;;  %v1952_v57 = vadd.f32 %v1885_v51, %v476_v46  ;;  %v1889_v58 = vadd.f32 %v1888_v54, %v1775_v52  ;;  %v1777_v59 = vpop.f32.mrf.mxu0 }
 0x1cb   : > { %v1890_v63 = vpop.f32.mrf.mxu1 }
 0x1cc   : > { %2016 = vst [vmem:[#allocation2 + $0x190] sm:$0xff] %v1952_v57  ;;  %v1955_v0 = vadd.f32 %v1889_v58, %v479_v53  ;;  %v1891_v1 = vadd.f32 %v1890_v63, %v1777_v59  ;;  %v1779_v2 = vpop.f32.mrf.mxu0 }
 0x1cd   : > { %v1892_v6 = vpop.f32.mrf.mxu1 }
 0x1ce   : > { %2019 = vst [vmem:[#allocation2 + $0xc0] sm:$0xff] %v1955_v0  ;;  %v1956_v7 = vadd.f32 %v1891_v1, %v480_v60  ;;  %v1893_v8 = vadd.f32 %v1892_v6, %v1779_v2  ;;  %v1781_v11 = vpop.f32.mrf.mxu0 }
 0x1cf   : > { %v1894_v13 = vpop.f32.mrf.mxu1 }
 0x1d0   : > { %2020 = vst [vmem:[#allocation2 + $0x1c0] sm:$0xff] %v1956_v7  ;;  %v1959_v14 = vadd.f32 %v1893_v8, %v483_v5  ;;  %v1895_v17 = vadd.f32 %v1894_v13, %v1781_v11  ;;  %2028 = sbr.rel (%p2603_p11) target bundleno = 514 (0x202), region = 63 }
 0x1d2   : > { %2023 = vst [vmem:[#allocation2 + $0x58] sm:$0xff] %v1959_v14  ;;  %v1960_v19 = vadd.f32 %v1895_v17, %v484_v12 }
 0x1d4   : > { %2024 = vst [vmem:[#allocation2 + $0xa0] sm:$0xff] %v1960_v19 }
 0x1d5   : > { %v2095_v18 = vlaneseq  ;;  %v2093_v37 = vld [vmem:[%s3696_s2] sm:$0xf]  ;;  %v2029_v38 = vld [vmem:[#allocation2 + $0xb0] sm:$0xff]  ;;  %v2031_v56 = vld [vmem:[#allocation2 + $0xd8] sm:$0xff] }
 0x1d6   : > { %v2030_v44 = vld [vmem:[#allocation2 + $0x1b0] sm:$0xff]  ;;  %v2032_v61 = vld [vmem:[#allocation2 + $0x18] sm:$0xff]  ;;  %v2034_v15 = vld [vmem:[#allocation2 + $0x168] sm:$0xff] }
 0x1d7   : > { %v2096_v20 = vshrl.u32 %v2095_v18, 7  ;;  %v2033_v62 = vld [vmem:[#allocation2 + $0x50] sm:$0xff]  ;;  %v2036_v21 = vld [vmem:[#allocation2 + $0x48] sm:$0xff]  ;;  %v2037_v26 = vld [vmem:[#allocation2 + $0x180] sm:$0xff] }
 0x1d8   : > { %v2035_v16 = vld [vmem:[#allocation2 + $0x130] sm:$0xff]  ;;  %v2039_v28 = vld [vmem:[#allocation2 + $0x118] sm:$0xff]  ;;  %v2041_v34 = vld [vmem:[#allocation2 + $0x120] sm:$0xff] }
 0x1d9   : > { %v2097_v43 = vsub.s32 0, %v2096_v20  ;;  %v2101_v49 = vsub.s32 1, %v2096_v20  ;;  %v2105_v50 = vsub.s32 2, %v2096_v20  ;;  %v2109_v55 = vsub.s32 3, %v2096_v20  ;;  %v2038_v27 = vld [vmem:[#allocation2 + $0x110] sm:$0xff]  ;;  %v2040_v33 = vld [vmem:[#allocation2 + $0x98] sm:$0xff] }
 0x1da   : > { %v2042_v35 = vld [vmem:[#allocation2 + $0x150] sm:$0xff]  ;;  %v2043_v42 = vld [vmem:[#allocation2 + $0x108] sm:$0xff]  ;;  %v2044_v45 = vld [vmem:[#allocation2 + $0x60] sm:$0xff] }
 0x1db   : > { %v3415_v3 = vrot.slane %v2093_v37, %v2097_v43  ;;  %v3417_v4 = vrot.slane %v2093_v37, %v2101_v49  ;;  %v3419_v9 = vrot.slane %v2093_v37, %v2105_v50  ;;  %v3421_v10 = vrot.slane %v2093_v37, %v2109_v55  ;;  %v2045_v58 = vld [vmem:[#allocation2 + $0xe0] sm:$0xff]  ;;  %v2046_v59 = vld [vmem:[#allocation2 + $0x188] sm:$0xff]  ;;  %v2047_v60 = vld [vmem:[#allocation2 + $0x138] sm:$0xff] }
 0x1dc   : > { %v2048_v5 = vld [vmem:[#allocation2 + $0x140] sm:$0xff]  ;;  %v2050_v7 = vld [vmem:[#allocation2 + $0x1a8] sm:$0xff]  ;;  %v2051_v14 = vld [vmem:[#allocation2 + $0x1b8] sm:$0xff] }
 0x1dd   : > { %v2115_v22 = vadd.f32 %v3415_v3, %v2029_v38  ;;  %v2116_v23 = vadd.f32 %v3417_v4, %v2030_v44  ;;  %v2117_v24 = vadd.f32 %v3419_v9, %v2031_v56  ;;  %v2118_v25 = vadd.f32 %v3421_v10, %v2032_v61  ;;  %v2049_v6 = vld [vmem:[#allocation2 + $0x80] sm:$0xff]  ;;  %v2052_v17 = vld [vmem:[#allocation2 + $0x28] sm:$0xff]  ;;  %v2054_v55 = vld [vmem:[#allocation2 + $0xf8] sm:$0xff] }
 0x1de   : > { %v2119_v29 = vadd.f32 %v3415_v3, %v2033_v62  ;;  %v2120_v30 = vadd.f32 %v3417_v4, %v2034_v15  ;;  %v2121_v31 = vadd.f32 %v3419_v9, %v2035_v16  ;;  %v2122_v32 = vadd.f32 %v3421_v10, %v2036_v21  ;;  %v2053_v50 = vld [vmem:[#allocation2 + $0x1e8] sm:$0xff]  ;;  %v2055_v56 = vld [vmem:[#allocation2 + $0x160] sm:$0xff]  ;;  %v2056_v21 = vld [vmem:[#allocation2 + $0x30] sm:$0xff] }
 0x1df   : > { %v2179_v36 = vmax.f32 %v2115_v22, 0.0  ;;  %v2180_v39 = vmax.f32 %v2116_v23, 0.0  ;;  %v2181_v40 = vmax.f32 %v2117_v24, 0.0  ;;  %v2182_v41 = vmax.f32 %v2118_v25, 0.0  ;;  %v2057_v22 = vld [vmem:[#allocation2 + $0x1e0] sm:$0xff] }
 0x1e0   : > { %v2183_v46 = vmax.f32 %v2119_v29, 0.0  ;;  %v2184_v47 = vmax.f32 %v2120_v30, 0.0  ;;  %v2185_v48 = vmax.f32 %v2121_v31, 0.0  ;;  %v2186_v51 = vmax.f32 %v2122_v32, 0.0  ;;  %v2058_v23 = vld [vmem:[#allocation2] sm:$0xff]  ;;  %v2060_v29 = vld [vmem:[#allocation2 + $0x8] sm:$0xff] }
 0x1e1   : > { %2243 = vst [vmem:[%s3697_s3] sm:$0xff] %v2179_v36  ;;  %2244 = vst [vmem:[%s3697_s3 + $0x8] sm:$0xff] %v2180_v39  ;;  %v2123_v52 = vadd.f32 %v3415_v3, %v2037_v26  ;;  %v2124_v53 = vadd.f32 %v3417_v4, %v2038_v27  ;;  %v2125_v54 = vadd.f32 %v3419_v9, %v2039_v28  ;;  %v2059_v28 = vld [vmem:[#allocation2 + $0xf0] sm:$0xff] }
 0x1e2   : > { %2245 = vst [vmem:[%s3697_s3 + $0x10] sm:$0xff] %v2181_v40  ;;  %2246 = vst [vmem:[%s3697_s3 + $0x18] sm:$0xff] %v2182_v41  ;;  %v2126_v57 = vadd.f32 %v3421_v10, %v2040_v33  ;;  %v2127_v63 = vadd.f32 %v3415_v3, %v2041_v34  ;;  %v2128_v0 = vadd.f32 %v3417_v4, %v2042_v35  ;;  %v2061_v40 = vld [vmem:[#allocation2 + $0x148] sm:$0xff]  ;;  %v2062_v41 = vld [vmem:[#allocation2 + $0x1d0] sm:$0xff] }
 0x1e3   : > { %2247 = vst [vmem:[%s3697_s3 + $0x20] sm:$0xff] %v2183_v46  ;;  %2248 = vst [vmem:[%s3697_s3 + $0x28] sm:$0xff] %v2184_v47  ;;  %v2129_v1 = vadd.f32 %v3419_v9, %v2043_v42  ;;  %v2130_v2 = vadd.f32 %v3421_v10, %v2044_v45  ;;  %v2187_v8 = vmax.f32 %v2123_v52, 0.0  ;;  %v2188_v11 = vmax.f32 %v2124_v53, 0.0  ;;  %v2063_v42 = vld [vmem:[#allocation2 + $0x100] sm:$0xff]  ;;  %v2066_v53 = vld [vmem:[#allocation2 + $0x1f8] sm:$0xff] }
 0x1e4   : > { %2249 = vst [vmem:[%s3697_s3 + $0x30] sm:$0xff] %v2185_v48  ;;  %2250 = vst [vmem:[%s3697_s3 + $0x38] sm:$0xff] %v2186_v51  ;;  %v2189_v12 = vmax.f32 %v2125_v54, 0.0  ;;  %v2190_v13 = vmax.f32 %v2126_v57, 0.0  ;;  %v2191_v19 = vmax.f32 %v2127_v63, 0.0  ;;  %v2192_v18 = vmax.f32 %v2128_v0, 0.0 }
 0x1e5   : > { %v2193_v20 = vmax.f32 %v2129_v1, 0.0  ;;  %v2194_v37 = vmax.f32 %v2130_v2, 0.0  ;;  %2251 = vst [vmem:[%s3697_s3 + $0x40] sm:$0xff] %v2187_v8  ;;  %2252 = vst [vmem:[%s3697_s3 + $0x48] sm:$0xff] %v2188_v11  ;;  %v2131_v38 = vadd.f32 %v3415_v3, %v2045_v58  ;;  %v2132_v43 = vadd.f32 %v3417_v4, %v2046_v59  ;;  %v2064_v51 = vld [vmem:[#allocation2 + $0xc8] sm:$0xff]  ;;  %v2065_v52 = vld [vmem:[#allocation2 + $0x40] sm:$0xff] }
 0x1e6   : > { %2253 = vst [vmem:[%s3697_s3 + $0x50] sm:$0xff] %v2189_v12  ;;  %2254 = vst [vmem:[%s3697_s3 + $0x58] sm:$0xff] %v2190_v13  ;;  %v2133_v44 = vadd.f32 %v3419_v9, %v2047_v60  ;;  %v2134_v49 = vadd.f32 %v3421_v10, %v2048_v5  ;;  %v2135_v61 = vadd.f32 %v3415_v3, %v2049_v6  ;;  %v2067_v60 = vld [vmem:[#allocation2 + $0x20] sm:$0xff]  ;;  %v2068_v63 = vld [vmem:[#allocation2 + $0x128] sm:$0xff] }
 0x1e7   : > { %2255 = vst [vmem:[%s3697_s3 + $0x60] sm:$0xff] %v2191_v19  ;;  %2256 = vst [vmem:[%s3697_s3 + $0x68] sm:$0xff] %v2192_v18  ;;  %v2136_v62 = vadd.f32 %v3417_v4, %v2050_v7  ;;  %v2137_v15 = vadd.f32 %v3419_v9, %v2051_v14  ;;  %v2138_v16 = vadd.f32 %v3421_v10, %v2052_v17  ;;  %v2195_v24 = vmax.f32 %v2131_v38, 0.0  ;;  %v2069_v12 = vld [vmem:[#allocation2 + $0x1a0] sm:$0xff]  ;;  %v2070_v13 = vld [vmem:[#allocation2 + $0x1f0] sm:$0xff] }
 0x1e8   : > { %2257 = vst [vmem:[%s3697_s3 + $0x70] sm:$0xff] %v2193_v20  ;;  %2258 = vst [vmem:[%s3697_s3 + $0x78] sm:$0xff] %v2194_v37  ;;  %v2196_v25 = vmax.f32 %v2132_v43, 0.0  ;;  %v2197_v26 = vmax.f32 %v2133_v44, 0.0  ;;  %v2198_v27 = vmax.f32 %v2134_v49, 0.0  ;;  %v2199_v30 = vmax.f32 %v2135_v61, 0.0 }
 0x1e9   : > { %v2200_v31 = vmax.f32 %v2136_v62, 0.0  ;;  %v2201_v32 = vmax.f32 %v2137_v15, 0.0  ;;  %v2202_v33 = vmax.f32 %v2138_v16, 0.0  ;;  %2259 = vst [vmem:[%s3697_s3 + $0x80] sm:$0xff] %v2195_v24  ;;  %v2139_v34 = vadd.f32 %v3415_v3, %v2053_v50  ;;  %v2071_v14 = vld [vmem:[#allocation2 + $0xe8] sm:$0xff]  ;;  %v2072_v37 = vld [vmem:[#allocation2 + $0x78] sm:$0xff] }
 0x1ea   : > { %2260 = vst [vmem:[%s3697_s3 + $0x88] sm:$0xff] %v2196_v25  ;;  %2261 = vst [vmem:[%s3697_s3 + $0x90] sm:$0xff] %v2197_v26  ;;  %v2140_v35 = vadd.f32 %v3417_v4, %v2054_v55  ;;  %v2141_v36 = vadd.f32 %v3419_v9, %v2055_v56  ;;  %v2142_v39 = vadd.f32 %v3421_v10, %v2056_v21  ;;  %v2073_v38 = vld [vmem:[#allocation2 + $0x70] sm:$0xff]  ;;  %v2075_v56 = vld [vmem:[#allocation2 + $0x1d8] sm:$0xff] }
 0x1eb   : > { %2262 = vst [vmem:[%s3697_s3 + $0x98] sm:$0xff] %v2198_v27  ;;  %2263 = vst [vmem:[%s3697_s3 + $0xa0] sm:$0xff] %v2199_v30  ;;  %v2143_v45 = vadd.f32 %v3415_v3, %v2057_v22  ;;  %v2144_v46 = vadd.f32 %v3417_v4, %v2058_v23  ;;  %v2145_v47 = vadd.f32 %v3419_v9, %v2059_v28  ;;  %v2203_v54 = vmax.f32 %v2139_v34, 0.0  ;;  %v2074_v43 = vld [vmem:[#allocation2 + $0x90] sm:$0xff]  ;;  %v2077_v26 = vld [vmem:[#allocation2 + $0xb8] sm:$0xff] }
 0x1ec   : > { %2264 = vst [vmem:[%s3697_s3 + $0xa8] sm:$0xff] %v2200_v31  ;;  %2265 = vst [vmem:[%s3697_s3 + $0xb0] sm:$0xff] %v2201_v32  ;;  %v2146_v48 = vadd.f32 %v3421_v10, %v2060_v29  ;;  %v2204_v57 = vmax.f32 %v2140_v35, 0.0  ;;  %v2205_v58 = vmax.f32 %v2141_v36, 0.0  ;;  %v2206_v59 = vmax.f32 %v2142_v39, 0.0  ;;  %v2076_v61 = vld [vmem:[#allocation2 + $0xd0] sm:$0xff] }
 0x1ed   : > { %2266 = vst [vmem:[%s3697_s3 + $0xb8] sm:$0xff] %v2202_v33  ;;  %v2207_v0 = vmax.f32 %v2143_v45, 0.0  ;;  %v2208_v1 = vmax.f32 %v2144_v46, 0.0  ;;  %v2209_v2 = vmax.f32 %v2145_v47, 0.0  ;;  %2267 = vst [vmem:[%s3697_s3 + $0xc0] sm:$0xff] %v2203_v54  ;;  %v2147_v6 = vadd.f32 %v3415_v3, %v2061_v40  ;;  %v2078_v27 = vld [vmem:[#allocation2 + $0x88] sm:$0xff] }
 0x1ee   : > { %v2210_v5 = vmax.f32 %v2146_v48, 0.0  ;;  %2268 = vst [vmem:[%s3697_s3 + $0xc8] sm:$0xff] %v2204_v57  ;;  %2269 = vst [vmem:[%s3697_s3 + $0xd0] sm:$0xff] %v2205_v58  ;;  %v2148_v7 = vadd.f32 %v3417_v4, %v2062_v41  ;;  %v2149_v8 = vadd.f32 %v3419_v9, %v2063_v42  ;;  %v2150_v11 = vadd.f32 %v3421_v10, %v2064_v51  ;;  %v2079_v28 = vld [vmem:[#allocation2 + $0xa8] sm:$0xff]  ;;  %v2081_v34 = vld [vmem:[#allocation2 + $0x170] sm:$0xff] }
 0x1ef   : > { %2270 = vst [vmem:[%s3697_s3 + $0xd8] sm:$0xff] %v2206_v59  ;;  %2271 = vst [vmem:[%s3697_s3 + $0xe0] sm:$0xff] %v2207_v0  ;;  %v2151_v17 = vadd.f32 %v3415_v3, %v2065_v52  ;;  %v2152_v19 = vadd.f32 %v3417_v4, %v2066_v53  ;;  %v2153_v18 = vadd.f32 %v3419_v9, %v2067_v60  ;;  %v2211_v44 = vmax.f32 %v2147_v6, 0.0  ;;  %v2080_v33 = vld [vmem:[#allocation2 + $0x1c8] sm:$0xff]  ;;  %v2082_v35 = vld [vmem:[#allocation2 + $0x178] sm:$0xff] }
 0x1f0   : > { %2272 = vst [vmem:[%s3697_s3 + $0xe8] sm:$0xff] %v2208_v1  ;;  %2273 = vst [vmem:[%s3697_s3 + $0xf0] sm:$0xff] %v2209_v2  ;;  %v2154_v20 = vadd.f32 %v3421_v10, %v2068_v63  ;;  %v2212_v49 = vmax.f32 %v2148_v7, 0.0  ;;  %v2213_v50 = vmax.f32 %v2149_v8, 0.0  ;;  %v2214_v55 = vmax.f32 %v2150_v11, 0.0  ;;  %v2083_v42 = vld [vmem:[#allocation2 + $0x68] sm:$0xff] }
 0x1f1   : > { %2274 = vst [vmem:[%s3697_s3 + $0xf8] sm:$0xff] %v2210_v5  ;;  %v2215_v62 = vmax.f32 %v2151_v17, 0.0  ;;  %v2216_v15 = vmax.f32 %v2152_v19, 0.0  ;;  %v2217_v16 = vmax.f32 %v2153_v18, 0.0  ;;  %2275 = vst [vmem:[%s3697_s3 + $0x100] sm:$0xff] %v2211_v44  ;;  %v2155_v22 = vadd.f32 %v3415_v3, %v2069_v12  ;;  %v2084_v45 = vld [vmem:[#allocation2 + $0x190] sm:$0xff] }
 0x1f2   : > { %v2218_v21 = vmax.f32 %v2154_v20, 0.0  ;;  %2276 = vst [vmem:[%s3697_s3 + $0x108] sm:$0xff] %v2212_v49  ;;  %2277 = vst [vmem:[%s3697_s3 + $0x110] sm:$0xff] %v2213_v50  ;;  %v2156_v23 = vadd.f32 %v3417_v4, %v2070_v13  ;;  %v2157_v24 = vadd.f32 %v3419_v9, %v2071_v14  ;;  %v2158_v25 = vadd.f32 %v3421_v10, %v2072_v37  ;;  %v2085_v58 = vld [vmem:[#allocation2 + $0x198] sm:$0xff]  ;;  %v2087_v60 = vld [vmem:[#allocation2 + $0xc0] sm:$0xff] }
 0x1f3   : > { %2278 = vst [vmem:[%s3697_s3 + $0x118] sm:$0xff] %v2214_v55  ;;  %2279 = vst [vmem:[%s3697_s3 + $0x120] sm:$0xff] %v2215_v62  ;;  %v2159_v29 = vadd.f32 %v3415_v3, %v2073_v38  ;;  %v2160_v30 = vadd.f32 %v3417_v4, %v2074_v43  ;;  %v2161_v31 = vadd.f32 %v3419_v9, %v2075_v56  ;;  %v2219_v36 = vmax.f32 %v2155_v22, 0.0  ;;  %v2086_v59 = vld [vmem:[#allocation2 + $0x38] sm:$0xff]  ;;  %v2088_v5 = vld [vmem:[#allocation2 + $0x1c0] sm:$0xff] }
 0x1f4   : > { %2280 = vst [vmem:[%s3697_s3 + $0x128] sm:$0xff] %v2216_v15  ;;  %2281 = vst [vmem:[%s3697_s3 + $0x130] sm:$0xff] %v2217_v16  ;;  %v2162_v32 = vadd.f32 %v3421_v10, %v2076_v61  ;;  %v2220_v39 = vmax.f32 %v2156_v23, 0.0  ;;  %v2221_v40 = vmax.f32 %v2157_v24, 0.0  ;;  %v2222_v41 = vmax.f32 %v2158_v25, 0.0  ;;  %v2089_v6 = vld [vmem:[#allocation2 + $0x158] sm:$0xff] }
 0x1f5   : > { %2282 = vst [vmem:[%s3697_s3 + $0x138] sm:$0xff] %v2218_v21  ;;  %v2223_v46 = vmax.f32 %v2159_v29, 0.0  ;;  %v2224_v47 = vmax.f32 %v2160_v30, 0.0  ;;  %v2225_v48 = vmax.f32 %v2161_v31, 0.0  ;;  %2283 = vst [vmem:[%s3697_s3 + $0x140] sm:$0xff] %v2219_v36  ;;  %v2163_v52 = vadd.f32 %v3415_v3, %v2077_v26  ;;  %v2090_v7 = vld [vmem:[#allocation2 + $0x10] sm:$0xff] }
 0x1f6   : > { %v2226_v51 = vmax.f32 %v2162_v32, 0.0  ;;  %2284 = vst [vmem:[%s3697_s3 + $0x148] sm:$0xff] %v2220_v39  ;;  %2285 = vst [vmem:[%s3697_s3 + $0x150] sm:$0xff] %v2221_v40  ;;  %v2164_v53 = vadd.f32 %v3417_v4, %v2078_v27  ;;  %v2165_v54 = vadd.f32 %v3419_v9, %v2079_v28  ;;  %v2166_v57 = vadd.f32 %v3421_v10, %v2080_v33  ;;  %v2091_v14 = vld [vmem:[#allocation2 + $0x58] sm:$0xff]  ;;  %v2092_v17 = vld [vmem:[#allocation2 + $0xa0] sm:$0xff] }
 0x1f7   : > { %2286 = vst [vmem:[%s3697_s3 + $0x158] sm:$0xff] %v2222_v41  ;;  %2287 = vst [vmem:[%s3697_s3 + $0x160] sm:$0xff] %v2223_v46  ;;  %v2167_v63 = vadd.f32 %v3415_v3, %v2081_v34  ;;  %v2168_v0 = vadd.f32 %v3417_v4, %v2082_v35  ;;  %v2169_v1 = vadd.f32 %v3419_v9, %v2083_v42  ;;  %v2227_v8 = vmax.f32 %v2163_v52, 0.0 }
 0x1f8   : > { %2288 = vst [vmem:[%s3697_s3 + $0x168] sm:$0xff] %v2224_v47  ;;  %2289 = vst [vmem:[%s3697_s3 + $0x170] sm:$0xff] %v2225_v48  ;;  %v2170_v2 = vadd.f32 %v3421_v10, %v2084_v45  ;;  %v2228_v11 = vmax.f32 %v2164_v53, 0.0  ;;  %v2229_v12 = vmax.f32 %v2165_v54, 0.0  ;;  %v2230_v13 = vmax.f32 %v2166_v57, 0.0 }
 0x1f9   : > { %2290 = vst [vmem:[%s3697_s3 + $0x178] sm:$0xff] %v2226_v51  ;;  %v2231_v19 = vmax.f32 %v2167_v63, 0.0  ;;  %v2232_v18 = vmax.f32 %v2168_v0, 0.0  ;;  %v2233_v20 = vmax.f32 %v2169_v1, 0.0  ;;  %2291 = vst [vmem:[%s3697_s3 + $0x180] sm:$0xff] %v2227_v8  ;;  %v2171_v38 = vadd.f32 %v3415_v3, %v2085_v58 }
 0x1fa   : > { %v2234_v37 = vmax.f32 %v2170_v2, 0.0  ;;  %2292 = vst [vmem:[%s3697_s3 + $0x188] sm:$0xff] %v2228_v11  ;;  %2293 = vst [vmem:[%s3697_s3 + $0x190] sm:$0xff] %v2229_v12  ;;  %v2172_v43 = vadd.f32 %v3417_v4, %v2086_v59  ;;  %v2173_v44 = vadd.f32 %v3419_v9, %v2087_v60  ;;  %v2174_v49 = vadd.f32 %v3421_v10, %v2088_v5 }
 0x1fb   : > { %2294 = vst [vmem:[%s3697_s3 + $0x198] sm:$0xff] %v2230_v13  ;;  %2295 = vst [vmem:[%s3697_s3 + $0x1a0] sm:$0xff] %v2231_v19  ;;  %v2175_v50 = vadd.f32 %v3415_v3, %v2089_v6  ;;  %v2176_v55 = vadd.f32 %v3417_v4, %v2090_v7  ;;  %v2177_v56 = vadd.f32 %v3419_v9, %v2091_v14  ;;  %v2235_v62 = vmax.f32 %v2171_v38, 0.0 }
 0x1fc   : > { %2296 = vst [vmem:[%s3697_s3 + $0x1a8] sm:$0xff] %v2232_v18  ;;  %2297 = vst [vmem:[%s3697_s3 + $0x1b0] sm:$0xff] %v2233_v20  ;;  %v2178_v61 = vadd.f32 %v3421_v10, %v2092_v17  ;;  %v2236_v15 = vmax.f32 %v2172_v43, 0.0  ;;  %v2237_v16 = vmax.f32 %v2173_v44, 0.0  ;;  %v2238_v21 = vmax.f32 %v2174_v49, 0.0 }
 0x1fd   : > { %2298 = vst [vmem:[%s3697_s3 + $0x1b8] sm:$0xff] %v2234_v37  ;;  %v2239_v22 = vmax.f32 %v2175_v50, 0.0  ;;  %v2240_v23 = vmax.f32 %v2176_v55, 0.0  ;;  %v2241_v24 = vmax.f32 %v2177_v56, 0.0  ;;  %2299 = vst [vmem:[%s3697_s3 + $0x1c0] sm:$0xff] %v2235_v62 }
 0x1fe   : > { %v2242_v25 = vmax.f32 %v2178_v61, 0.0  ;;  %2300 = vst [vmem:[%s3697_s3 + $0x1c8] sm:$0xff] %v2236_v15  ;;  %2301 = vst [vmem:[%s3697_s3 + $0x1d0] sm:$0xff] %v2237_v16 }
 0x1ff   : > { %2302 = vst [vmem:[%s3697_s3 + $0x1d8] sm:$0xff] %v2238_v21  ;;  %2303 = vst [vmem:[%s3697_s3 + $0x1e0] sm:$0xff] %v2239_v22 }
 0x200   : > { %2304 = vst [vmem:[%s3697_s3 + $0x1e8] sm:$0xff] %v2240_v23  ;;  %2305 = vst [vmem:[%s3697_s3 + $0x1f0] sm:$0xff] %v2241_v24 }
 0x201   : > { %2306 = vst [vmem:[%s3697_s3 + $0x1f8] sm:$0xff] %v2242_v25 }
 0x202 PF: > { %s13_s16 = sadd.s32 1, %s2929_s16   ;;  %s3698_s12 = smov %s2917_s13 }
 0x203   : > { %p10_p12 = scmp.ge.s32.totalorder %s13_s16, 7   ;;  %s3699_s13 = smov %s2987_s20 }
 0x204   : > { %s3700_s14 = smov %s2925_s15  ;;  %s3701_s15 = smov %s3703_s17 }
 0x205   :  { %12 = sbr.rel (!%p10_p12) target bundleno = 3 (0x3), region = 104 }

// kernel: kepla_forward.35
= control target key start
LH: loop header
LB: loop body
LE: loop exit
PB: predicated region body
PF: predicated region fallthrough
CT: control target
= control target key end

     0   :  { %s303_s0 = inlined_call_operand.vmem [shape: f32[128,128], index: 0, kind: input, shape index: {}]   ;;  %s304_s1 = inlined_call_operand.vmem [shape: f32[128,128], index: 1, kind: input, shape index: {}]   ;;  %s305_s2 = inlined_call_operand.vmem [shape: f32[128,128], index: 2, kind: input, shape index: {}]   ;;  %s306_s3 = inlined_call_operand.vmem [shape: f32[1,128], index: 3, kind: output, shape index: {}]  }
   0x1   :  { %v14_v0 = vld [vmem:[%s303_s0] sm:$0xff]  ;;  %v15_v1 = vld [vmem:[%s303_s0 + $0x8] sm:$0xff]  ;;  %v16_v2 = vld [vmem:[%s303_s0 + $0x10] sm:$0xff] }
   0x2   :  { %v30_v3 = vld [vmem:[%s304_s1] sm:$0xff]  ;;  %v31_v4 = vld [vmem:[%s304_s1 + $0x8] sm:$0xff]  ;;  %v17_v5 = vld [vmem:[%s303_s0 + $0x18] sm:$0xff] }
   0x3   :  { %v32_v6 = vld [vmem:[%s304_s1 + $0x10] sm:$0xff]  ;;  %v33_v7 = vld [vmem:[%s304_s1 + $0x18] sm:$0xff]  ;;  %v62_v8 = vmul.f32 %v30_v3, %v14_v0  ;;  %v18_v9 = vld [vmem:[%s303_s0 + $0x20] sm:$0xff]  ;;  %v63_v11 = vmul.f32 %v31_v4, %v15_v1 }
   0x4   :  { %v34_v10 = vld [vmem:[%s304_s1 + $0x20] sm:$0xff]  ;;  %v64_v12 = vmul.f32 %v32_v6, %v16_v2  ;;  %v65_v13 = vmul.f32 %v33_v7, %v17_v5  ;;  %v19_v14 = vld [vmem:[%s303_s0 + $0x28] sm:$0xff]  ;;  %v48_v18 = vld [vmem:[%s305_s2 + $0x10] sm:$0xff] }
   0x5   :  { %v35_v15 = vld [vmem:[%s304_s1 + $0x28] sm:$0xff]  ;;  %v46_v16 = vld [vmem:[%s305_s2] sm:$0xff]  ;;  %v49_v19 = vld [vmem:[%s305_s2 + $0x18] sm:$0xff]  ;;  %v66_v20 = vmul.f32 %v34_v10, %v18_v9 }
   0x6   :  { %v47_v17 = vld [vmem:[%s305_s2 + $0x8] sm:$0xff]  ;;  %v78_v21 = vsub.f32 %v62_v8, %v46_v16  ;;  %v20_v22 = vld [vmem:[%s303_s0 + $0x30] sm:$0xff]  ;;  %v50_v24 = vld [vmem:[%s305_s2 + $0x20] sm:$0xff]  ;;  %v80_v26 = vsub.f32 %v64_v12, %v48_v18  ;;  %v67_v27 = vmul.f32 %v35_v15, %v19_v14  ;;  %v81_v28 = vsub.f32 %v65_v13, %v49_v19 }
   0x7   :  { %v36_v23 = vld [vmem:[%s304_s1 + $0x30] sm:$0xff]  ;;  %v79_v25 = vsub.f32 %v63_v11, %v47_v17  ;;  %v21_v30 = vld [vmem:[%s303_s0 + $0x38] sm:$0xff]  ;;  %v51_v32 = vld [vmem:[%s305_s2 + $0x28] sm:$0xff]  ;;  %v82_v35 = vsub.f32 %v66_v20, %v50_v24 }
   0x8   :  { %v94_v29 = vand.u32 2147483647, %v78_v21  ;;  %v37_v31 = vld [vmem:[%s304_s1 + $0x38] sm:$0xff]  ;;  %v68_v34 = vmul.f32 %v36_v23, %v20_v22  ;;  %v96_v36 = vand.u32 2147483647, %v80_v26  ;;  %v22_v37 = vld [vmem:[%s303_s0 + $0x40] sm:$0xff]  ;;  %v83_v41 = vsub.f32 %v67_v27, %v51_v32 }
   0x9   :  { %v95_v33 = vand.u32 2147483647, %v79_v25  ;;  %v38_v38 = vld [vmem:[%s304_s1 + $0x40] sm:$0xff]  ;;  %v52_v39 = vld [vmem:[%s305_s2 + $0x30] sm:$0xff]  ;;  %v69_v40 = vmul.f32 %v37_v31, %v21_v30  ;;  %v97_v42 = vand.u32 2147483647, %v81_v28 }
   0xa   :  { %v23_v44 = vld [vmem:[%s303_s0 + $0x48] sm:$0xff]  ;;  %v53_v46 = vld [vmem:[%s305_s2 + $0x38] sm:$0xff]  ;;  %v70_v47 = vmul.f32 %v38_v38, %v22_v37  ;;  %v84_v48 = vsub.f32 %v68_v34, %v52_v39  ;;  %v98_v49 = vand.u32 2147483647, %v82_v35  ;;  %v24_v51 = vld [vmem:[%s303_s0 + $0x50] sm:$0xff] }
   0xb   :  { %v110_v43 = vadd.f32 %v95_v33, %v94_v29  ;;  %v39_v45 = vld [vmem:[%s304_s1 + $0x48] sm:$0xff]  ;;  %v40_v52 = vld [vmem:[%s304_s1 + $0x50] sm:$0xff]  ;;  %v54_v53 = vld [vmem:[%s305_s2 + $0x40] sm:$0xff]  ;;  %v85_v55 = vsub.f32 %v69_v40, %v53_v46  ;;  %v99_v56 = vand.u32 2147483647, %v83_v41 }
   0xc   :  { %v71_v54 = vmul.f32 %v39_v45, %v23_v44  ;;  %v25_v58 = vld [vmem:[%s303_s0 + $0x58] sm:$0xff]  ;;  %v55_v60 = vld [vmem:[%s305_s2 + $0x48] sm:$0xff]  ;;  %v72_v61 = vmul.f32 %v40_v52, %v24_v51  ;;  %v86_v62 = vsub.f32 %v70_v47, %v54_v53  ;;  %v100_v63 = vand.u32 2147483647, %v84_v48  ;;  %v26_v1 = vld [vmem:[%s303_s0 + $0x60] sm:$0xff] }
   0xd   :  { %v111_v50 = vadd.f32 %v110_v43, %v96_v36  ;;  %v41_v59 = vld [vmem:[%s304_s1 + $0x58] sm:$0xff]  ;;  %v42_v2 = vld [vmem:[%s304_s1 + $0x60] sm:$0xff]  ;;  %v56_v3 = vld [vmem:[%s305_s2 + $0x50] sm:$0xff]  ;;  %v101_v6 = vand.u32 2147483647, %v85_v55 }
   0xe   :  { %v73_v4 = vmul.f32 %v41_v59, %v25_v58  ;;  %v87_v5 = vsub.f32 %v71_v54, %v55_v60  ;;  %v27_v8 = vld [vmem:[%s303_s0 + $0x68] sm:$0xff]  ;;  %v57_v10 = vld [vmem:[%s305_s2 + $0x58] sm:$0xff]  ;;  %v74_v11 = vmul.f32 %v42_v2, %v26_v1  ;;  %v88_v12 = vsub.f32 %v72_v61, %v56_v3  ;;  %v28_v15 = vld [vmem:[%s303_s0 + $0x70] sm:$0xff] }
   0xf   :  { %v112_v57 = vadd.f32 %v111_v50, %v97_v42  ;;  %v43_v9 = vld [vmem:[%s304_s1 + $0x68] sm:$0xff]  ;;  %v102_v13 = vand.u32 2147483647, %v86_v62  ;;  %v44_v16 = vld [vmem:[%s304_s1 + $0x70] sm:$0xff]  ;;  %v58_v17 = vld [vmem:[%s305_s2 + $0x60] sm:$0xff] }
  0x10   :  { %v75_v18 = vmul.f32 %v43_v9, %v27_v8  ;;  %v89_v19 = vsub.f32 %v73_v4, %v57_v10  ;;  %v103_v20 = vand.u32 2147483647, %v87_v5  ;;  %v29_v22 = vld [vmem:[%s303_s0 + $0x78] sm:$0xff]  ;;  %v59_v24 = vld [vmem:[%s305_s2 + $0x68] sm:$0xff]  ;;  %v76_v25 = vmul.f32 %v44_v16, %v28_v15  ;;  %v60_v29 = vld [vmem:[%s305_s2 + $0x70] sm:$0xff] }
  0x11   :  { %v113_v0 = vadd.f32 %v112_v57, %v98_v49  ;;  %v45_v23 = vld [vmem:[%s304_s1 + $0x78] sm:$0xff]  ;;  %v90_v26 = vsub.f32 %v74_v11, %v58_v17  ;;  %v104_v27 = vand.u32 2147483647, %v88_v12 }
  0x12   :  { %v77_v30 = vmul.f32 %v45_v23, %v29_v22  ;;  %v91_v31 = vsub.f32 %v75_v18, %v59_v24  ;;  %v105_v32 = vand.u32 2147483647, %v89_v19  ;;  %v61_v34 = vld [vmem:[%s305_s2 + $0x78] sm:$0xff]  ;;  %v92_v35 = vsub.f32 %v76_v25, %v60_v29 }
  0x13   :  { %v114_v7 = vadd.f32 %v113_v0, %v99_v56  ;;  %v106_v36 = vand.u32 2147483647, %v90_v26 }
  0x14   :  { %v93_v38 = vsub.f32 %v77_v30, %v61_v34  ;;  %v107_v39 = vand.u32 2147483647, %v91_v31  ;;  %v108_v41 = vand.u32 2147483647, %v92_v35 }
  0x15   :  { %v115_v14 = vadd.f32 %v114_v7, %v100_v63 }
  0x16   :  { %v109_v43 = vand.u32 2147483647, %v93_v38 }
  0x17   :  { %v116_v21 = vadd.f32 %v115_v14, %v101_v6 }
  0x19   :  { %v117_v28 = vadd.f32 %v116_v21, %v102_v13 }
  0x1b   :  { %v118_v33 = vadd.f32 %v117_v28, %v103_v20 }
  0x1d   :  { %v119_v37 = vadd.f32 %v118_v33, %v104_v27 }
  0x1f   :  { %v120_v40 = vadd.f32 %v119_v37, %v105_v32 }
  0x21   :  { %v121_v42 = vadd.f32 %v120_v40, %v106_v36 }
  0x23   :  { %v122_v44 = vadd.f32 %v121_v42, %v107_v39 }
  0x25   :  { %v123_v45 = vadd.f32 %v122_v44, %v108_v41 }
  0x27   :  { %v124_v46 = vadd.f32 %v123_v45, %v109_v43 }
  0x29   :  { %v125_v47 = vrot.slane %v124_v46, 4 }
  0x2b   :  { %v126_v48 = vadd.f32 %v125_v47, %v124_v46 }
  0x2d   :  { %v127_v49 = vrot.slane %v126_v48, 2 }
  0x2f   :  { %v128_v50 = vadd.f32 %v127_v49, %v126_v48 }
  0x31   :  { %v129_v51 = vrot.slane %v128_v50, 1 }
  0x33   :  { %v130_v52 = vadd.f32 %v129_v51, %v128_v50 }
  0x35   :  { %131 = vst [vmem:[%s306_s3] sm:$0x1] %v130_v52 }

// kernel: kepla_forward.29
= control target key start
LH: loop header
LB: loop body
LE: loop exit
PB: predicated region body
PF: predicated region fallthrough
CT: control target
= control target key end

     0   :  { %v380_v0 = vmov 0.0   ;;  %vm381_vm0 = vmmov 0   ;;  %vm162_vm1 = vcmask 516096   ;;  %vm187_vm2 = vcmask 523264   ;;  %s441_s0 = inlined_call_operand.vmem [shape: bf16[2,64,128], index: 0, kind: input, shape index: {}]   ;;  %s442_s1 = inlined_call_operand.vmem [shape: bf16[2,1,128], index: 1, kind: input, shape index: {}]   ;;  %s443_s2 = inlined_call_operand.vmem [shape: f32[2,1,128], index: 2, kind: output, shape index: {}]  }
   0x1   :  { %310 = vmatprep.subr.bf16.mxu0 %v380_v0  ;;  %322 = vmatprep.subr.bf16.mxu1 %v380_v0  ;;  %v360_v1 = vld [vmem:[%s441_s0 + $0x18] sm:$0xff]   ;;  %v362_v3 = vld [vmem:[%s441_s0 + $0x10] sm:$0xff]   ;;  %v364_v5 = vld [vmem:[%s441_s0 + $0x8] sm:$0xff]  }
   0x2   :  { %v361_v2 = vld [vmem:[%s441_s0 + $0x38] sm:$0xff]   ;;  %318 = vmatprep.mubr.msk.bf16.mxu0 %vm381_vm0, %v380_v0  ;;  %330 = vmatprep.mubr.msk.bf16.mxu1 %vm381_vm0, %v380_v0  ;;  %v363_v4 = vld [vmem:[%s441_s0 + $0x30] sm:$0xff]   ;;  %v365_v6 = vld [vmem:[%s441_s0 + $0x28] sm:$0xff]  }
   0x3   :  { %311 = vmatpush3.bf16.xpose.msra.mxu0 %v360_v1  ;;  %323 = vmatpush3.bf16.xpose.msra.mxu1 %v361_v2  ;;  %v366_v7 = vld [vmem:[%s441_s0] sm:$0xff]  }
   0x4   :  { %312 = vmatprep.subr.bf16.mxu0 %v380_v0  ;;  %324 = vmatprep.subr.bf16.mxu1 %v380_v0  ;;  %v367_v8 = vld [vmem:[%s441_s0 + $0x20] sm:$0xff]  }
   0x5   :  { %v28_v9 = vld [vmem:[%s442_s1] sm:$0x1]  ;;  %v29_v10 = vld [vmem:[%s442_s1 + $0x1] sm:$0x1] }
   0xb   :  { %313 = vmatpush3.bf16.xpose.msra.mxu0 %v362_v3  ;;  %325 = vmatpush3.bf16.xpose.msra.mxu1 %v363_v4 }
   0xc   :  { %314 = vmatprep.subr.bf16.mxu0 %v380_v0  ;;  %326 = vmatprep.subr.bf16.mxu1 %v380_v0 }
  0x13   :  { %315 = vmatpush3.bf16.xpose.msra.mxu0 %v364_v5  ;;  %327 = vmatpush3.bf16.xpose.msra.mxu1 %v365_v6 }
  0x14   :  { %316 = vmatprep.subr.bf16.mxu0 %v380_v0  ;;  %328 = vmatprep.subr.bf16.mxu1 %v380_v0 }
  0x1b   :  { %317 = vmatpush3.bf16.xpose.msra.mxu0 %v366_v7  ;;  %329 = vmatpush3.bf16.xpose.msra.mxu1 %v367_v8 }
  0x1c   :  { %334 = vmatprep.subr.bf16.mxu0 %v380_v0  ;;  %346 = vmatprep.subr.bf16.mxu1 %v380_v0 }
  0x22   :  { %319 = vmatmul.mubr.bf16.vlgmr.msra.gmra.mxu0 %v28_v9  ;;  %331 = vmatmul.mubr.bf16.vlgmr.msra.gmra.mxu1 %v29_v10 }
  0x23   :  { %335 = vmatpush3.bf16.msra.mxu0 %v360_v1  ;;  %347 = vmatpush3.bf16.msra.mxu1 %v361_v2 }
  0x24   :  { %336 = vmatprep.subr.bf16.mxu0 %v380_v0  ;;  %348 = vmatprep.subr.bf16.mxu1 %v380_v0 }
  0x25   :  { %342 = vmatprep.mubr.msk.bf16.mxu0 %vm381_vm0, %v380_v0  ;;  %354 = vmatprep.mubr.msk.bf16.mxu1 %vm381_vm0, %v380_v0 }
  0x27   :  { %337 = vmatpush3.bf16.msra.mxu0 %v362_v3  ;;  %349 = vmatpush3.bf16.msra.mxu1 %v363_v4 }
  0x28   :  { %338 = vmatprep.subr.bf16.mxu0 %v380_v0  ;;  %350 = vmatprep.subr.bf16.mxu1 %v380_v0 }
  0x2b   :  { %339 = vmatpush3.bf16.msra.mxu0 %v364_v5  ;;  %351 = vmatpush3.bf16.msra.mxu1 %v365_v6 }
  0x2c   :  { %340 = vmatprep.subr.bf16.mxu0 %v380_v0  ;;  %352 = vmatprep.subr.bf16.mxu1 %v380_v0 }
  0x2f   :  { %341 = vmatpush3.bf16.msra.mxu0 %v366_v7  ;;  %353 = vmatpush3.bf16.msra.mxu1 %v367_v8 }
  0xe2   :  { %v88_v11 = vpop.f32.mrf.mxu0  ;;  %v152_v12 = vpop.f32.mrf.mxu1 }
  0xe3   :  { %368 = vtanh.f32 %v88_v11 }
  0xe4   :  { %370 = vtanh.f32 %v152_v12  ;;  %v320_v13 = vpop.f32.mrf.mxu0  ;;  %v332_v14 = vpop.f32.mrf.mxu1 }
  0xe6   :  { %v91_v15 = vpop.f32.mrf.mxu0  ;;  %v155_v16 = vpop.f32.mrf.mxu1 }
  0xe8   :  { %v321_v17 = vpop.f32.mrf.mxu0  ;;  %v333_v18 = vpop.f32.mrf.mxu1 }
  0xf0   :  { %v369_v19 = vpop.eup %368 }
  0xf1   :  { %v371_v20 = vpop.eup %370  ;;  %v160_v21 = vmul.f32 0.088388346, %v369_v19 }
  0xf2   :  { %v161_v22 = vmul.f32 0.088388346, %v371_v20 }
  0xf3   :  { %v163_v23 = vsel %vm162_vm1, %v160_v21, -inf }
  0xf4   :  { %164 = vmax.xlane.f32.xlu0 %v163_v23  ;;  %v166_v24 = vsel %vm162_vm1, %v161_v22, -inf }
  0xf8   :  { %167 = vmax.xlane.f32.xlu0 %v166_v24 }
 0x17d   :  { %v165_v25 = vpop.xlane.xlu0 %164 }
 0x17e   :  { %v169_v26 = vsub.f32 %v160_v21, %v165_v25 }
 0x180   :  { %v171_v27 = vmul.f32 1.442695, %v169_v26 }
 0x181   :  { %v168_v28 = vpop.xlane.xlu0 %167 }
 0x182   :  { %372 = vpow2.f32 %v171_v27  ;;  %v170_v29 = vsub.f32 %v161_v22, %v168_v28 }
 0x184   :  { %v173_v30 = vmul.f32 1.442695, %v170_v29 }
 0x186   :  { %374 = vpow2.f32 %v173_v30 }
 0x18f   :  { %v373_v31 = vpop.eup %372 }
 0x190   :  { %v175_v32 = vsel %vm162_vm1, %v373_v31, 0.0 }
 0x191   :  { %176 = vadd.xlane.f32.xlu1 %v175_v32 }
 0x193   :  { %v375_v33 = vpop.eup %374 }
 0x194   :  { %v178_v34 = vsel %vm162_vm1, %v375_v33, 0.0 }
 0x195   :  { %179 = vadd.xlane.f32.xlu1 %v178_v34 }
 0x21a   :  { %v177_v35 = vpop.xlane.xlu1 %176 }
 0x21b   :  { %376 = vrcp.f32 %v177_v35 }
 0x21e   :  { %v180_v36 = vpop.xlane.xlu1 %179 }
 0x21f   :  { %378 = vrcp.f32 %v180_v36 }
 0x228   :  { %v377_v37 = vpop.eup %376 }
 0x229   :  { %v183_v38 = vmul.f32 %v377_v37, %v373_v31 }
 0x22b   :  { %v185_v39 = vpack.c.bf16 %v183_v38, %v183_v38 }
 0x22c   :  { %v379_v40 = vpop.eup %378 }
 0x22d   :  { %343 = vmatmul.mubr.msk.bf16.vlgmr.msra.gmra.mxu0 %vm187_vm2, %v185_v39  ;;  %v184_v41 = vmul.f32 %v379_v40, %v375_v33 }
 0x22f   :  { %v186_v42 = vpack.c.bf16 %v184_v41, %v184_v41 }
 0x231   :  { %355 = vmatmul.mubr.msk.bf16.vlgmr.msra.gmra.mxu1 %vm187_vm2, %v186_v42 }
 0x2ed   :  { %v225_v43 = vpop.f32.mrf.mxu0 }
 0x2ee   :  { %274 = vst [vmem:[%s443_s2] sm:$0x1] %v225_v43 }
 0x2ef   :  { %v344_v44 = vpop.f32.mrf.mxu0 }
 0x2f1   :  { %v228_v45 = vpop.f32.mrf.mxu0  ;;  %v268_v46 = vpop.f32.mrf.mxu1 }
 0x2f2   :  { %275 = vst [vmem:[%s443_s2 + $0x1] sm:$0x1] %v268_v46 }
 0x2f3   :  { %v345_v47 = vpop.f32.mrf.mxu0  ;;  %v356_v48 = vpop.f32.mrf.mxu1 }
 0x2f5   :  { %v271_v49 = vpop.f32.mrf.mxu1 }
 0x2f7   :  { %v357_v50 = vpop.f32.mrf.mxu1 }

// kernel: kepla_forward.28
= control target key start
LH: loop header
LB: loop body
LE: loop exit
PB: predicated region body
PF: predicated region fallthrough
CT: control target
= control target key end

     0   :  { %v316_v0 = vmov 0.0   ;;  %vm317_vm0 = vmmov 0   ;;  %vm130_vm1 = vcmask 253952   ;;  %vm155_vm2 = vcmask 261120   ;;  %s365_s0 = inlined_call_operand.vmem [shape: bf16[2,32,128], index: 0, kind: input, shape index: {}]   ;;  %s366_s1 = inlined_call_operand.vmem [shape: bf16[2,1,128], index: 1, kind: input, shape index: {}]   ;;  %s367_s2 = inlined_call_operand.vmem [shape: f32[2,1,128], index: 2, kind: output, shape index: {}]  }
   0x1   :  { %266 = vmatprep.subr.bf16.mxu0 %v316_v0  ;;  %274 = vmatprep.subr.bf16.mxu1 %v316_v0  ;;  %v300_v1 = vld [vmem:[%s365_s0 + $0x8] sm:$0xff]   ;;  %v301_v2 = vld [vmem:[%s365_s0 + $0x18] sm:$0xff]   ;;  %v302_v3 = vld [vmem:[%s365_s0] sm:$0xff]  }
   0x2   :  { %270 = vmatprep.mubr.msk.bf16.mxu0 %vm317_vm0, %v316_v0  ;;  %278 = vmatprep.mubr.msk.bf16.mxu1 %vm317_vm0, %v316_v0  ;;  %v303_v4 = vld [vmem:[%s365_s0 + $0x10] sm:$0xff]   ;;  %v20_v5 = vld [vmem:[%s366_s1] sm:$0x1]  ;;  %v21_v6 = vld [vmem:[%s366_s1 + $0x1] sm:$0x1] }
   0x3   :  { %267 = vmatpush3.bf16.xpose.msra.mxu0 %v300_v1  ;;  %275 = vmatpush3.bf16.xpose.msra.mxu1 %v301_v2 }
   0x4   :  { %268 = vmatprep.subr.bf16.mxu0 %v316_v0  ;;  %276 = vmatprep.subr.bf16.mxu1 %v316_v0 }
   0xb   :  { %269 = vmatpush3.bf16.xpose.msra.mxu0 %v302_v3  ;;  %277 = vmatpush3.bf16.xpose.msra.mxu1 %v303_v4 }
   0xc   :  { %282 = vmatprep.subr.bf16.mxu0 %v316_v0  ;;  %290 = vmatprep.subr.bf16.mxu1 %v316_v0 }
  0x12   :  { %271 = vmatmul.mubr.bf16.vlgmr.msra.gmra.mxu0 %v20_v5  ;;  %279 = vmatmul.mubr.bf16.vlgmr.msra.gmra.mxu1 %v21_v6 }
  0x13   :  { %283 = vmatpush3.bf16.msra.mxu0 %v300_v1  ;;  %291 = vmatpush3.bf16.msra.mxu1 %v301_v2 }
  0x14   :  { %284 = vmatprep.subr.bf16.mxu0 %v316_v0  ;;  %286 = vmatprep.mubr.msk.bf16.mxu0 %vm317_vm0, %v316_v0 }
  0x15   :  { %292 = vmatprep.subr.bf16.mxu1 %v316_v0  ;;  %294 = vmatprep.mubr.msk.bf16.mxu1 %vm317_vm0, %v316_v0 }
  0x17   :  { %285 = vmatpush3.bf16.msra.mxu0 %v302_v3  ;;  %293 = vmatpush3.bf16.msra.mxu1 %v303_v4 }
  0xd2   :  { %v68_v7 = vpop.f32.mrf.mxu0  ;;  %v120_v8 = vpop.f32.mrf.mxu1 }
  0xd3   :  { %304 = vtanh.f32 %v68_v7 }
  0xd4   :  { %306 = vtanh.f32 %v120_v8  ;;  %v272_v9 = vpop.f32.mrf.mxu0  ;;  %v280_v10 = vpop.f32.mrf.mxu1 }
  0xd6   :  { %v71_v11 = vpop.f32.mrf.mxu0  ;;  %v123_v12 = vpop.f32.mrf.mxu1 }
  0xd8   :  { %v273_v13 = vpop.f32.mrf.mxu0  ;;  %v281_v14 = vpop.f32.mrf.mxu1 }
  0xe0   :  { %v305_v15 = vpop.eup %304 }
  0xe1   :  { %v307_v16 = vpop.eup %306  ;;  %v128_v17 = vmul.f32 0.088388346, %v305_v15 }
  0xe2   :  { %v129_v18 = vmul.f32 0.088388346, %v307_v16 }
  0xe3   :  { %v131_v19 = vsel %vm130_vm1, %v128_v17, -inf }
  0xe4   :  { %132 = vmax.xlane.f32.xlu0 %v131_v19  ;;  %v134_v20 = vsel %vm130_vm1, %v129_v18, -inf }
  0xe8   :  { %135 = vmax.xlane.f32.xlu0 %v134_v20 }
 0x16d   :  { %v133_v21 = vpop.xlane.xlu0 %132 }
 0x16e   :  { %v137_v22 = vsub.f32 %v128_v17, %v133_v21 }
 0x170   :  { %v139_v23 = vmul.f32 1.442695, %v137_v22 }
 0x171   :  { %v136_v24 = vpop.xlane.xlu0 %135 }
 0x172   :  { %308 = vpow2.f32 %v139_v23  ;;  %v138_v25 = vsub.f32 %v129_v18, %v136_v24 }
 0x174   :  { %v141_v26 = vmul.f32 1.442695, %v138_v25 }
 0x176   :  { %310 = vpow2.f32 %v141_v26 }
 0x17f   :  { %v309_v27 = vpop.eup %308 }
 0x180   :  { %v143_v28 = vsel %vm130_vm1, %v309_v27, 0.0 }
 0x181   :  { %144 = vadd.xlane.f32.xlu1 %v143_v28 }
 0x183   :  { %v311_v29 = vpop.eup %310 }
 0x184   :  { %v146_v30 = vsel %vm130_vm1, %v311_v29, 0.0 }
 0x185   :  { %147 = vadd.xlane.f32.xlu1 %v146_v30 }
 0x20a   :  { %v145_v31 = vpop.xlane.xlu1 %144 }
 0x20b   :  { %312 = vrcp.f32 %v145_v31 }
 0x20e   :  { %v148_v32 = vpop.xlane.xlu1 %147 }
 0x20f   :  { %314 = vrcp.f32 %v148_v32 }
 0x218   :  { %v313_v33 = vpop.eup %312 }
 0x219   :  { %v151_v34 = vmul.f32 %v313_v33, %v309_v27 }
 0x21b   :  { %v153_v35 = vpack.c.bf16 %v151_v34, %v151_v34 }
 0x21c   :  { %v315_v36 = vpop.eup %314 }
 0x21d   :  { %287 = vmatmul.mubr.msk.bf16.vlgmr.msra.gmra.mxu0 %vm155_vm2, %v153_v35  ;;  %v152_v37 = vmul.f32 %v315_v36, %v311_v29 }
 0x21f   :  { %v154_v38 = vpack.c.bf16 %v152_v37, %v152_v37 }
 0x221   :  { %295 = vmatmul.mubr.msk.bf16.vlgmr.msra.gmra.mxu1 %vm155_vm2, %v154_v38 }
 0x2dd   :  { %v193_v39 = vpop.f32.mrf.mxu0 }
 0x2de   :  { %242 = vst [vmem:[%s367_s2] sm:$0x1] %v193_v39 }
 0x2df   :  { %v288_v40 = vpop.f32.mrf.mxu0 }
 0x2e1   :  { %v196_v41 = vpop.f32.mrf.mxu0  ;;  %v236_v42 = vpop.f32.mrf.mxu1 }
 0x2e2   :  { %243 = vst [vmem:[%s367_s2 + $0x1] sm:$0x1] %v236_v42 }
 0x2e3   :  { %v289_v43 = vpop.f32.mrf.mxu0  ;;  %v296_v44 = vpop.f32.mrf.mxu1 }
 0x2e5   :  { %v239_v45 = vpop.f32.mrf.mxu1 }
 0x2e7   :  { %v297_v46 = vpop.f32.mrf.mxu1 }

// kernel: kepla_forward.30
= control target key start
LH: loop header
LB: loop body
LE: loop exit
PB: predicated region body
PF: predicated region fallthrough
CT: control target
= control target key end

     0   :  { %v87_v38 = vlaneseq  ;;  %v874_v39 = vmov 1966171168   ;;  %vm538_vm0 = vcmask 1041408   ;;  %s1159_s1 = inlined_call_operand.vmem [shape: bf16[256,512], index: 1, kind: input, shape index: {}]   ;;  %s1160_s0 = inlined_call_operand.vmem [shape: bf16[2,256], index: 0, kind: input, shape index: {}]   ;;  %s1161_s2 = inlined_call_operand.vmem [shape: f32[1,512], index: 2, kind: input, shape index: {}]   ;;  %s1162_s3 = inlined_call_operand.vmem [shape: f32[1,512], index: 3, kind: input, shape index: {}]   ;;  %s1163_s4 = inlined_call_operand.vmem [shape: f32[1,512], index: 4, kind: input, shape index: {}]   ;;  %s1164_s5 = inlined_call_operand.vmem [shape: f32[2,512], index: 5, kind: output, shape index: {}]  }
   0x1   :  { %v770_v0 = vld [vmem:[%s1159_s1 + $0xe4] ss:$16 sps:$4 sm:$0xff]   ;;  %v772_v1 = vld [vmem:[%s1159_s1 + $0xec] ss:$16 sps:$4 sm:$0xff]   ;;  %v774_v2 = vld [vmem:[%s1159_s1 + $0xe0] ss:$16 sps:$4 sm:$0xff]   ;;  %v117_v40 = vunpack.c.l.s4 %v874_v39 }
   0x2   :  { %452 = vmatprep.subr.bf16.mxu0 %v770_v0  ;;  %v775_v3 = vld [vmem:[%s1159_s1 + $0xe8] ss:$16 sps:$4 sm:$0xff]   ;;  %493 = vmatprep.subr.bf16.mxu1 %v772_v1  ;;  %v776_v4 = vld [vmem:[%s1159_s1 + $0xc4] ss:$16 sps:$4 sm:$0xff]   ;;  %v778_v5 = vld [vmem:[%s1159_s1 + $0xcc] ss:$16 sps:$4 sm:$0xff]  }
   0x3   :  { %453 = vmatpush1.bf16.msra.mxu0 %v774_v2  ;;  %494 = vmatpush1.bf16.msra.mxu1 %v775_v3  ;;  %v780_v6 = vld [vmem:[%s1159_s1 + $0xc0] ss:$16 sps:$4 sm:$0xff]   ;;  %v781_v7 = vld [vmem:[%s1159_s1 + $0xc8] ss:$16 sps:$4 sm:$0xff]   ;;  %v782_v8 = vld [vmem:[%s1159_s1 + $0xa4] ss:$16 sps:$4 sm:$0xff]   ;;  %v118_v46 = vunpack.c.0.s8 %v117_v40 }
   0x4   :  { %454 = vmatprep.subr.bf16.mxu0 %v776_v4  ;;  %495 = vmatprep.subr.bf16.mxu1 %v778_v5  ;;  %v784_v9 = vld [vmem:[%s1159_s1 + $0xac] ss:$16 sps:$4 sm:$0xff]   ;;  %v786_v10 = vld [vmem:[%s1159_s1 + $0xa0] ss:$16 sps:$4 sm:$0xff]   ;;  %v787_v11 = vld [vmem:[%s1159_s1 + $0xa8] ss:$16 sps:$4 sm:$0xff]  }
   0x5   :  { %v788_v12 = vld [vmem:[%s1159_s1 + $0x84] ss:$16 sps:$4 sm:$0xff]   ;;  %v790_v13 = vld [vmem:[%s1159_s1 + $0x8c] ss:$16 sps:$4 sm:$0xff]   ;;  %v792_v14 = vld [vmem:[%s1159_s1 + $0x80] ss:$16 sps:$4 sm:$0xff]  }
   0x6   :  { %v793_v15 = vld [vmem:[%s1159_s1 + $0x88] ss:$16 sps:$4 sm:$0xff]   ;;  %v794_v16 = vld [vmem:[%s1159_s1 + $0x64] ss:$16 sps:$4 sm:$0xff]   ;;  %v796_v17 = vld [vmem:[%s1159_s1 + $0x6c] ss:$16 sps:$4 sm:$0xff]  }
   0x7   :  { %455 = vmatpush1.bf16.msra.mxu0 %v780_v6  ;;  %496 = vmatpush1.bf16.msra.mxu1 %v781_v7  ;;  %v798_v18 = vld [vmem:[%s1159_s1 + $0x60] ss:$16 sps:$4 sm:$0xff]   ;;  %v799_v19 = vld [vmem:[%s1159_s1 + $0x68] ss:$16 sps:$4 sm:$0xff]   ;;  %v800_v20 = vld [vmem:[%s1159_s1 + $0x44] ss:$16 sps:$4 sm:$0xff]  }
   0x8   :  { %456 = vmatprep.subr.bf16.mxu0 %v782_v8  ;;  %497 = vmatprep.subr.bf16.mxu1 %v784_v9  ;;  %v802_v21 = vld [vmem:[%s1159_s1 + $0x4c] ss:$16 sps:$4 sm:$0xff]   ;;  %v804_v22 = vld [vmem:[%s1159_s1 + $0x40] ss:$16 sps:$4 sm:$0xff]   ;;  %v805_v23 = vld [vmem:[%s1159_s1 + $0x48] ss:$16 sps:$4 sm:$0xff]  }
   0x9   :  { %v806_v24 = vld [vmem:[%s1159_s1 + $0x24] ss:$16 sps:$4 sm:$0xff]   ;;  %v808_v25 = vld [vmem:[%s1159_s1 + $0x2c] ss:$16 sps:$4 sm:$0xff]   ;;  %v810_v26 = vld [vmem:[%s1159_s1 + $0x20] ss:$16 sps:$4 sm:$0xff]  }
   0xa   :  { %v811_v27 = vld [vmem:[%s1159_s1 + $0x28] ss:$16 sps:$4 sm:$0xff]   ;;  %v812_v28 = vld [vmem:[%s1159_s1 + $0x4] ss:$16 sps:$4 sm:$0xff]   ;;  %v814_v29 = vld [vmem:[%s1159_s1 + $0xc] ss:$16 sps:$4 sm:$0xff]  }
   0xb   :  { %457 = vmatpush1.bf16.msra.mxu0 %v786_v10  ;;  %498 = vmatpush1.bf16.msra.mxu1 %v787_v11  ;;  %v816_v30 = vld [vmem:[%s1159_s1] ss:$16 sps:$4 sm:$0xff]   ;;  %v817_v31 = vld [vmem:[%s1159_s1 + $0x8] ss:$16 sps:$4 sm:$0xff]   ;;  %v818_v32 = vld [vmem:[%s1159_s1 + $0x1e4] ss:$16 sps:$4 sm:$0xff]  }
   0xc   :  { %458 = vmatprep.subr.bf16.mxu0 %v788_v12  ;;  %499 = vmatprep.subr.bf16.mxu1 %v790_v13  ;;  %v820_v33 = vld [vmem:[%s1159_s1 + $0x1ec] ss:$16 sps:$4 sm:$0xff]   ;;  %v822_v34 = vld [vmem:[%s1159_s1 + $0x1e0] ss:$16 sps:$4 sm:$0xff]   ;;  %v823_v35 = vld [vmem:[%s1159_s1 + $0x1e8] ss:$16 sps:$4 sm:$0xff]  }
   0xd   :  { %v824_v36 = vld [vmem:[%s1159_s1 + $0x1c4] ss:$16 sps:$4 sm:$0xff]   ;;  %v826_v37 = vld [vmem:[%s1159_s1 + $0x1cc] ss:$16 sps:$4 sm:$0xff]   ;;  %v828_v41 = vld [vmem:[%s1159_s1 + $0x1c0] ss:$16 sps:$4 sm:$0xff]  }
   0xe   :  { %v829_v42 = vld [vmem:[%s1159_s1 + $0x1c8] ss:$16 sps:$4 sm:$0xff]   ;;  %v830_v43 = vld [vmem:[%s1159_s1 + $0x1a4] ss:$16 sps:$4 sm:$0xff]   ;;  %v832_v44 = vld [vmem:[%s1159_s1 + $0x1ac] ss:$16 sps:$4 sm:$0xff]  }
   0xf   :  { %459 = vmatpush1.bf16.msra.mxu0 %v792_v14  ;;  %500 = vmatpush1.bf16.msra.mxu1 %v793_v15  ;;  %v1032_v45 = vshrl.u32 %v87_v38, 7  ;;  %v834_v47 = vld [vmem:[%s1159_s1 + $0x1a0] ss:$16 sps:$4 sm:$0xff]   ;;  %v835_v48 = vld [vmem:[%s1159_s1 + $0x1a8] ss:$16 sps:$4 sm:$0xff]  }
  0x10   :  { %460 = vmatprep.subr.bf16.mxu0 %v794_v16  ;;  %501 = vmatprep.subr.bf16.mxu1 %v796_v17  ;;  %v836_v49 = vld [vmem:[%s1159_s1 + $0x184] ss:$16 sps:$4 sm:$0xff]   ;;  %v838_v50 = vld [vmem:[%s1159_s1 + $0x18c] ss:$16 sps:$4 sm:$0xff]   ;;  %v840_v53 = vld [vmem:[%s1159_s1 + $0x180] ss:$16 sps:$4 sm:$0xff]  }
  0x11   :  { %v121_v51 = vsub.s32 %v118_v46, %v1032_v45  ;;  %v703_v52 = vld.sshfl [vmem:[%s1160_s0] sm:$0x11 pattern:$0x75316420]  ;;  %v841_v54 = vld [vmem:[%s1159_s1 + $0x188] ss:$16 sps:$4 sm:$0xff]  }
  0x12   :  { %v115_v55 = vcombine.high %v703_v52, %v703_v52  ;;  %v842_v56 = vld [vmem:[%s1159_s1 + $0x164] ss:$16 sps:$4 sm:$0xff]   ;;  %v844_v57 = vld [vmem:[%s1159_s1 + $0x16c] ss:$16 sps:$4 sm:$0xff]   ;;  %v846_v59 = vld [vmem:[%s1159_s1 + $0x160] ss:$16 sps:$4 sm:$0xff]  }
  0x13   :  { %461 = vmatpush1.bf16.msra.mxu0 %v798_v18  ;;  %502 = vmatpush1.bf16.msra.mxu1 %v799_v19  ;;  %v847_v60 = vld [vmem:[%s1159_s1 + $0x168] ss:$16 sps:$4 sm:$0xff]   ;;  %v848_v61 = vld [vmem:[%s1159_s1 + $0x144] ss:$16 sps:$4 sm:$0xff]   ;;  %v850_v62 = vld [vmem:[%s1159_s1 + $0x14c] ss:$16 sps:$4 sm:$0xff]   ;;  %v122_v9 = vrot.slane %v703_v52, %v121_v51 }
  0x14   :  { %462 = vmatprep.subr.bf16.mxu0 %v800_v20  ;;  %503 = vmatprep.subr.bf16.mxu1 %v802_v21  ;;  %v129_v58 = vrot.slane %v115_v55, %v121_v51  ;;  %v852_v63 = vld [vmem:[%s1159_s1 + $0x140] ss:$16 sps:$4 sm:$0xff]   ;;  %v853_v0 = vld [vmem:[%s1159_s1 + $0x148] ss:$16 sps:$4 sm:$0xff]   ;;  %v854_v1 = vld [vmem:[%s1159_s1 + $0x124] ss:$16 sps:$4 sm:$0xff]  }
  0x15   :  { %v856_v2 = vld [vmem:[%s1159_s1 + $0x12c] ss:$16 sps:$4 sm:$0xff]   ;;  %v858_v3 = vld [vmem:[%s1159_s1 + $0x120] ss:$16 sps:$4 sm:$0xff]   ;;  %v859_v4 = vld [vmem:[%s1159_s1 + $0x128] ss:$16 sps:$4 sm:$0xff]  }
  0x16   :  { %484 = vmatprep.mubr.bf16.mxu0 %v129_v58  ;;  %525 = vmatprep.mubr.bf16.mxu1 %v129_v58  ;;  %v860_v5 = vld [vmem:[%s1159_s1 + $0x104] ss:$16 sps:$4 sm:$0xff]   ;;  %v862_v6 = vld [vmem:[%s1159_s1 + $0x10c] ss:$16 sps:$4 sm:$0xff]   ;;  %v864_v7 = vld [vmem:[%s1159_s1 + $0x100] ss:$16 sps:$4 sm:$0xff]  }
  0x17   :  { %463 = vmatpush1.bf16.msra.mxu0 %v804_v22  ;;  %504 = vmatpush1.bf16.msra.mxu1 %v805_v23  ;;  %v865_v8 = vld [vmem:[%s1159_s1 + $0x108] ss:$16 sps:$4 sm:$0xff]   ;;  %v1105_v10 = vsub.s32 0, %v1032_v45  ;;  %v1108_v11 = vsub.s32 2, %v1032_v45  ;;  %v85_v12 = vld [vmem:[%s1161_s2] sm:$0xf] }
  0x18   :  { %464 = vmatprep.subr.bf16.mxu0 %v806_v24  ;;  %505 = vmatprep.subr.bf16.mxu1 %v808_v25  ;;  %v1114_v13 = vsub.s32 1, %v1032_v45  ;;  %v1117_v14 = vsub.s32 3, %v1032_v45 }
  0x19   :  { %v90_v15 = vrot.slane %v85_v12, %v1105_v10  ;;  %v98_v16 = vrot.slane %v85_v12, %v1108_v11 }
  0x1a   :  { %v94_v17 = vrot.slane %v85_v12, %v1114_v13  ;;  %v102_v18 = vrot.slane %v85_v12, %v1117_v14 }
  0x1b   :  { %465 = vmatpush1.bf16.msra.mxu0 %v810_v26  ;;  %506 = vmatpush1.bf16.msra.mxu1 %v811_v27 }
  0x1c   :  { %466 = vmatprep.subr.bf16.mxu0 %v812_v28  ;;  %507 = vmatprep.subr.bf16.mxu1 %v814_v29 }
  0x1f   :  { %467 = vmatpush1.bf16.msra.mxu0 %v816_v30  ;;  %508 = vmatpush1.bf16.msra.mxu1 %v817_v31 }
  0x20   :  { %468 = vmatprep.subr.bf16.mxu0 %v818_v32  ;;  %509 = vmatprep.subr.bf16.mxu1 %v820_v33 }
  0x23   :  { %469 = vmatpush2.bf16.msra.mxu0 %v822_v34  ;;  %510 = vmatpush2.bf16.msra.mxu1 %v823_v35 }
  0x24   :  { %470 = vmatprep.subr.bf16.mxu0 %v824_v36  ;;  %511 = vmatprep.subr.bf16.mxu1 %v826_v37 }
  0x27   :  { %471 = vmatpush2.bf16.msra.mxu0 %v828_v41  ;;  %512 = vmatpush2.bf16.msra.mxu1 %v829_v42 }
  0x28   :  { %472 = vmatprep.subr.bf16.mxu0 %v830_v43  ;;  %513 = vmatprep.subr.bf16.mxu1 %v832_v44 }
  0x2b   :  { %473 = vmatpush2.bf16.msra.mxu0 %v834_v47  ;;  %514 = vmatpush2.bf16.msra.mxu1 %v835_v48 }
  0x2c   :  { %474 = vmatprep.subr.bf16.mxu0 %v836_v49  ;;  %515 = vmatprep.subr.bf16.mxu1 %v838_v50 }
  0x2f   :  { %475 = vmatpush2.bf16.msra.mxu0 %v840_v53  ;;  %516 = vmatpush2.bf16.msra.mxu1 %v841_v54 }
  0x30   :  { %476 = vmatprep.subr.bf16.mxu0 %v842_v56  ;;  %517 = vmatprep.subr.bf16.mxu1 %v844_v57 }
  0x33   :  { %477 = vmatpush2.bf16.msra.mxu0 %v846_v59  ;;  %518 = vmatpush2.bf16.msra.mxu1 %v847_v60 }
  0x34   :  { %478 = vmatprep.subr.bf16.mxu0 %v848_v61  ;;  %519 = vmatprep.subr.bf16.mxu1 %v850_v62 }
  0x37   :  { %479 = vmatpush2.bf16.msra.mxu0 %v852_v63  ;;  %520 = vmatpush2.bf16.msra.mxu1 %v853_v0 }
  0x38   :  { %480 = vmatprep.subr.bf16.mxu0 %v854_v1  ;;  %521 = vmatprep.subr.bf16.mxu1 %v856_v2 }
  0x3b   :  { %481 = vmatpush2.bf16.msra.mxu0 %v858_v3  ;;  %522 = vmatpush2.bf16.msra.mxu1 %v859_v4 }
  0x3c   :  { %482 = vmatprep.subr.bf16.mxu0 %v860_v5  ;;  %523 = vmatprep.subr.bf16.mxu1 %v862_v6 }
  0x3f   :  { %483 = vmatpush2.bf16.msra.mxu0 %v864_v7  ;;  %524 = vmatpush2.bf16.msra.mxu1 %v865_v8 }
  0x42   :  { %485 = vmatmul.mubr.bf16.vlgmr.msra.gmra.mxu0 %v122_v9  ;;  %526 = vmatmul.mubr.bf16.vlgmr.msra.gmra.mxu1 %v122_v9 }
 0x102   :  { %v486_v19 = vpop.f32.mrf.mxu0  ;;  %v527_v20 = vpop.f32.mrf.mxu1 }
 0x103   :  { %v487_v21 = vadd.f32 %v486_v19, %v90_v15  ;;  %v528_v22 = vadd.f32 %v527_v20, %v98_v16 }
 0x104   :  { %v488_v23 = vpop.f32.mrf.mxu0  ;;  %v529_v24 = vpop.f32.mrf.mxu1 }
 0x105   :  { %v534_v25 = vmax.f32 %v487_v21, 0.0  ;;  %v536_v26 = vmax.f32 %v528_v22, 0.0  ;;  %v489_v27 = vadd.f32 %v488_v23, %v94_v17  ;;  %v530_v28 = vadd.f32 %v529_v24, %v102_v18 }
 0x106   :  { %v490_v29 = vpop.f32.mrf.mxu0  ;;  %v531_v30 = vpop.f32.mrf.mxu1 }
 0x107   :  { %v539_v31 = vsel %vm538_vm0, %v534_v25, 0.0  ;;  %v553_v32 = vsel %vm538_vm0, %v536_v26, 0.0  ;;  %v535_v33 = vmax.f32 %v489_v27, 0.0  ;;  %v537_v34 = vmax.f32 %v530_v28, 0.0 }
 0x108   :  { %v540_v35 = vrot.slane %v539_v31, 4  ;;  %v554_v36 = vrot.slane %v553_v32, 4  ;;  %v491_v37 = vpop.f32.mrf.mxu0  ;;  %v532_v38 = vpop.f32.mrf.mxu1 }
 0x109   :  { %v546_v39 = vsel %vm538_vm0, %v535_v33, 0.0  ;;  %v560_v40 = vsel %vm538_vm0, %v537_v34, 0.0 }
 0x10a   :  { %v541_v41 = vadd.f32 %v540_v35, %v539_v31  ;;  %v555_v42 = vadd.f32 %v554_v36, %v553_v32  ;;  %v547_v43 = vrot.slane %v546_v39, 4  ;;  %v561_v44 = vrot.slane %v560_v40, 4 }
 0x10c   :  { %v542_v46 = vrot.slane %v541_v41, 2  ;;  %v556_v47 = vrot.slane %v555_v42, 2  ;;  %v548_v48 = vadd.f32 %v547_v43, %v546_v39  ;;  %v562_v49 = vadd.f32 %v561_v44, %v560_v40 }
 0x10e   :  { %v543_v50 = vadd.f32 %v542_v46, %v541_v41  ;;  %v557_v51 = vadd.f32 %v556_v47, %v555_v42  ;;  %v549_v52 = vrot.slane %v548_v48, 2  ;;  %v563_v53 = vrot.slane %v562_v49, 2 }
 0x110   :  { %v544_v54 = vrot.slane %v543_v50, 1  ;;  %v558_v55 = vrot.slane %v557_v51, 1  ;;  %v550_v56 = vadd.f32 %v549_v52, %v548_v48  ;;  %v564_v57 = vadd.f32 %v563_v53, %v562_v49  ;;  %v612_v53 = vld [vmem:[%s1162_s3] sm:$0xf] }
 0x112   :  { %v545_v58 = vadd.f32 %v544_v54, %v543_v50  ;;  %v559_v59 = vadd.f32 %v558_v55, %v557_v51  ;;  %v551_v60 = vrot.slane %v550_v56, 1  ;;  %v565_v61 = vrot.slane %v564_v57, 1 }
 0x113   :  { %v617_v54 = vrot.slane %v612_v53, %v1105_v10  ;;  %v625_v55 = vrot.slane %v612_v53, %v1108_v11 }
 0x114   :  { %v568_v62 = vmul.f32 0.5, %v545_v58  ;;  %v570_v63 = vmul.f32 0.5, %v559_v59  ;;  %v552_v0 = vadd.f32 %v551_v60, %v550_v56  ;;  %v566_v1 = vadd.f32 %v565_v61, %v564_v57  ;;  %v650_v56 = vld [vmem:[%s1163_s4] sm:$0xf] }
 0x115   :  { %v621_v57 = vrot.slane %v612_v53, %v1114_v13  ;;  %v875_v58 = vmov 1983009808   ;;  %v629_v60 = vrot.slane %v612_v53, %v1117_v14 }
 0x116   :  { %v572_v2 = vsub.f32 %v534_v25, %v568_v62  ;;  %v1127_v3 = vsub.f32 %v536_v26, %v570_v63  ;;  %v569_v4 = vmul.f32 0.5, %v552_v0  ;;  %v571_v5 = vmul.f32 0.5, %v566_v1 }
 0x117   :  { %v683_v59 = vunpack.c.l.s4 %v875_v58  ;;  %v655_v0 = vrot.slane %v650_v56, %v1105_v10 }
 0x118   :  { %v576_v6 = vmul.f32 %v572_v2, %v572_v2  ;;  %v578_v7 = vmul.f32 %v1127_v3, %v1127_v3  ;;  %v573_v8 = vsub.f32 %v535_v33, %v569_v4  ;;  %v1131_v9 = vsub.f32 %v537_v34, %v571_v5 }
 0x119   :  { %v634_v62 = vmul.f32 %v617_v54, %v572_v2  ;;  %v636_v1 = vmul.f32 %v625_v55, %v1127_v3 }
 0x11a   :  { %v580_v12 = vsel %vm538_vm0, %v576_v6, 0.0  ;;  %v594_v15 = vsel %vm538_vm0, %v578_v7, 0.0  ;;  %v577_v18 = vmul.f32 %v573_v8, %v573_v8  ;;  %v579_v19 = vmul.f32 %v1131_v9, %v1131_v9 }
 0x11b   :  { %v581_v16 = vrot.slane %v580_v12, 4  ;;  %v595_v17 = vrot.slane %v594_v15, 4  ;;  %v635_v5 = vmul.f32 %v621_v57, %v573_v8  ;;  %v659_v6 = vrot.slane %v650_v56, %v1114_v13 }
 0x11c   :  { %v587_v22 = vsel %vm538_vm0, %v577_v18, 0.0  ;;  %v601_v24 = vsel %vm538_vm0, %v579_v19, 0.0  ;;  %v684_v7 = vunpack.c.0.s8 %v683_v59  ;;  %v667_v18 = vrot.slane %v650_v56, %v1117_v14 }
 0x11d   :  { %v582_v20 = vadd.f32 %v581_v16, %v580_v12  ;;  %v596_v21 = vadd.f32 %v595_v17, %v594_v15  ;;  %v588_v23 = vrot.slane %v587_v22, 4  ;;  %v602_v27 = vrot.slane %v601_v24, 4 }
 0x11e   :  { %v663_v16 = vrot.slane %v650_v56, %v1108_v11  ;;  %v637_v17 = vmul.f32 %v629_v60, %v1131_v9  ;;  %v687_v3 = vsub.s32 %v684_v7, %v1032_v45 }
 0x11f   :  { %v583_v25 = vrot.slane %v582_v20, 2  ;;  %v597_v26 = vrot.slane %v596_v21, 2  ;;  %v589_v28 = vadd.f32 %v588_v23, %v587_v22  ;;  %v603_v31 = vadd.f32 %v602_v27, %v601_v24 }
 0x121   :  { %v584_v29 = vadd.f32 %v583_v25, %v582_v20  ;;  %v598_v30 = vadd.f32 %v597_v26, %v596_v21  ;;  %v590_v32 = vrot.slane %v589_v28, 2  ;;  %v604_v35 = vrot.slane %v603_v31, 2 }
 0x123   :  { %v585_v33 = vrot.slane %v584_v29, 1  ;;  %v599_v34 = vrot.slane %v598_v30, 1  ;;  %v591_v36 = vadd.f32 %v590_v32, %v589_v28  ;;  %v605_v39 = vadd.f32 %v604_v35, %v603_v31 }
 0x125   :  { %v586_v37 = vadd.f32 %v585_v33, %v584_v29  ;;  %v600_v38 = vadd.f32 %v599_v34, %v598_v30  ;;  %v592_v40 = vrot.slane %v591_v36, 1  ;;  %v606_v43 = vrot.slane %v605_v39, 1 }
 0x127   :  { %v608_v41 = vmul.f32 0.5, %v586_v37  ;;  %v610_v42 = vmul.f32 0.5, %v600_v38  ;;  %v593_v44 = vadd.f32 %v592_v40, %v591_v36  ;;  %v607_v48 = vadd.f32 %v606_v43, %v605_v39 }
 0x129   :  { %v638_v46 = vadd.f32 1e-05, %v608_v41  ;;  %v640_v47 = vadd.f32 1e-05, %v610_v42  ;;  %v609_v49 = vmul.f32 0.5, %v593_v44  ;;  %v611_v50 = vmul.f32 0.5, %v607_v48 }
 0x12b   :  { %866 = vrsqrt.f32 %v638_v46  ;;  %v639_v51 = vadd.f32 1e-05, %v609_v49  ;;  %v641_v52 = vadd.f32 1e-05, %v611_v50 }
 0x12c   :  { %868 = vrsqrt.f32 %v640_v47 }
 0x12d   :  { %870 = vrsqrt.f32 %v639_v51 }
 0x12e   :  { %872 = vrsqrt.f32 %v641_v52 }
 0x138   :  { %v867_v61 = vpop.eup %866 }
 0x139   :  { %v869_v63 = vpop.eup %868  ;;  %v646_v4 = vmul.f32 %v867_v61, %v634_v62 }
 0x13a   :  { %v871_v12 = vpop.eup %870  ;;  %v648_v15 = vmul.f32 %v869_v63, %v636_v1 }
 0x13b   :  { %v873_v19 = vpop.eup %872  ;;  %v647_v2 = vmul.f32 %v871_v12, %v635_v5  ;;  %v672_v21 = vadd.f32 %v655_v0, %v646_v4 }
 0x13c   :  { %v649_v20 = vmul.f32 %v873_v19, %v637_v17  ;;  %v674_v22 = vadd.f32 %v663_v16, %v648_v15 }
 0x13d   :  { %v673_v10 = vadd.f32 %v659_v6, %v647_v2 }
 0x13e   :  { %v675_v8 = vadd.f32 %v667_v18, %v649_v20 }
 0x13f   :  { %v680_v23 = vcombine.low %v672_v21, %v673_v10 }
 0x140   :  { %v681_v13 = vcombine.low %v674_v22, %v675_v8 }
 0x141   :  { %v688_v24 = vrot.slane %v680_v23, %v687_v3 }
 0x142   :  { %v695_v25 = vrot.slane %v681_v13, %v687_v3 }
 0x144   :  { %v696_v26 = vcombine.low %v688_v24, %v695_v25 }
 0x146   :  { %698 = vst [vmem:[%s1164_s5] sm:$0xff] %v696_v26 }

// kernel: kepla_forward.31
= control target key start
LH: loop header
LB: loop body
LE: loop exit
PB: predicated region body
PF: predicated region fallthrough
CT: control target
= control target key end

     0   :  { %v151_v38 = vlaneseq  ;;  %v1504_v39 = vmov 1966171168   ;;  %vm1008_vm0 = vcmask 1041408   ;;  %s2008_s1 = inlined_call_operand.vmem [shape: bf16[512,512], index: 1, kind: input, shape index: {}]   ;;  %s2009_s0 = inlined_call_operand.vmem [shape: bf16[2,512], index: 0, kind: input, shape index: {}]   ;;  %s2010_s2 = inlined_call_operand.vmem [shape: f32[1,512], index: 2, kind: input, shape index: {}]   ;;  %s2011_s3 = inlined_call_operand.vmem [shape: f32[1,512], index: 3, kind: input, shape index: {}]   ;;  %s2012_s4 = inlined_call_operand.vmem [shape: f32[1,512], index: 4, kind: input, shape index: {}]   ;;  %s2013_s5 = inlined_call_operand.vmem [shape: f32[2,512], index: 5, kind: output, shape index: {}]  }
   0x1   :  { %v1304_v0 = vld [vmem:[%s2008_s1 + $0xe4] ss:$16 sps:$4 sm:$0xff]   ;;  %v1308_v2 = vld [vmem:[%s2008_s1 + $0xe0] ss:$16 sps:$4 sm:$0xff]   ;;  %v181_v40 = vunpack.c.l.s4 %v1504_v39  ;;  %v1439_v39 = vld [vmem:[%s2008_s1 + $0x228] ss:$16 sps:$4 sm:$0xff]  }
   0x2   :  { %v1306_v1 = vld [vmem:[%s2008_s1 + $0x2e4] ss:$16 sps:$4 sm:$0xff]   ;;  %840 = vmatprep.subr.bf16.mxu0 %v1304_v0  ;;  %v1309_v3 = vld [vmem:[%s2008_s1 + $0x2e0] ss:$16 sps:$4 sm:$0xff]   ;;  %v1662_v45 = vshrl.u32 %v151_v38, 7 }
   0x3   :  { %881 = vmatprep.subr.bf16.mxu1 %v1306_v1  ;;  %v1310_v4 = vld [vmem:[%s2008_s1 + $0xc4] ss:$16 sps:$4 sm:$0xff]   ;;  %841 = vmatpush1.bf16.msra.mxu0 %v1308_v2  ;;  %v1314_v6 = vld [vmem:[%s2008_s1 + $0xc0] ss:$16 sps:$4 sm:$0xff]   ;;  %v182_v46 = vunpack.c.0.s8 %v181_v40  ;;  %v1436_v38 = vld [vmem:[%s2008_s1 + $0x28] ss:$16 sps:$4 sm:$0xff]  }
   0x4   :  { %882 = vmatpush1.bf16.msra.mxu1 %v1309_v3  ;;  %v1312_v5 = vld [vmem:[%s2008_s1 + $0x2c4] ss:$16 sps:$4 sm:$0xff]   ;;  %842 = vmatprep.subr.bf16.mxu0 %v1310_v4  ;;  %v1315_v7 = vld [vmem:[%s2008_s1 + $0x2c0] ss:$16 sps:$4 sm:$0xff]   ;;  %v1444_v40 = vld [vmem:[%s2008_s1 + $0xc] ss:$16 sps:$4 sm:$0xff]  }
   0x5   :  { %883 = vmatprep.subr.bf16.mxu1 %v1312_v5  ;;  %v1316_v8 = vld [vmem:[%s2008_s1 + $0xa4] ss:$16 sps:$4 sm:$0xff]   ;;  %v1320_v10 = vld [vmem:[%s2008_s1 + $0xa0] ss:$16 sps:$4 sm:$0xff]   ;;  %v185_v51 = vsub.s32 %v182_v46, %v1662_v45  ;;  %v1453_v46 = vld [vmem:[%s2008_s1 + $0x3ec] ss:$16 sps:$4 sm:$0xff]  }
   0x6   :  { %v1318_v9 = vld [vmem:[%s2008_s1 + $0x2a4] ss:$16 sps:$4 sm:$0xff]   ;;  %v1321_v11 = vld [vmem:[%s2008_s1 + $0x2a0] ss:$16 sps:$4 sm:$0xff]  }
   0x7   :  { %843 = vmatpush1.bf16.msra.mxu0 %v1314_v6  ;;  %v1322_v12 = vld [vmem:[%s2008_s1 + $0x84] ss:$16 sps:$4 sm:$0xff]   ;;  %v1326_v14 = vld [vmem:[%s2008_s1 + $0x80] ss:$16 sps:$4 sm:$0xff]  }
   0x8   :  { %884 = vmatpush1.bf16.msra.mxu1 %v1315_v7  ;;  %844 = vmatprep.subr.bf16.mxu0 %v1316_v8  ;;  %v1324_v13 = vld [vmem:[%s2008_s1 + $0x284] ss:$16 sps:$4 sm:$0xff]   ;;  %v1327_v15 = vld [vmem:[%s2008_s1 + $0x280] ss:$16 sps:$4 sm:$0xff]  }
   0x9   :  { %885 = vmatprep.subr.bf16.mxu1 %v1318_v9  ;;  %v1328_v16 = vld [vmem:[%s2008_s1 + $0x64] ss:$16 sps:$4 sm:$0xff]   ;;  %v1332_v18 = vld [vmem:[%s2008_s1 + $0x60] ss:$16 sps:$4 sm:$0xff]  }
   0xa   :  { %v1330_v17 = vld [vmem:[%s2008_s1 + $0x264] ss:$16 sps:$4 sm:$0xff]   ;;  %v1333_v19 = vld [vmem:[%s2008_s1 + $0x260] ss:$16 sps:$4 sm:$0xff]  }
   0xb   :  { %845 = vmatpush1.bf16.msra.mxu0 %v1320_v10  ;;  %v1334_v20 = vld [vmem:[%s2008_s1 + $0x44] ss:$16 sps:$4 sm:$0xff]   ;;  %v1338_v22 = vld [vmem:[%s2008_s1 + $0x40] ss:$16 sps:$4 sm:$0xff]  }
   0xc   :  { %886 = vmatpush1.bf16.msra.mxu1 %v1321_v11  ;;  %846 = vmatprep.subr.bf16.mxu0 %v1322_v12  ;;  %v1336_v21 = vld [vmem:[%s2008_s1 + $0x244] ss:$16 sps:$4 sm:$0xff]   ;;  %v1339_v23 = vld [vmem:[%s2008_s1 + $0x240] ss:$16 sps:$4 sm:$0xff]   ;;  %v1402_v11 = vld [vmem:[%s2008_s1 + $0xec] ss:$16 sps:$4 sm:$0xff]  }
   0xd   :  { %887 = vmatprep.subr.bf16.mxu1 %v1324_v13  ;;  %v1340_v24 = vld [vmem:[%s2008_s1 + $0x24] ss:$16 sps:$4 sm:$0xff]   ;;  %v1344_v26 = vld [vmem:[%s2008_s1 + $0x20] ss:$16 sps:$4 sm:$0xff]   ;;  %v1405_v12 = vld [vmem:[%s2008_s1 + $0x2ec] ss:$16 sps:$4 sm:$0xff]  }
   0xe   :  { %v1342_v25 = vld [vmem:[%s2008_s1 + $0x224] ss:$16 sps:$4 sm:$0xff]   ;;  %v1345_v27 = vld [vmem:[%s2008_s1 + $0x220] ss:$16 sps:$4 sm:$0xff]  }
   0xf   :  { %847 = vmatpush1.bf16.msra.mxu0 %v1326_v14  ;;  %v1346_v28 = vld [vmem:[%s2008_s1 + $0x4] ss:$16 sps:$4 sm:$0xff]   ;;  %v1350_v30 = vld [vmem:[%s2008_s1] ss:$16 sps:$4 sm:$0xff]   ;;  %v1400_v14 = vld [vmem:[%s2008_s1 + $0xe8] ss:$16 sps:$4 sm:$0xff]  }
  0x10   :  { %888 = vmatpush1.bf16.msra.mxu1 %v1327_v15  ;;  %848 = vmatprep.subr.bf16.mxu0 %v1328_v16  ;;  %v1348_v29 = vld [vmem:[%s2008_s1 + $0x204] ss:$16 sps:$4 sm:$0xff]   ;;  %v1351_v31 = vld [vmem:[%s2008_s1 + $0x200] ss:$16 sps:$4 sm:$0xff]   ;;  %v1403_v15 = vld [vmem:[%s2008_s1 + $0x2e8] ss:$16 sps:$4 sm:$0xff]  }
  0x11   :  { %889 = vmatprep.subr.bf16.mxu1 %v1330_v17  ;;  %v1352_v32 = vld [vmem:[%s2008_s1 + $0x1e4] ss:$16 sps:$4 sm:$0xff]   ;;  %v1356_v34 = vld [vmem:[%s2008_s1 + $0x1e0] ss:$16 sps:$4 sm:$0xff]   ;;  %v1408_v16 = vld [vmem:[%s2008_s1 + $0xcc] ss:$16 sps:$4 sm:$0xff]  }
  0x12   :  { %v1354_v33 = vld [vmem:[%s2008_s1 + $0x3e4] ss:$16 sps:$4 sm:$0xff]   ;;  %v1357_v35 = vld [vmem:[%s2008_s1 + $0x3e0] ss:$16 sps:$4 sm:$0xff]   ;;  %v1411_v17 = vld [vmem:[%s2008_s1 + $0x2cc] ss:$16 sps:$4 sm:$0xff]  }
  0x13   :  { %849 = vmatpush1.bf16.msra.mxu0 %v1332_v18  ;;  %v1358_v36 = vld [vmem:[%s2008_s1 + $0x1c4] ss:$16 sps:$4 sm:$0xff]   ;;  %v1362_v41 = vld [vmem:[%s2008_s1 + $0x1c0] ss:$16 sps:$4 sm:$0xff]   ;;  %v1406_v18 = vld [vmem:[%s2008_s1 + $0xc8] ss:$16 sps:$4 sm:$0xff]  }
  0x14   :  { %890 = vmatpush1.bf16.msra.mxu1 %v1333_v19  ;;  %850 = vmatprep.subr.bf16.mxu0 %v1334_v20  ;;  %v1360_v37 = vld [vmem:[%s2008_s1 + $0x3c4] ss:$16 sps:$4 sm:$0xff]   ;;  %v1363_v42 = vld [vmem:[%s2008_s1 + $0x3c0] ss:$16 sps:$4 sm:$0xff]   ;;  %v1409_v19 = vld [vmem:[%s2008_s1 + $0x2c8] ss:$16 sps:$4 sm:$0xff]  }
  0x15   :  { %891 = vmatprep.subr.bf16.mxu1 %v1336_v21  ;;  %v1364_v43 = vld [vmem:[%s2008_s1 + $0x1a4] ss:$16 sps:$4 sm:$0xff]   ;;  %v1368_v47 = vld [vmem:[%s2008_s1 + $0x1a0] ss:$16 sps:$4 sm:$0xff]   ;;  %v1414_v20 = vld [vmem:[%s2008_s1 + $0xac] ss:$16 sps:$4 sm:$0xff]  }
  0x16   :  { %v1366_v44 = vld [vmem:[%s2008_s1 + $0x3a4] ss:$16 sps:$4 sm:$0xff]   ;;  %v1369_v48 = vld [vmem:[%s2008_s1 + $0x3a0] ss:$16 sps:$4 sm:$0xff]   ;;  %v1417_v21 = vld [vmem:[%s2008_s1 + $0x2ac] ss:$16 sps:$4 sm:$0xff]  }
  0x17   :  { %851 = vmatpush1.bf16.msra.mxu0 %v1338_v22  ;;  %v1370_v49 = vld [vmem:[%s2008_s1 + $0x184] ss:$16 sps:$4 sm:$0xff]   ;;  %v1173_v52 = vld.sshfl [vmem:[%s2009_s0] sm:$0x33 pattern:$0x75316420] }
  0x18   :  { %892 = vmatpush1.bf16.msra.mxu1 %v1339_v23  ;;  %852 = vmatprep.subr.bf16.mxu0 %v1340_v24  ;;  %v1372_v50 = vld [vmem:[%s2008_s1 + $0x384] ss:$16 sps:$4 sm:$0xff]   ;;  %v1374_v53 = vld [vmem:[%s2008_s1 + $0x180] ss:$16 sps:$4 sm:$0xff]   ;;  %v179_v55 = vcombine.high %v1173_v52, %v1173_v52  ;;  %v1731_v9 = vrot.slane %v1173_v52, %v185_v51  ;;  %v1412_v22 = vld [vmem:[%s2008_s1 + $0xa8] ss:$16 sps:$4 sm:$0xff]  }
  0x19   :  { %893 = vmatprep.subr.bf16.mxu1 %v1342_v25  ;;  %v1375_v54 = vld [vmem:[%s2008_s1 + $0x380] ss:$16 sps:$4 sm:$0xff]   ;;  %v1376_v56 = vld [vmem:[%s2008_s1 + $0x164] ss:$16 sps:$4 sm:$0xff]   ;;  %v1415_v23 = vld [vmem:[%s2008_s1 + $0x2a8] ss:$16 sps:$4 sm:$0xff]  }
  0x1a   :  { %v1378_v57 = vld [vmem:[%s2008_s1 + $0x364] ss:$16 sps:$4 sm:$0xff]   ;;  %v193_v58 = vrot.slane %v179_v55, %v185_v51  ;;  %v1380_v59 = vld [vmem:[%s2008_s1 + $0x160] ss:$16 sps:$4 sm:$0xff]   ;;  %v1744_v13 = vcombine.high %v1731_v9, %v1731_v9  ;;  %v1420_v24 = vld [vmem:[%s2008_s1 + $0x8c] ss:$16 sps:$4 sm:$0xff]  }
  0x1b   :  { %853 = vmatpush1.bf16.msra.mxu0 %v1344_v26  ;;  %v1381_v60 = vld [vmem:[%s2008_s1 + $0x360] ss:$16 sps:$4 sm:$0xff]   ;;  %v1382_v62 = vld [vmem:[%s2008_s1 + $0x144] ss:$16 sps:$4 sm:$0xff]   ;;  %v1423_v25 = vld [vmem:[%s2008_s1 + $0x28c] ss:$16 sps:$4 sm:$0xff]  }
  0x1c   :  { %894 = vmatpush1.bf16.msra.mxu1 %v1345_v27  ;;  %854 = vmatprep.subr.bf16.mxu0 %v1346_v28  ;;  %v195_v61 = vcombine.high %v193_v58, %v193_v58  ;;  %v1384_v63 = vld [vmem:[%s2008_s1 + $0x344] ss:$16 sps:$4 sm:$0xff]   ;;  %v1386_v0 = vld [vmem:[%s2008_s1 + $0x140] ss:$16 sps:$4 sm:$0xff]   ;;  %v1418_v26 = vld [vmem:[%s2008_s1 + $0x88] ss:$16 sps:$4 sm:$0xff]  }
  0x1d   :  { %895 = vmatprep.subr.bf16.mxu1 %v1348_v29  ;;  %872 = vmatprep.mubr.bf16.mxu0 %v193_v58  ;;  %v1387_v1 = vld [vmem:[%s2008_s1 + $0x340] ss:$16 sps:$4 sm:$0xff]   ;;  %v1388_v2 = vld [vmem:[%s2008_s1 + $0x124] ss:$16 sps:$4 sm:$0xff]   ;;  %v1421_v27 = vld [vmem:[%s2008_s1 + $0x288] ss:$16 sps:$4 sm:$0xff]  }
  0x1e   :  { %913 = vmatprep.mubr.bf16.mxu1 %v195_v61  ;;  %v1390_v3 = vld [vmem:[%s2008_s1 + $0x324] ss:$16 sps:$4 sm:$0xff]   ;;  %v1392_v4 = vld [vmem:[%s2008_s1 + $0x120] ss:$16 sps:$4 sm:$0xff]   ;;  %v1426_v28 = vld [vmem:[%s2008_s1 + $0x6c] ss:$16 sps:$4 sm:$0xff]  }
  0x1f   :  { %855 = vmatpush1.bf16.msra.mxu0 %v1350_v30  ;;  %v1393_v5 = vld [vmem:[%s2008_s1 + $0x320] ss:$16 sps:$4 sm:$0xff]   ;;  %v1394_v6 = vld [vmem:[%s2008_s1 + $0x104] ss:$16 sps:$4 sm:$0xff]   ;;  %v1429_v29 = vld [vmem:[%s2008_s1 + $0x26c] ss:$16 sps:$4 sm:$0xff]  }
  0x20   :  { %896 = vmatpush1.bf16.msra.mxu1 %v1351_v31  ;;  %856 = vmatprep.subr.bf16.mxu0 %v1352_v32  ;;  %v1396_v7 = vld [vmem:[%s2008_s1 + $0x304] ss:$16 sps:$4 sm:$0xff]   ;;  %v1398_v8 = vld [vmem:[%s2008_s1 + $0x100] ss:$16 sps:$4 sm:$0xff]   ;;  %v1424_v30 = vld [vmem:[%s2008_s1 + $0x68] ss:$16 sps:$4 sm:$0xff]  }
  0x21   :  { %897 = vmatprep.subr.bf16.mxu1 %v1354_v33  ;;  %v1399_v10 = vld [vmem:[%s2008_s1 + $0x300] ss:$16 sps:$4 sm:$0xff]   ;;  %v1427_v31 = vld [vmem:[%s2008_s1 + $0x268] ss:$16 sps:$4 sm:$0xff]   ;;  %v1432_v32 = vld [vmem:[%s2008_s1 + $0x4c] ss:$16 sps:$4 sm:$0xff]  }
  0x22   :  { %v1435_v33 = vld [vmem:[%s2008_s1 + $0x24c] ss:$16 sps:$4 sm:$0xff]   ;;  %v1454_v51 = vld [vmem:[%s2008_s1 + $0x1c8] ss:$16 sps:$4 sm:$0xff]  }
  0x23   :  { %857 = vmatpush2.bf16.msra.mxu0 %v1356_v34  ;;  %v1430_v34 = vld [vmem:[%s2008_s1 + $0x48] ss:$16 sps:$4 sm:$0xff]  }
  0x24   :  { %898 = vmatpush2.bf16.msra.mxu1 %v1357_v35  ;;  %858 = vmatprep.subr.bf16.mxu0 %v1358_v36  ;;  %v1433_v35 = vld [vmem:[%s2008_s1 + $0x248] ss:$16 sps:$4 sm:$0xff]   ;;  %v1438_v36 = vld [vmem:[%s2008_s1 + $0x2c] ss:$16 sps:$4 sm:$0xff]  }
  0x25   :  { %899 = vmatprep.subr.bf16.mxu1 %v1360_v37  ;;  %v1441_v37 = vld [vmem:[%s2008_s1 + $0x22c] ss:$16 sps:$4 sm:$0xff]   ;;  %v1457_v52 = vld [vmem:[%s2008_s1 + $0x3c8] ss:$16 sps:$4 sm:$0xff]  }
  0x26   :  { %v1460_v55 = vld [vmem:[%s2008_s1 + $0x1a8] ss:$16 sps:$4 sm:$0xff]  }
  0x27   :  { %859 = vmatpush2.bf16.msra.mxu0 %v1362_v41  ;;  %v1447_v41 = vld [vmem:[%s2008_s1 + $0x20c] ss:$16 sps:$4 sm:$0xff]  }
  0x28   :  { %900 = vmatpush2.bf16.msra.mxu1 %v1363_v42  ;;  %860 = vmatprep.subr.bf16.mxu0 %v1364_v43  ;;  %v1442_v42 = vld [vmem:[%s2008_s1 + $0x8] ss:$16 sps:$4 sm:$0xff]  }
  0x29   :  { %901 = vmatprep.subr.bf16.mxu1 %v1366_v44  ;;  %v1445_v43 = vld [vmem:[%s2008_s1 + $0x208] ss:$16 sps:$4 sm:$0xff]   ;;  %v1450_v44 = vld [vmem:[%s2008_s1 + $0x1ec] ss:$16 sps:$4 sm:$0xff]  }
  0x2b   :  { %861 = vmatpush2.bf16.msra.mxu0 %v1368_v47  ;;  %v1448_v47 = vld [vmem:[%s2008_s1 + $0x1e8] ss:$16 sps:$4 sm:$0xff]  }
  0x2c   :  { %902 = vmatpush2.bf16.msra.mxu1 %v1369_v48  ;;  %862 = vmatprep.subr.bf16.mxu0 %v1370_v49  ;;  %v1451_v48 = vld [vmem:[%s2008_s1 + $0x3e8] ss:$16 sps:$4 sm:$0xff]   ;;  %v1456_v49 = vld [vmem:[%s2008_s1 + $0x1cc] ss:$16 sps:$4 sm:$0xff]  }
  0x2d   :  { %903 = vmatprep.subr.bf16.mxu1 %v1372_v50  ;;  %v1459_v50 = vld [vmem:[%s2008_s1 + $0x3cc] ss:$16 sps:$4 sm:$0xff]  }
  0x2f   :  { %863 = vmatpush2.bf16.msra.mxu0 %v1374_v53  ;;  %v1462_v53 = vld [vmem:[%s2008_s1 + $0x1ac] ss:$16 sps:$4 sm:$0xff]  }
  0x30   :  { %904 = vmatpush2.bf16.msra.mxu1 %v1375_v54  ;;  %864 = vmatprep.subr.bf16.mxu0 %v1376_v56  ;;  %v1465_v54 = vld [vmem:[%s2008_s1 + $0x3ac] ss:$16 sps:$4 sm:$0xff]   ;;  %v1463_v56 = vld [vmem:[%s2008_s1 + $0x3a8] ss:$16 sps:$4 sm:$0xff]  }
  0x31   :  { %905 = vmatprep.subr.bf16.mxu1 %v1378_v57  ;;  %v1468_v57 = vld [vmem:[%s2008_s1 + $0x18c] ss:$16 sps:$4 sm:$0xff]  }
  0x33   :  { %865 = vmatpush2.bf16.msra.mxu0 %v1380_v59  ;;  %v1466_v59 = vld [vmem:[%s2008_s1 + $0x188] ss:$16 sps:$4 sm:$0xff]  }
  0x34   :  { %906 = vmatpush2.bf16.msra.mxu1 %v1381_v60  ;;  %866 = vmatprep.subr.bf16.mxu0 %v1382_v62  ;;  %v1469_v60 = vld [vmem:[%s2008_s1 + $0x388] ss:$16 sps:$4 sm:$0xff]   ;;  %v1477_v62 = vld [vmem:[%s2008_s1 + $0x36c] ss:$16 sps:$4 sm:$0xff]  }
  0x35   :  { %907 = vmatprep.subr.bf16.mxu1 %v1384_v63  ;;  %v1472_v63 = vld [vmem:[%s2008_s1 + $0x168] ss:$16 sps:$4 sm:$0xff]  }
  0x37   :  { %867 = vmatpush2.bf16.msra.mxu0 %v1386_v0  ;;  %v1475_v0 = vld [vmem:[%s2008_s1 + $0x368] ss:$16 sps:$4 sm:$0xff]  }
  0x38   :  { %908 = vmatpush2.bf16.msra.mxu1 %v1387_v1  ;;  %868 = vmatprep.subr.bf16.mxu0 %v1388_v2  ;;  %v1480_v1 = vld [vmem:[%s2008_s1 + $0x14c] ss:$16 sps:$4 sm:$0xff]  }
  0x39   :  { %909 = vmatprep.subr.bf16.mxu1 %v1390_v3  ;;  %v1483_v2 = vld [vmem:[%s2008_s1 + $0x34c] ss:$16 sps:$4 sm:$0xff]   ;;  %v1478_v3 = vld [vmem:[%s2008_s1 + $0x148] ss:$16 sps:$4 sm:$0xff]  }
  0x3b   :  { %869 = vmatpush2.bf16.msra.mxu0 %v1392_v4  ;;  %v1481_v4 = vld [vmem:[%s2008_s1 + $0x348] ss:$16 sps:$4 sm:$0xff]  }
  0x3c   :  { %910 = vmatpush2.bf16.msra.mxu1 %v1393_v5  ;;  %870 = vmatprep.subr.bf16.mxu0 %v1394_v6  ;;  %v1486_v5 = vld [vmem:[%s2008_s1 + $0x12c] ss:$16 sps:$4 sm:$0xff]  }
  0x3d   :  { %911 = vmatprep.subr.bf16.mxu1 %v1396_v7  ;;  %v1489_v6 = vld [vmem:[%s2008_s1 + $0x32c] ss:$16 sps:$4 sm:$0xff]   ;;  %v1484_v7 = vld [vmem:[%s2008_s1 + $0x128] ss:$16 sps:$4 sm:$0xff]  }
  0x3f   :  { %871 = vmatpush2.bf16.msra.mxu0 %v1398_v8  ;;  %v1487_v8 = vld [vmem:[%s2008_s1 + $0x328] ss:$16 sps:$4 sm:$0xff]  }
  0x40   :  { %912 = vmatpush2.bf16.msra.mxu1 %v1399_v10  ;;  %922 = vmatprep.subr.bf16.mxu0 %v1402_v11  ;;  %v1492_v10 = vld [vmem:[%s2008_s1 + $0x10c] ss:$16 sps:$4 sm:$0xff]  }
  0x41   :  { %963 = vmatprep.subr.bf16.mxu1 %v1405_v12  ;;  %v1495_v11 = vld [vmem:[%s2008_s1 + $0x30c] ss:$16 sps:$4 sm:$0xff]   ;;  %v1490_v12 = vld [vmem:[%s2008_s1 + $0x108] ss:$16 sps:$4 sm:$0xff]  }
  0x42   :  { %873 = vmatmul.mubr.bf16.vlgmr.msra.gmra.mxu0 %v1731_v9 }
  0x43   :  { %914 = vmatmul.mubr.bf16.vlgmr.msra.gmra.mxu1 %v1744_v13  ;;  %923 = vmatpush1.bf16.msra.mxu0 %v1400_v14  ;;  %v1493_v14 = vld [vmem:[%s2008_s1 + $0x308] ss:$16 sps:$4 sm:$0xff]  }
  0x44   :  { %964 = vmatpush1.bf16.msra.mxu1 %v1403_v15  ;;  %924 = vmatprep.subr.bf16.mxu0 %v1408_v16  ;;  %v1937_v15 = vsub.s32 0, %v1662_v45  ;;  %v1942_v16 = vld [vmem:[%s2010_s2] sm:$0xf] }
  0x45   :  { %965 = vmatprep.subr.bf16.mxu1 %v1411_v17  ;;  %954 = vmatprep.mubr.bf16.mxu0 %v193_v58  ;;  %v1471_v58 = vld [vmem:[%s2008_s1 + $0x38c] ss:$16 sps:$4 sm:$0xff]   ;;  %v1945_v17 = vsub.s32 1, %v1662_v45 }
  0x46   :  { %995 = vmatprep.mubr.bf16.mxu1 %v195_v61  ;;  %v1474_v61 = vld [vmem:[%s2008_s1 + $0x16c] ss:$16 sps:$4 sm:$0xff]  }
  0x47   :  { %925 = vmatpush1.bf16.msra.mxu0 %v1406_v18  ;;  %v154_v18 = vrot.slane %v1942_v16, %v1937_v15 }
  0x48   :  { %966 = vmatpush1.bf16.msra.mxu1 %v1409_v19  ;;  %926 = vmatprep.subr.bf16.mxu0 %v1414_v20  ;;  %v158_v19 = vrot.slane %v1942_v16, %v1945_v17 }
  0x49   :  { %967 = vmatprep.subr.bf16.mxu1 %v1417_v21 }
  0x4b   :  { %927 = vmatpush1.bf16.msra.mxu0 %v1412_v22 }
  0x4c   :  { %968 = vmatpush1.bf16.msra.mxu1 %v1415_v23  ;;  %928 = vmatprep.subr.bf16.mxu0 %v1420_v24 }
  0x4d   :  { %969 = vmatprep.subr.bf16.mxu1 %v1423_v25 }
  0x4f   :  { %929 = vmatpush1.bf16.msra.mxu0 %v1418_v26 }
  0x50   :  { %970 = vmatpush1.bf16.msra.mxu1 %v1421_v27  ;;  %930 = vmatprep.subr.bf16.mxu0 %v1426_v28 }
  0x51   :  { %971 = vmatprep.subr.bf16.mxu1 %v1429_v29 }
  0x53   :  { %931 = vmatpush1.bf16.msra.mxu0 %v1424_v30 }
  0x54   :  { %972 = vmatpush1.bf16.msra.mxu1 %v1427_v31  ;;  %932 = vmatprep.subr.bf16.mxu0 %v1432_v32 }
  0x55   :  { %973 = vmatprep.subr.bf16.mxu1 %v1435_v33 }
  0x57   :  { %933 = vmatpush1.bf16.msra.mxu0 %v1430_v34 }
  0x58   :  { %974 = vmatpush1.bf16.msra.mxu1 %v1433_v35  ;;  %934 = vmatprep.subr.bf16.mxu0 %v1438_v36 }
  0x59   :  { %975 = vmatprep.subr.bf16.mxu1 %v1441_v37 }
  0x5b   :  { %935 = vmatpush1.bf16.msra.mxu0 %v1436_v38 }
  0x5c   :  { %976 = vmatpush1.bf16.msra.mxu1 %v1439_v39  ;;  %936 = vmatprep.subr.bf16.mxu0 %v1444_v40 }
  0x5d   :  { %977 = vmatprep.subr.bf16.mxu1 %v1447_v41 }
  0x5f   :  { %937 = vmatpush1.bf16.msra.mxu0 %v1442_v42 }
  0x60   :  { %978 = vmatpush1.bf16.msra.mxu1 %v1445_v43  ;;  %938 = vmatprep.subr.bf16.mxu0 %v1450_v44 }
  0x61   :  { %979 = vmatprep.subr.bf16.mxu1 %v1453_v46 }
  0x63   :  { %939 = vmatpush2.bf16.msra.mxu0 %v1448_v47 }
  0x64   :  { %980 = vmatpush2.bf16.msra.mxu1 %v1451_v48  ;;  %940 = vmatprep.subr.bf16.mxu0 %v1456_v49 }
  0x65   :  { %981 = vmatprep.subr.bf16.mxu1 %v1459_v50 }
  0x67   :  { %941 = vmatpush2.bf16.msra.mxu0 %v1454_v51 }
  0x68   :  { %982 = vmatpush2.bf16.msra.mxu1 %v1457_v52  ;;  %942 = vmatprep.subr.bf16.mxu0 %v1462_v53 }
  0x69   :  { %983 = vmatprep.subr.bf16.mxu1 %v1465_v54 }
  0x6b   :  { %943 = vmatpush2.bf16.msra.mxu0 %v1460_v55 }
  0x6c   :  { %984 = vmatpush2.bf16.msra.mxu1 %v1463_v56  ;;  %944 = vmatprep.subr.bf16.mxu0 %v1468_v57 }
  0x6d   :  { %985 = vmatprep.subr.bf16.mxu1 %v1471_v58 }
  0x6f   :  { %945 = vmatpush2.bf16.msra.mxu0 %v1466_v59 }
  0x70   :  { %986 = vmatpush2.bf16.msra.mxu1 %v1469_v60  ;;  %946 = vmatprep.subr.bf16.mxu0 %v1474_v61 }
  0x71   :  { %987 = vmatprep.subr.bf16.mxu1 %v1477_v62 }
  0x73   :  { %947 = vmatpush2.bf16.msra.mxu0 %v1472_v63 }
  0x74   :  { %988 = vmatpush2.bf16.msra.mxu1 %v1475_v0  ;;  %948 = vmatprep.subr.bf16.mxu0 %v1480_v1 }
  0x75   :  { %989 = vmatprep.subr.bf16.mxu1 %v1483_v2 }
  0x77   :  { %949 = vmatpush2.bf16.msra.mxu0 %v1478_v3 }
  0x78   :  { %990 = vmatpush2.bf16.msra.mxu1 %v1481_v4  ;;  %950 = vmatprep.subr.bf16.mxu0 %v1486_v5 }
  0x79   :  { %991 = vmatprep.subr.bf16.mxu1 %v1489_v6 }
  0x7b   :  { %951 = vmatpush2.bf16.msra.mxu0 %v1484_v7  ;;  %v1958_v7 = vld [vmem:[%s2011_s3] sm:$0xf] }
  0x7c   :  { %992 = vmatpush2.bf16.msra.mxu1 %v1487_v8  ;;  %952 = vmatprep.subr.bf16.mxu0 %v1492_v10  ;;  %v1087_v8 = vrot.slane %v1958_v7, %v1937_v15  ;;  %v1965_v10 = vld [vmem:[%s2012_s4] sm:$0xf] }
  0x7d   :  { %993 = vmatprep.subr.bf16.mxu1 %v1495_v11  ;;  %v1091_v11 = vrot.slane %v1958_v7, %v1945_v17 }
  0x7f   :  { %953 = vmatpush2.bf16.msra.mxu0 %v1490_v12 }
  0x80   :  { %994 = vmatpush2.bf16.msra.mxu1 %v1493_v14 }
  0x82   :  { %955 = vmatmul.mubr.bf16.vlgmr.msra.gmra.mxu0 %v1731_v9 }
  0x83   :  { %996 = vmatmul.mubr.bf16.vlgmr.msra.gmra.mxu1 %v1744_v13 }
 0x102   :  { %v874_v9 = vpop.f32.mrf.mxu0 }
 0x103   :  { %v915_v20 = vpop.f32.mrf.mxu1  ;;  %v875_v13 = vadd.f32 %v874_v9, %v154_v18  ;;  %v1125_v18 = vrot.slane %v1965_v10, %v1937_v15 }
 0x104   :  { %v876_v21 = vpop.f32.mrf.mxu0 }
 0x105   :  { %v917_v22 = vpop.f32.mrf.mxu1  ;;  %v916_v23 = vadd.f32 %v915_v20, %v875_v13  ;;  %v877_v24 = vadd.f32 %v876_v21, %v158_v19  ;;  %v1129_v20 = vrot.slane %v1965_v10, %v1945_v17  ;;  %v1974_v13 = vsub.s32 2, %v1662_v45 }
 0x106   :  { %v878_v25 = vpop.f32.mrf.mxu0 }
 0x107   :  { %v919_v26 = vpop.f32.mrf.mxu1  ;;  %v1004_v27 = vmax.f32 %v916_v23, 0.0  ;;  %v918_v28 = vadd.f32 %v917_v22, %v877_v24  ;;  %v1977_v23 = vsub.s32 3, %v1662_v45  ;;  %v162_v15 = vrot.slane %v1942_v16, %v1974_v13 }
 0x108   :  { %v879_v29 = vpop.f32.mrf.mxu0 }
 0x109   :  { %v920_v30 = vpop.f32.mrf.mxu1  ;;  %v1009_v31 = vsel %vm1008_vm0, %v1004_v27, 0.0  ;;  %v1005_v32 = vmax.f32 %v918_v28, 0.0  ;;  %v166_v17 = vrot.slane %v1942_v16, %v1977_v23 }
 0x10a   :  { %v1010_v33 = vrot.slane %v1009_v31, 4 }
 0x10b   :  { %v1016_v34 = vsel %vm1008_vm0, %v1005_v32, 0.0 }
 0x10c   :  { %v1011_v35 = vadd.f32 %v1010_v33, %v1009_v31  ;;  %v1017_v36 = vrot.slane %v1016_v34, 4 }
 0x10e   :  { %v1012_v37 = vrot.slane %v1011_v35, 2  ;;  %v1018_v38 = vadd.f32 %v1017_v36, %v1016_v34 }
 0x110   :  { %v1013_v39 = vadd.f32 %v1012_v37, %v1011_v35  ;;  %v1019_v40 = vrot.slane %v1018_v38, 2 }
 0x112   :  { %v1014_v41 = vrot.slane %v1013_v39, 1  ;;  %v1020_v42 = vadd.f32 %v1019_v40, %v1018_v38 }
 0x114   :  { %v1015_v43 = vadd.f32 %v1014_v41, %v1013_v39  ;;  %v1021_v44 = vrot.slane %v1020_v42, 1 }
 0x116   :  { %v1038_v46 = vmul.f32 0.5, %v1015_v43  ;;  %v1022_v47 = vadd.f32 %v1021_v44, %v1020_v42 }
 0x118   :  { %v1042_v48 = vsub.f32 %v1004_v27, %v1038_v46  ;;  %v1039_v49 = vmul.f32 0.5, %v1022_v47 }
 0x11a   :  { %v1046_v50 = vmul.f32 %v1042_v48, %v1042_v48  ;;  %v1043_v51 = vsub.f32 %v1005_v32, %v1039_v49  ;;  %v1104_v12 = vmul.f32 %v1087_v8, %v1042_v48 }
 0x11c   :  { %v1050_v52 = vsel %vm1008_vm0, %v1046_v50, 0.0  ;;  %v1047_v53 = vmul.f32 %v1043_v51, %v1043_v51  ;;  %v1105_v9 = vmul.f32 %v1091_v11, %v1043_v51 }
 0x11d   :  { %v1051_v54 = vrot.slane %v1050_v52, 4 }
 0x11e   :  { %v1057_v55 = vsel %vm1008_vm0, %v1047_v53, 0.0 }
 0x11f   :  { %v1052_v56 = vadd.f32 %v1051_v54, %v1050_v52  ;;  %v1058_v57 = vrot.slane %v1057_v55, 4 }
 0x121   :  { %v1053_v58 = vrot.slane %v1052_v56, 2  ;;  %v1059_v59 = vadd.f32 %v1058_v57, %v1057_v55 }
 0x123   :  { %v1054_v60 = vadd.f32 %v1053_v58, %v1052_v56  ;;  %v1060_v61 = vrot.slane %v1059_v59, 2 }
 0x125   :  { %v1055_v62 = vrot.slane %v1054_v60, 1  ;;  %v1061_v63 = vadd.f32 %v1060_v61, %v1059_v59 }
 0x127   :  { %v1056_v0 = vadd.f32 %v1055_v62, %v1054_v60  ;;  %v1062_v1 = vrot.slane %v1061_v63, 1 }
 0x129   :  { %v1078_v2 = vmul.f32 0.5, %v1056_v0  ;;  %v1063_v3 = vadd.f32 %v1062_v1, %v1061_v63 }
 0x12b   :  { %v1108_v4 = vadd.f32 1e-05, %v1078_v2  ;;  %v1079_v5 = vmul.f32 0.5, %v1063_v3 }
 0x12d   :  { %1496 = vrsqrt.f32 %v1108_v4  ;;  %v1109_v6 = vadd.f32 1e-05, %v1079_v5 }
 0x12f   :  { %1498 = vrsqrt.f32 %v1109_v6 }
 0x13a   :  { %v1497_v14 = vpop.eup %1496 }
 0x13b   :  { %v1116_v19 = vmul.f32 %v1497_v14, %v1104_v12 }
 0x13c   :  { %v1499_v21 = vpop.eup %1498 }
 0x13d   :  { %v1117_v22 = vmul.f32 %v1499_v21, %v1105_v9  ;;  %v1979_v24 = vadd.f32 %v1125_v18, %v1116_v19  ;;  %v1095_v21 = vrot.slane %v1958_v7, %v1974_v13 }
 0x13f   :  { %v1981_v25 = vadd.f32 %v1129_v20, %v1117_v22  ;;  %v1505_v22 = vmov 1983009808  }
 0x141   :  { %v1150_v26 = vcombine.low %v1979_v24, %v1981_v25 }
 0x142   :  { %v956_v27 = vpop.f32.mrf.mxu0 }
 0x143   :  { %v997_v28 = vpop.f32.mrf.mxu1  ;;  %v957_v29 = vadd.f32 %v956_v27, %v162_v15  ;;  %v1153_v15 = vunpack.c.l.s4 %v1505_v22 }
 0x144   :  { %v958_v30 = vpop.f32.mrf.mxu0 }
 0x145   :  { %v999_v31 = vpop.f32.mrf.mxu1  ;;  %v998_v32 = vadd.f32 %v997_v28, %v957_v29  ;;  %v959_v33 = vadd.f32 %v958_v30, %v166_v17  ;;  %v1099_v17 = vrot.slane %v1958_v7, %v1977_v23  ;;  %v1154_v29 = vunpack.c.0.s8 %v1153_v15 }
 0x146   :  { %v960_v34 = vpop.f32.mrf.mxu0 }
 0x147   :  { %v1001_v35 = vpop.f32.mrf.mxu1  ;;  %v1006_v36 = vmax.f32 %v998_v32, 0.0  ;;  %v1000_v37 = vadd.f32 %v999_v31, %v959_v33  ;;  %v1133_v31 = vrot.slane %v1965_v10, %v1974_v13  ;;  %v1137_v33 = vrot.slane %v1965_v10, %v1977_v23 }
 0x148   :  { %v961_v38 = vpop.f32.mrf.mxu0 }
 0x149   :  { %v1002_v39 = vpop.f32.mrf.mxu1  ;;  %v1023_v40 = vsel %vm1008_vm0, %v1006_v36, 0.0  ;;  %v1007_v41 = vmax.f32 %v1000_v37, 0.0 }
 0x14a   :  { %v1024_v42 = vrot.slane %v1023_v40, 4 }
 0x14b   :  { %v1030_v43 = vsel %vm1008_vm0, %v1007_v41, 0.0 }
 0x14c   :  { %v1025_v16 = vadd.f32 %v1024_v42, %v1023_v40  ;;  %v1031_v44 = vrot.slane %v1030_v43, 4 }
 0x14e   :  { %v1026_v46 = vrot.slane %v1025_v16, 2  ;;  %v1032_v47 = vadd.f32 %v1031_v44, %v1030_v43 }
 0x150   :  { %v1027_v48 = vadd.f32 %v1026_v46, %v1025_v16  ;;  %v1033_v49 = vrot.slane %v1032_v47, 2 }
 0x152   :  { %v1028_v50 = vrot.slane %v1027_v48, 1  ;;  %v1034_v51 = vadd.f32 %v1033_v49, %v1032_v47 }
 0x154   :  { %v1029_v52 = vadd.f32 %v1028_v50, %v1027_v48  ;;  %v1035_v53 = vrot.slane %v1034_v51, 1 }
 0x156   :  { %v1040_v54 = vmul.f32 0.5, %v1029_v52  ;;  %v1036_v55 = vadd.f32 %v1035_v53, %v1034_v51 }
 0x158   :  { %v1044_v56 = vsub.f32 %v1006_v36, %v1040_v54  ;;  %v1041_v57 = vmul.f32 0.5, %v1036_v55  ;;  %v1157_v36 = vsub.s32 %v1154_v29, %v1662_v45 }
 0x15a   :  { %v1048_v58 = vmul.f32 %v1044_v56, %v1044_v56  ;;  %v1045_v59 = vsub.f32 %v1007_v41, %v1041_v57  ;;  %v1106_v27 = vmul.f32 %v1095_v21, %v1044_v56  ;;  %v1158_v7 = vrot.slane %v1150_v26, %v1157_v36 }
 0x15c   :  { %v1064_v60 = vsel %vm1008_vm0, %v1048_v58, 0.0  ;;  %v1049_v61 = vmul.f32 %v1045_v59, %v1045_v59  ;;  %v1107_v32 = vmul.f32 %v1099_v17, %v1045_v59 }
 0x15d   :  { %v1065_v62 = vrot.slane %v1064_v60, 4 }
 0x15e   :  { %v1071_v63 = vsel %vm1008_vm0, %v1049_v61, 0.0 }
 0x15f   :  { %v1066_v0 = vadd.f32 %v1065_v62, %v1064_v60  ;;  %v1072_v1 = vrot.slane %v1071_v63, 4 }
 0x161   :  { %v1067_v2 = vrot.slane %v1066_v0, 2  ;;  %v1073_v3 = vadd.f32 %v1072_v1, %v1071_v63 }
 0x163   :  { %v1068_v4 = vadd.f32 %v1067_v2, %v1066_v0  ;;  %v1074_v5 = vrot.slane %v1073_v3, 2 }
 0x165   :  { %v1069_v6 = vrot.slane %v1068_v4, 1  ;;  %v1075_v8 = vadd.f32 %v1074_v5, %v1073_v3 }
 0x167   :  { %v1070_v11 = vadd.f32 %v1069_v6, %v1068_v4  ;;  %v1076_v12 = vrot.slane %v1075_v8, 1 }
 0x169   :  { %v1080_v14 = vmul.f32 0.5, %v1070_v11  ;;  %v1077_v18 = vadd.f32 %v1076_v12, %v1075_v8 }
 0x16b   :  { %v1110_v19 = vadd.f32 1e-05, %v1080_v14  ;;  %v1081_v9 = vmul.f32 0.5, %v1077_v18 }
 0x16d   :  { %1500 = vrsqrt.f32 %v1110_v19  ;;  %v1111_v20 = vadd.f32 1e-05, %v1081_v9 }
 0x16f   :  { %1502 = vrsqrt.f32 %v1111_v20 }
 0x17a   :  { %v1501_v28 = vpop.eup %1500 }
 0x17b   :  { %v1118_v30 = vmul.f32 %v1501_v28, %v1106_v27 }
 0x17c   :  { %v1503_v34 = vpop.eup %1502 }
 0x17d   :  { %v1119_v35 = vmul.f32 %v1503_v34, %v1107_v32  ;;  %v1144_v37 = vadd.f32 %v1133_v31, %v1118_v30 }
 0x17f   :  { %v1145_v38 = vadd.f32 %v1137_v33, %v1119_v35 }
 0x181   :  { %v1151_v39 = vcombine.low %v1144_v37, %v1145_v38 }
 0x183   :  { %v1165_v40 = vrot.slane %v1151_v39, %v1157_v36 }
 0x185   :  { %v1166_v41 = vcombine.low %v1158_v7, %v1165_v40 }
 0x187   :  { %1168 = vst [vmem:[%s2013_s5] sm:$0xff] %v1166_v41 }

// kernel: kepla_forward.32
= control target key start
LH: loop header
LB: loop body
LE: loop exit
PB: predicated region body
PF: predicated region fallthrough
CT: control target
= control target key end

     0   :  { %v554_v22 = vmov 1966171168   ;;  %v105_v24 = vlaneseq  ;;  %vm395_vm0 = vcmask 1041408   ;;  %s696_s1 = inlined_call_operand.vmem [shape: bf16[512,128], index: 1, kind: input, shape index: {}]   ;;  %s697_s0 = inlined_call_operand.vmem [shape: bf16[2,512], index: 0, kind: input, shape index: {}]   ;;  %s698_s2 = inlined_call_operand.vmem [shape: f32[1,128], index: 2, kind: input, shape index: {}]   ;;  %s699_s3 = inlined_call_operand.vmem [shape: f32[1,128], index: 3, kind: input, shape index: {}]   ;;  %s700_s4 = inlined_call_operand.vmem [shape: f32[1,128], index: 4, kind: input, shape index: {}]   ;;  %s701_s5 = inlined_call_operand.vmem [shape: f32[2,128], index: 5, kind: output, shape index: {}]  }
   0x1   :  { %v520_v0 = vld [vmem:[%s696_s1 + $0x78] sm:$0xff]   ;;  %v524_v4 = vld [vmem:[%s696_s1 + $0x70] sm:$0xff]   ;;  %v528_v8 = vld [vmem:[%s696_s1 + $0x68] sm:$0xff]   ;;  %v103_v23 = vunpack.c.l.s4 %v554_v22 }
   0x2   :  { %v521_v1 = vld [vmem:[%s696_s1 + $0xf8] sm:$0xff]   ;;  %475 = vmatprep.subr.bf16.mxu0 %v520_v0  ;;  %v525_v5 = vld [vmem:[%s696_s1 + $0xf0] sm:$0xff]   ;;  %v529_v9 = vld [vmem:[%s696_s1 + $0xe8] sm:$0xff]   ;;  %v106_v30 = vshrl.u32 %v105_v24, 7 }
   0x3   :  { %v522_v2 = vld [vmem:[%s696_s1 + $0x38] sm:$0xff]   ;;  %497 = vmatprep.subr.bf16.mxu1 %v521_v1  ;;  %v526_v6 = vld [vmem:[%s696_s1 + $0x30] sm:$0xff]   ;;  %v530_v10 = vld [vmem:[%s696_s1 + $0x28] sm:$0xff]   ;;  %v104_v29 = vunpack.c.0.s8 %v103_v23 }
   0x4   :  { %v523_v3 = vld [vmem:[%s696_s1 + $0xb8] sm:$0xff]   ;;  %476 = vmatpush3.bf16.msra.mxu0 %v522_v2  ;;  %v527_v7 = vld [vmem:[%s696_s1 + $0xb0] sm:$0xff]   ;;  %v531_v11 = vld [vmem:[%s696_s1 + $0xa8] sm:$0xff]  }
   0x5   :  { %498 = vmatpush3.bf16.msra.mxu1 %v523_v3  ;;  %477 = vmatprep.subr.bf16.mxu0 %v524_v4  ;;  %v532_v12 = vld [vmem:[%s696_s1 + $0x60] sm:$0xff]   ;;  %v536_v16 = vld [vmem:[%s696_s1 + $0x58] sm:$0xff]   ;;  %v540_v20 = vld [vmem:[%s696_s1 + $0x50] sm:$0xff]   ;;  %v107_v35 = vsub.s32 %v104_v29, %v106_v30 }
   0x6   :  { %499 = vmatprep.subr.bf16.mxu1 %v525_v5  ;;  %v533_v13 = vld [vmem:[%s696_s1 + $0xe0] sm:$0xff]   ;;  %v537_v17 = vld [vmem:[%s696_s1 + $0xd8] sm:$0xff]   ;;  %v541_v21 = vld [vmem:[%s696_s1 + $0xd0] sm:$0xff]  }
   0x7   :  { %v534_v14 = vld [vmem:[%s696_s1 + $0x20] sm:$0xff]   ;;  %v538_v18 = vld [vmem:[%s696_s1 + $0x18] sm:$0xff]   ;;  %v542_v25 = vld [vmem:[%s696_s1 + $0x10] sm:$0xff]  }
   0x8   :  { %478 = vmatpush3.bf16.msra.mxu0 %v526_v6  ;;  %v535_v15 = vld [vmem:[%s696_s1 + $0xa0] sm:$0xff]   ;;  %v539_v19 = vld [vmem:[%s696_s1 + $0x98] sm:$0xff]   ;;  %v543_v26 = vld [vmem:[%s696_s1 + $0x90] sm:$0xff]  }
   0x9   :  { %500 = vmatpush3.bf16.msra.mxu1 %v527_v7  ;;  %479 = vmatprep.subr.bf16.mxu0 %v528_v8  ;;  %v544_v27 = vld [vmem:[%s696_s1 + $0x48] sm:$0xff]   ;;  %v548_v33 = vld [vmem:[%s696_s1 + $0x40] sm:$0xff]  }
   0xa   :  { %501 = vmatprep.subr.bf16.mxu1 %v529_v9  ;;  %v545_v28 = vld [vmem:[%s696_s1 + $0xc8] sm:$0xff]   ;;  %v549_v34 = vld [vmem:[%s696_s1 + $0xc0] sm:$0xff]  }
   0xb   :  { %v546_v31 = vld [vmem:[%s696_s1 + $0x8] sm:$0xff]   ;;  %v550_v36 = vld [vmem:[%s696_s1] sm:$0xff]  }
   0xc   :  { %480 = vmatpush3.bf16.msra.mxu0 %v530_v10  ;;  %v547_v32 = vld [vmem:[%s696_s1 + $0x88] sm:$0xff]   ;;  %v551_v37 = vld [vmem:[%s696_s1 + $0x80] sm:$0xff]  }
   0xd   :  { %502 = vmatpush3.bf16.msra.mxu1 %v531_v11  ;;  %481 = vmatprep.subr.bf16.mxu0 %v532_v12  ;;  %v440_v38 = vld.sshfl [vmem:[%s697_s0] sm:$0x33 pattern:$0x75316420] }
   0xe   :  { %503 = vmatprep.subr.bf16.mxu1 %v533_v13  ;;  %v101_v39 = vcombine.high %v440_v38, %v440_v38  ;;  %v108_v40 = vrot.slane %v440_v38, %v107_v35  ;;  %v439_v46 = vld [vmem:[%s698_s2] ss:$0 sm:$0xff] }
   0xf   :  { %v473_v13 = vld [vmem:[%s699_s3] ss:$0 sm:$0xff] }
  0x10   :  { %482 = vmatpush3.bf16.msra.mxu0 %v534_v14  ;;  %v115_v41 = vrot.slane %v101_v39, %v107_v35  ;;  %v116_v42 = vcombine.high %v108_v40, %v108_v40 }
  0x11   :  { %504 = vmatpush3.bf16.msra.mxu1 %v535_v15  ;;  %483 = vmatprep.subr.bf16.mxu0 %v536_v16  ;;  %v474_v16 = vld [vmem:[%s700_s4] ss:$0 sm:$0xff] }
  0x12   :  { %505 = vmatprep.subr.bf16.mxu1 %v537_v17  ;;  %346 = vmatprep.mubr.bf16.mxu0 %v115_v41  ;;  %v117_v43 = vcombine.high %v115_v41, %v115_v41 }
  0x14   :  { %484 = vmatpush3.bf16.msra.mxu0 %v538_v18  ;;  %386 = vmatprep.mubr.bf16.mxu1 %v117_v43 }
  0x15   :  { %506 = vmatpush3.bf16.msra.mxu1 %v539_v19  ;;  %485 = vmatprep.subr.bf16.mxu0 %v540_v20 }
  0x16   :  { %507 = vmatprep.subr.bf16.mxu1 %v541_v21 }
  0x18   :  { %486 = vmatpush3.bf16.msra.mxu0 %v542_v25 }
  0x19   :  { %508 = vmatpush3.bf16.msra.mxu1 %v543_v26  ;;  %487 = vmatprep.subr.bf16.mxu0 %v544_v27 }
  0x1a   :  { %509 = vmatprep.subr.bf16.mxu1 %v545_v28 }
  0x1c   :  { %488 = vmatpush3.bf16.msra.mxu0 %v546_v31 }
  0x1d   :  { %510 = vmatpush3.bf16.msra.mxu1 %v547_v32  ;;  %489 = vmatprep.subr.bf16.mxu0 %v548_v33 }
  0x1e   :  { %511 = vmatprep.subr.bf16.mxu1 %v549_v34 }
  0x20   :  { %490 = vmatpush3.bf16.msra.mxu0 %v550_v36 }
  0x21   :  { %512 = vmatpush3.bf16.msra.mxu1 %v551_v37 }
  0x23   :  { %347 = vmatmul.mubr.bf16.vlgmr.msra.gmra.mxu0 %v108_v40 }
  0x24   :  { %387 = vmatmul.mubr.bf16.vlgmr.msra.gmra.mxu1 %v116_v42 }
  0xe3   :  { %v491_v44 = vpop.f32.mrf.mxu0 }
  0xe4   :  { %v513_v45 = vpop.f32.mrf.mxu1 }
  0xe5   :  { %v492_v47 = vpop.f32.mrf.mxu0 }
  0xe6   :  { %v493_v48 = vadd.f32 %v492_v47, %v491_v44  ;;  %v514_v49 = vpop.f32.mrf.mxu1 }
  0xe7   :  { %v494_v50 = vpop.f32.mrf.mxu0  ;;  %v515_v52 = vadd.f32 %v514_v49, %v513_v45 }
  0xe8   :  { %v349_v51 = vadd.f32 %v493_v48, %v439_v46  ;;  %v516_v53 = vpop.f32.mrf.mxu1 }
  0xe9   :  { %v495_v54 = vpop.f32.mrf.mxu0 }
  0xea   :  { %v389_v55 = vadd.f32 %v515_v52, %v349_v51  ;;  %v517_v56 = vpop.f32.mrf.mxu1 }
  0xec   :  { %v394_v57 = vmax.f32 %v389_v55, 0.0 }
  0xee   :  { %v396_v58 = vsel %vm395_vm0, %v394_v57, 0.0 }
  0xef   :  { %v397_v59 = vrot.slane %v396_v58, 4 }
  0xf1   :  { %v398_v60 = vadd.f32 %v397_v59, %v396_v58 }
  0xf3   :  { %v399_v61 = vrot.slane %v398_v60, 2 }
  0xf5   :  { %v400_v62 = vadd.f32 %v399_v61, %v398_v60 }
  0xf7   :  { %v401_v63 = vrot.slane %v400_v62, 1 }
  0xf9   :  { %v402_v0 = vadd.f32 %v401_v63, %v400_v62 }
  0xfb   :  { %v404_v1 = vmul.f32 0.5, %v402_v0 }
  0xfd   :  { %v405_v2 = vsub.f32 %v394_v57, %v404_v1 }
  0xff   :  { %v406_v3 = vmul.f32 %v405_v2, %v405_v2  ;;  %v422_v14 = vmul.f32 %v473_v13, %v405_v2 }
 0x101   :  { %v407_v4 = vsel %vm395_vm0, %v406_v3, 0.0 }
 0x102   :  { %v408_v5 = vrot.slane %v407_v4, 4 }
 0x104   :  { %v409_v6 = vadd.f32 %v408_v5, %v407_v4 }
 0x106   :  { %v410_v7 = vrot.slane %v409_v6, 2 }
 0x108   :  { %v411_v8 = vadd.f32 %v410_v7, %v409_v6 }
 0x10a   :  { %v412_v9 = vrot.slane %v411_v8, 1 }
 0x10c   :  { %v413_v10 = vadd.f32 %v412_v9, %v411_v8 }
 0x10e   :  { %v414_v11 = vmul.f32 0.5, %v413_v10 }
 0x110   :  { %v423_v12 = vadd.f32 1e-05, %v414_v11 }
 0x112   :  { %552 = vrsqrt.f32 %v423_v12 }
 0x11f   :  { %v553_v15 = vpop.eup %552 }
 0x120   :  { %v425_v17 = vmul.f32 %v553_v15, %v422_v14 }
 0x122   :  { %v433_v18 = vadd.f32 %v474_v16, %v425_v17 }
 0x124   :  { %434 = vst [vmem:[%s701_s5] sm:$0x3] %v433_v18 }

// kernel: kepla_forward.33
= control target key start
LH: loop header
LB: loop body
LE: loop exit
PB: predicated region body
PF: predicated region fallthrough
CT: control target
= control target key end

     0   :  { %v193_v0 = vmov 0.0   ;;  %vm194_vm0 = vmmov 0   ;;  %s248_s1 = inlined_call_operand.vmem [shape: bf16[128,128], index: 1, kind: input, shape index: {}]   ;;  %s249_s0 = inlined_call_operand.vmem [shape: bf16[2,128], index: 0, kind: input, shape index: {}]   ;;  %s250_s2 = inlined_call_operand.vmem [shape: f32[1,128], index: 2, kind: input, shape index: {}]   ;;  %s251_s3 = inlined_call_operand.vmem [shape: f32[2,128], index: 3, kind: output, shape index: {}]  }
   0x1   :  { %163 = vmatprep.subr.bf16.mxu0 %v193_v0  ;;  %19 = vst [vmem:[#allocation2] sm:$0x3] %v193_v0  ;;  %v185_v1 = vld [vmem:[%s248_s1 + $0x38] sm:$0xff]   ;;  %179 = vmatprep.mubr.msk.bf16.mxu0 %vm194_vm0, %v193_v0  ;;  %v186_v2 = vld [vmem:[%s248_s1 + $0x30] sm:$0xff]   ;;  %v187_v3 = vld [vmem:[%s248_s1 + $0x28] sm:$0xff]  }
   0x2   :  { %164 = vmatpush3.bf16.msra.mxu0 %v185_v1  ;;  %v188_v4 = vld [vmem:[%s248_s1 + $0x20] sm:$0xff]   ;;  %v189_v5 = vld [vmem:[%s248_s1 + $0x18] sm:$0xff]   ;;  %v190_v6 = vld [vmem:[%s248_s1 + $0x10] sm:$0xff]  }
   0x3   :  { %165 = vmatprep.subr.bf16.mxu0 %v193_v0  ;;  %v191_v7 = vld [vmem:[%s248_s1 + $0x8] sm:$0xff]   ;;  %v192_v8 = vld [vmem:[%s248_s1] sm:$0xff]  }
   0x4   :  { %v21_v9 = vld [vmem:[%s249_s0] sm:$0x1] }
   0x5   :  { %v153_v16 = vld [vmem:[%s250_s2] ss:$0 sm:$0xff] }
   0x6   :  { %166 = vmatpush3.bf16.msra.mxu0 %v186_v2 }
   0x7   :  { %167 = vmatprep.subr.bf16.mxu0 %v193_v0 }
   0x8   :  { %v20_v10 = vld [vmem:[#allocation2] sm:$0x3] }
   0xa   :  { %168 = vmatpush3.bf16.msra.mxu0 %v187_v3 }
   0xb   :  { %169 = vmatprep.subr.bf16.mxu0 %v193_v0 }
   0xe   :  { %170 = vmatpush3.bf16.msra.mxu0 %v188_v4 }
   0xf   :  { %171 = vmatprep.subr.bf16.mxu0 %v193_v0 }
  0x12   :  { %172 = vmatpush3.bf16.msra.mxu0 %v189_v5 }
  0x13   :  { %173 = vmatprep.subr.bf16.mxu0 %v193_v0 }
  0x16   :  { %174 = vmatpush3.bf16.msra.mxu0 %v190_v6 }
  0x17   :  { %175 = vmatprep.subr.bf16.mxu0 %v193_v0 }
  0x1a   :  { %176 = vmatpush3.bf16.msra.mxu0 %v191_v7 }
  0x1b   :  { %177 = vmatprep.subr.bf16.mxu0 %v193_v0 }
  0x1e   :  { %178 = vmatpush3.bf16.msra.mxu0 %v192_v8 }
  0x21   :  { %180 = vmatmul.mubr.bf16.vlgmr.msra.gmra.mxu0 %v21_v9 }
  0xe1   :  { %v120_v11 = vpop.f32.mrf.mxu0 }
  0xe2   :  { %v126_v12 = vadd.f32 %v120_v11, %v20_v10 }
  0xe3   :  { %v181_v13 = vpop.f32.mrf.mxu0 }
  0xe4   :  { %127 = vst [vmem:[#allocation2] sm:$0x3] %v126_v12 }
  0xe5   :  { %v123_v14 = vpop.f32.mrf.mxu0 }
  0xe7   :  { %v182_v15 = vpop.f32.mrf.mxu0 }
  0xeb   :  { %v131_v17 = vld [vmem:[#allocation2] sm:$0x3] }
  0xec   :  { %v139_v18 = vadd.f32 %v153_v16, %v131_v17 }
  0xee   :  { %140 = vst [vmem:[%s251_s3] sm:$0x3] %v139_v18 }

</bundles_post_ra>
